<compile_context>
chip_gen: v7x
topology: tpu7x:2x2x1
jax: 0.10.0
libtpu: 0.0.40
codegen_flags: <defaults>
</compile_context>

<pallas_src>
import functools

import jax
import jax.numpy as jnp
import numpy as np
from jax import lax
from jax.experimental import pallas as pl
from jax.experimental.pallas import tpu as pltpu

C = 128          # channels (Conv1d(1,128), Conv1d(128,128))
K1 = 50          # conv1_1 kernel size (stride 6)
K1P = 56         # conv1 im2col reduction dim padded to a multiple of 8
K2 = 8           # conv2_2 kernel size (stride 1)
PAD1 = (22, 22)  # padding_edf['conv1']
PADP = (2, 2)    # padding_edf['max_pool1']
PAD2 = (3, 4)    # padding_edf['conv2']


def _f_common_kernel(xw_ref, w1_ref, w2_ref, o_ref, s2_ref, *,
                     B, L2P, NB8, L4, L4C, S2_ROWS):
    f32 = jnp.float32

    # ---- conv1_1 (+ReLU): one im2col matmul over all B samples --------------
    xw = xw_ref[...].reshape(B * L2P, K1P)                      # bf16
    h1 = jnp.dot(xw, w1_ref[...], preferred_element_type=f32)   # (B*L2P, C) f32
    h1 = jnp.maximum(h1, 0.0)

    # ---- ConstantPad1d((2,2)) + MaxPool1d(8,8) -------------------------------
    # Window w of a sample covers rows [8w-2, 8w+6) of that sample's h1 slab
    # (zero pads outside; slab rows >= L2 are exactly zero because the
    # corresponding im2col rows were zero-padded and ReLU(0) == 0).  Split each
    # window into the first 6 rows of aligned block w and the last 2 rows of
    # block w-1, so all reductions stay on (8,128)-aligned vregs.
    r = h1.reshape(B * NB8, 8, C)
    head6 = jnp.max(r[:, 0:6, :], axis=1).reshape(B, NB8, C)
    tail2 = jnp.max(r[:, 6:8, :], axis=1).reshape(B, NB8, C)
    tail_prev = jnp.concatenate(
        [jnp.zeros((B, 1, C), f32), tail2[:, :L4 - 1, :]], axis=1)
    pooled = jnp.maximum(head6[:, :L4, :], tail_prev)            # (B, L4, C)
    # TODO(synk): Dropout(p=0.5) treated as eval-mode identity; a training-mode
    # port would use pltpu.prng_seed / pltpu.prng_random_bits + 1/(1-p) scaling.

    # ---- Stage ConstantPad1d((3,4)) input for conv2_2 ------------------------
    # bf16 scratch; the data region starts at the sublane-aligned row 8 (the
    # (3,4) zero pad lives in rows 5..7 and 8+L4..).  Pad rows are re-zeroed
    # every step so "parallel" core splitting of the grid stays correct.
    s2_ref[:, 0:8, :] = jnp.zeros((B, 8, C), s2_ref.dtype)
    s2_ref[:, 8 + L4:, :] = jnp.zeros((B, S2_ROWS - 8 - L4, C), s2_ref.dtype)
    s2_ref[:, 8:8 + L4, :] = pooled.astype(s2_ref.dtype)

    # ---- conv2_2 (+ReLU): single im2col matmul, K = 8*128 = 1024 -------------
    # PyTorch padded input P2[i] == s2[i + 5];  out[t] = sum_k P2[t+k] @ W2t[k].
    # One deep-K matmul (vs 8 separate K=128 matmuls) keeps the 256-deep MXU
    # full on v6e/v7x.
    taps = [s2_ref[:, k + 5:k + 5 + L4C, :].reshape(B * L4C, C)
            for k in range(K2)]
    lhs = jnp.concatenate(taps, axis=1)                          # (B*L4C, 1024) bf16
    h2 = jnp.dot(lhs, w2_ref[...], preferred_element_type=f32)   # (B*L4C, C) f32
    h2 = jnp.maximum(h2, 0.0)
    o_ref[...] = h2.reshape(B, L4C, C)


def f_common_forward(x_ncl, w1, w2, *, block_b=4):
    """x_ncl: (N, 1, L) f32.  w1: (128,1,50), w2: (128,128,8) (PyTorch layouts).
    Returns (N, 128, L_out) like the PyTorch module in eval mode."""
    n, cin, L = x_ncl.shape
    assert cin == 1
    L2 = (L + PAD1[0] + PAD1[1] - K1) // 6 + 1      # conv1 output length
    L4 = (L2 + PADP[0] + PADP[1]) // 8              # maxpool output length
    L2P = 16 * ((L2 + 4 + 15) // 16)                # padded conv1 rows (>= L2+4, bf16-tile aligned)
    NB8 = L2P // 8
    L4C = 16 * ((L4 + 15) // 16)                    # conv2 rows computed per sample
    S2_ROWS = L4C + 16                              # staged conv2 input rows per sample

    nb = -(-n // block_b)
    n_pad = nb * block_b

    # conv1 im2col on the wrapper side (cheap 1-channel gather; all heavy math
    # stays in-kernel).
    xp = jnp.pad(x_ncl.reshape(n, L).astype(jnp.float32),
                 ((0, 0), (PAD1[0], PAD1[1])))
    gidx = (jnp.arange(L2) * 6)[:, None] + jnp.arange(K1)[None, :]
    xw = xp[:, gidx]                                               # (n, L2, 50)
    xw = jnp.pad(xw, ((0, n_pad - n), (0, L2P - L2), (0, K1P - K1)))
    xw = xw.astype(jnp.bfloat16)

    # Weights: PyTorch (Cout, Cin, K) -> matmul layouts, bf16 (f32 accumulation).
    w1_mat = jnp.pad(w1.reshape(C, K1).T.astype(jnp.float32),
                     ((0, K1P - K1), (0, 0))).astype(jnp.bfloat16)          # (56, 128)
    w2_flat = jnp.transpose(w2, (2, 1, 0)).reshape(K2 * C, C).astype(jnp.bfloat16)  # (1024, 128)

    kernel = functools.partial(_f_common_kernel, B=block_b, L2P=L2P, NB8=NB8,
                               L4=L4, L4C=L4C, S2_ROWS=S2_ROWS)

    out = pl.pallas_call(
        kernel,
        out_shape=jax.ShapeDtypeStruct((n_pad, L4C, C), jnp.float32),
        grid_spec=pltpu.PrefetchScalarGridSpec(
            num_scalar_prefetch=0,
            grid=(nb,),
            in_specs=[
                pl.BlockSpec((block_b, L2P, K1P), lambda i: (i, 0, 0)),
                pl.BlockSpec((K1P, C), lambda i: (0, 0)),
                pl.BlockSpec((K2 * C, C), lambda i: (0, 0)),
            ],
            out_specs=pl.BlockSpec((block_b, L4C, C), lambda i: (i, 0, 0)),
            scratch_shapes=[pltpu.VMEM((block_b, S2_ROWS, C), jnp.bfloat16)],
        ),
        compiler_params=pltpu.CompilerParams(
            dimension_semantics=("parallel",)),
    )(xw, w1_mat, w2_flat)

    # Drop padded rows/samples and return PyTorch NCL layout.
    return jnp.transpose(out[:n, :L4, :], (0, 2, 1))               # (N, 128, L4)


def f_common_ref(x_ncl, w1, w2):
    """Pure-JAX f32 reference matching the PyTorch module (eval mode)."""
    h = jnp.pad(x_ncl, ((0, 0), (0, 0), PAD1))
    h = lax.conv_general_dilated(h, w1, window_strides=(6,), padding='VALID',
                                 dimension_numbers=('NCH', 'OIH', 'NCH'),
                                 precision=lax.Precision.HIGHEST)
    h = jnp.maximum(h, 0.0)
    h = jnp.pad(h, ((0, 0), (0, 0), PADP))
    nbat, nc, lh = h.shape
    nwin = (lh - 8) // 8 + 1
    h = jnp.max(h[:, :, :nwin * 8].reshape(nbat, nc, nwin, 8), axis=3)
    # Dropout(p=0.5): eval-mode identity.
    h = jnp.pad(h, ((0, 0), (0, 0), PAD2))
    h = lax.conv_general_dilated(h, w2, window_strides=(1,), padding='VALID',
                                 dimension_numbers=('NCH', 'OIH', 'NCH'),
                                 precision=lax.Precision.HIGHEST)
    return jnp.maximum(h, 0.0)


if __name__ == "__main__":
    key = jax.random.PRNGKey(0)
    kx, k1, k2 = jax.random.split(key, 3)
    n, L = 8, 768                                    # small shapes; L_out = 16
    x = jax.random.normal(kx, (n, 1, L), dtype=jnp.float32)

    # PyTorch Conv1d default init: U(-b, b), b = 1/sqrt(Cin*K).
    b1 = 1.0 / np.sqrt(1 * K1)
    b2 = 1.0 / np.sqrt(C * K2)
    w1 = jax.random.uniform(k1, (C, 1, K1), jnp.float32, -b1, b1)
    w2 = jax.random.uniform(k2, (C, C, K2), jnp.float32, -b2, b2)

    out = jax.block_until_ready(f_common_forward(x, w1, w2, block_b=4))
    ref = f_common_ref(x, w1, w2)

    assert out.shape == ref.shape, (out.shape, ref.shape)
    # bf16 MXU inputs with f32 accumulation vs pure-f32 reference.
    np.testing.assert_allclose(np.asarray(out), np.asarray(ref),
                               rtol=2e-2, atol=2e-2)
    print("KERNEL_OK")
</pallas_src>

<mosaic_0001>
module attributes {stable_mosaic.version = 11 : i64} {
  func.func @_f_common_kernel(%arg0: i32, %arg1: memref<4x144x56xbf16, #tpu.memory_space<vmem>>, %arg2: memref<56x128xbf16, #tpu.memory_space<vmem>>, %arg3: memref<1024x128xbf16, #tpu.memory_space<vmem>>, %arg4: memref<4x16x128xf32, #tpu.memory_space<vmem>>, %arg5: memref<4x32x128xbf16, #tpu.memory_space<vmem>>) attributes {dimension_semantics = [#tpu.dimension_semantics<parallel>], iteration_bounds = array<i64: 2>, scalar_prefetch = 0 : i64, scratch_operands = 1 : i64, tpu.core_type = #tpu.core_type<tc>, window_params = [{transform_indices = @transform_0, window_bounds = array<i64: 4, 144, 56>}, {pipeline_mode = #tpu.pipeline_mode<synchronous>, transform_indices = @transform_1, window_bounds = array<i64: 56, 128>}, {pipeline_mode = #tpu.pipeline_mode<synchronous>, transform_indices = @transform_2, window_bounds = array<i64: 1024, 128>}, {transform_indices = @transform_3, window_bounds = array<i64: 4, 16, 128>}]} {
    %c0 = arith.constant 0 : index
    %c0_0 = arith.constant 0 : index
    %c0_1 = arith.constant 0 : index
    %0 = vector.load %arg1[%c0, %c0_0, %c0_1] : memref<4x144x56xbf16, #tpu.memory_space<vmem>>, vector<4x144x56xbf16>
    %1 = vector.shape_cast %0 : vector<4x144x56xbf16> to vector<576x56xbf16>
    %c0_2 = arith.constant 0 : index
    %c0_3 = arith.constant 0 : index
    %2 = vector.load %arg2[%c0_2, %c0_3] : memref<56x128xbf16, #tpu.memory_space<vmem>>, vector<56x128xbf16>
    %cst = arith.constant dense<0.000000e+00> : vector<576x128xf32>
    %3 = tpu.matmul %1, %2, %cst {dimension_numbers = #tpu.dot_dimension_numbers<[1], [0], [0], [1], [0, 0, 1, 1], [], []>} : vector<576x56xbf16>, vector<56x128xbf16>, vector<576x128xf32> -> vector<576x128xf32>
    %cst_4 = arith.constant 0.000000e+00 : f32
    %4 = vector.broadcast %cst_4 : f32 to vector<576x128xf32>
    %5 = arith.maximumf %3, %4 : vector<576x128xf32>
    %6 = vector.shape_cast %5 : vector<576x128xf32> to vector<72x8x128xf32>
    %7 = vector.extract_strided_slice %6 {offsets = [0, 0, 0], sizes = [72, 6, 128], strides = [1, 1, 1]} : vector<72x8x128xf32> to vector<72x6x128xf32>
    %cst_5 = arith.constant dense<0xFF800000> : vector<72x128xf32>
    %8 = vector.multi_reduction <maximumf>, %7, %cst_5 [1] : vector<72x6x128xf32> to vector<72x128xf32>
    %9 = vector.shape_cast %8 : vector<72x128xf32> to vector<4x18x128xf32>
    %10 = vector.extract_strided_slice %6 {offsets = [0, 6, 0], sizes = [72, 2, 128], strides = [1, 1, 1]} : vector<72x8x128xf32> to vector<72x2x128xf32>
    %cst_6 = arith.constant dense<0xFF800000> : vector<72x128xf32>
    %11 = vector.multi_reduction <maximumf>, %10, %cst_6 [1] : vector<72x2x128xf32> to vector<72x128xf32>
    %12 = vector.shape_cast %11 : vector<72x128xf32> to vector<4x18x128xf32>
    %cst_7 = arith.constant 0.000000e+00 : f32
    %13 = vector.broadcast %cst_7 : f32 to vector<4x1x128xf32>
    %14 = vector.extract_strided_slice %12 {offsets = [0, 0, 0], sizes = [4, 15, 128], strides = [1, 1, 1]} : vector<4x18x128xf32> to vector<4x15x128xf32>
    %15 = tpu.concatenate %13, %14 in 1 : vector<4x1x128xf32>, vector<4x15x128xf32> -> vector<4x16x128xf32>
    %16 = vector.extract_strided_slice %9 {offsets = [0, 0, 0], sizes = [4, 16, 128], strides = [1, 1, 1]} : vector<4x18x128xf32> to vector<4x16x128xf32>
    %17 = arith.maximumf %16, %15 : vector<4x16x128xf32>
    %cst_8 = arith.constant 0.000000e+00 : bf16
    %18 = vector.broadcast %cst_8 : bf16 to vector<4x8x128xbf16>
    %c0_9 = arith.constant 0 : index
    %c0_10 = arith.constant 0 : index
    %c0_11 = arith.constant 0 : index
    %19 = vector.load %arg5[%c0_9, %c0_10, %c0_11] : memref<4x32x128xbf16, #tpu.memory_space<vmem>>, vector<4x8x128xbf16>
    tpu.vector_store %arg5[%c0_9, %c0_10, %c0_11], %18 {strides = array<i32>} : memref<4x32x128xbf16, #tpu.memory_space<vmem>>, vector<4x8x128xbf16>,
    %cst_12 = arith.constant 0.000000e+00 : bf16
    %20 = vector.broadcast %cst_12 : bf16 to vector<4x8x128xbf16>
    %c0_13 = arith.constant 0 : index
    %c24 = arith.constant 24 : index
    %c0_14 = arith.constant 0 : index
    %21 = vector.load %arg5[%c0_13, %c24, %c0_14] : memref<4x32x128xbf16, #tpu.memory_space<vmem>>, vector<4x8x128xbf16>
    tpu.vector_store %arg5[%c0_13, %c24, %c0_14], %20 {strides = array<i32>} : memref<4x32x128xbf16, #tpu.memory_space<vmem>>, vector<4x8x128xbf16>,
    %22 = arith.truncf %17 : vector<4x16x128xf32> to vector<4x16x128xbf16>
    %c0_15 = arith.constant 0 : index
    %c8 = arith.constant 8 : index
    %c0_16 = arith.constant 0 : index
    %23 = vector.load %arg5[%c0_15, %c8, %c0_16] : memref<4x32x128xbf16, #tpu.memory_space<vmem>>, vector<4x16x128xbf16>
    tpu.vector_store %arg5[%c0_15, %c8, %c0_16], %22 {strides = array<i32>} : memref<4x32x128xbf16, #tpu.memory_space<vmem>>, vector<4x16x128xbf16>,
    %c0_17 = arith.constant 0 : index
    %c5 = arith.constant 5 : index
    %c0_18 = arith.constant 0 : index
    %24 = vector.load %arg5[%c0_17, %c5, %c0_18] : memref<4x32x128xbf16, #tpu.memory_space<vmem>>, vector<4x16x128xbf16>
    %25 = vector.shape_cast %24 : vector<4x16x128xbf16> to vector<64x128xbf16>
    %c0_19 = arith.constant 0 : index
    %c6 = arith.constant 6 : index
    %c0_20 = arith.constant 0 : index
    %26 = vector.load %arg5[%c0_19, %c6, %c0_20] : memref<4x32x128xbf16, #tpu.memory_space<vmem>>, vector<4x16x128xbf16>
    %27 = vector.shape_cast %26 : vector<4x16x128xbf16> to vector<64x128xbf16>
    %c0_21 = arith.constant 0 : index
    %c7 = arith.constant 7 : index
    %c0_22 = arith.constant 0 : index
    %28 = vector.load %arg5[%c0_21, %c7, %c0_22] : memref<4x32x128xbf16, #tpu.memory_space<vmem>>, vector<4x16x128xbf16>
    %29 = vector.shape_cast %28 : vector<4x16x128xbf16> to vector<64x128xbf16>
    %c0_23 = arith.constant 0 : index
    %c8_24 = arith.constant 8 : index
    %c0_25 = arith.constant 0 : index
    %30 = vector.load %arg5[%c0_23, %c8_24, %c0_25] : memref<4x32x128xbf16, #tpu.memory_space<vmem>>, vector<4x16x128xbf16>
    %31 = vector.shape_cast %30 : vector<4x16x128xbf16> to vector<64x128xbf16>
    %c0_26 = arith.constant 0 : index
    %c9 = arith.constant 9 : index
    %c0_27 = arith.constant 0 : index
    %32 = vector.load %arg5[%c0_26, %c9, %c0_27] : memref<4x32x128xbf16, #tpu.memory_space<vmem>>, vector<4x16x128xbf16>
    %33 = vector.shape_cast %32 : vector<4x16x128xbf16> to vector<64x128xbf16>
    %c0_28 = arith.constant 0 : index
    %c10 = arith.constant 10 : index
    %c0_29 = arith.constant 0 : index
    %34 = vector.load %arg5[%c0_28, %c10, %c0_29] : memref<4x32x128xbf16, #tpu.memory_space<vmem>>, vector<4x16x128xbf16>
    %35 = vector.shape_cast %34 : vector<4x16x128xbf16> to vector<64x128xbf16>
    %c0_30 = arith.constant 0 : index
    %c11 = arith.constant 11 : index
    %c0_31 = arith.constant 0 : index
    %36 = vector.load %arg5[%c0_30, %c11, %c0_31] : memref<4x32x128xbf16, #tpu.memory_space<vmem>>, vector<4x16x128xbf16>
    %37 = vector.shape_cast %36 : vector<4x16x128xbf16> to vector<64x128xbf16>
    %c0_32 = arith.constant 0 : index
    %c12 = arith.constant 12 : index
    %c0_33 = arith.constant 0 : index
    %38 = vector.load %arg5[%c0_32, %c12, %c0_33] : memref<4x32x128xbf16, #tpu.memory_space<vmem>>, vector<4x16x128xbf16>
    %39 = vector.shape_cast %38 : vector<4x16x128xbf16> to vector<64x128xbf16>
    %40 = tpu.concatenate %25, %27, %29, %31, %33, %35, %37, %39 in 1 : vector<64x128xbf16>, vector<64x128xbf16>, vector<64x128xbf16>, vector<64x128xbf16>, vector<64x128xbf16>, vector<64x128xbf16>, vector<64x128xbf16>, vector<64x128xbf16> -> vector<64x1024xbf16>
    %c0_34 = arith.constant 0 : index
    %c0_35 = arith.constant 0 : index
    %41 = vector.load %arg3[%c0_34, %c0_35] : memref<1024x128xbf16, #tpu.memory_space<vmem>>, vector<1024x128xbf16>
    %cst_36 = arith.constant dense<0.000000e+00> : vector<64x128xf32>
    %42 = tpu.matmul %40, %41, %cst_36 {dimension_numbers = #tpu.dot_dimension_numbers<[1], [0], [0], [1], [0, 0, 1, 1], [], []>} : vector<64x1024xbf16>, vector<1024x128xbf16>, vector<64x128xf32> -> vector<64x128xf32>
    %cst_37 = arith.constant 0.000000e+00 : f32
    %43 = vector.broadcast %cst_37 : f32 to vector<64x128xf32>
    %44 = arith.maximumf %42, %43 : vector<64x128xf32>
    %45 = vector.shape_cast %44 : vector<64x128xf32> to vector<4x16x128xf32>
    %c0_38 = arith.constant 0 : index
    %c0_39 = arith.constant 0 : index
    %c0_40 = arith.constant 0 : index
    %46 = vector.load %arg4[%c0_38, %c0_39, %c0_40] : memref<4x16x128xf32, #tpu.memory_space<vmem>>, vector<4x16x128xf32>
    tpu.vector_store %arg4[%c0_38, %c0_39, %c0_40], %45 {strides = array<i32>} : memref<4x16x128xf32, #tpu.memory_space<vmem>>, vector<4x16x128xf32>,
    return
  }
  func.func @transform_0(%arg0: i32) -> (i32, i32, i32) {
    %c0_i32 = arith.constant 0 : i32
    %c0_i32_0 = arith.constant 0 : i32
    %c0_i32_1 = arith.constant 0 : i32
    return %arg0, %c0_i32, %c0_i32_0 : i32, i32, i32
  }
  func.func @transform_1(%arg0: i32) -> (i32, i32) {
    %c0_i32 = arith.constant 0 : i32
    %c0_i32_0 = arith.constant 0 : i32
    %c0_i32_1 = arith.constant 0 : i32
    return %c0_i32, %c0_i32_0 : i32, i32
  }
  func.func @transform_2(%arg0: i32) -> (i32, i32) {
    %c0_i32 = arith.constant 0 : i32
    %c0_i32_0 = arith.constant 0 : i32
    %c0_i32_1 = arith.constant 0 : i32
    return %c0_i32, %c0_i32_0 : i32, i32
  }
  func.func @transform_3(%arg0: i32) -> (i32, i32, i32) {
    %c0_i32 = arith.constant 0 : i32
    %c0_i32_0 = arith.constant 0 : i32
    %c0_i32_1 = arith.constant 0 : i32
    return %arg0, %c0_i32, %c0_i32_0 : i32, i32, i32
  }
}

</mosaic_0001>

<bundles_post_ra>
// kernel: tpu_custom_call.1
= control target key start
LH: loop header
LB: loop body
LE: loop exit
PB: predicated region body
PF: predicated region fallthrough
CT: control target
= control target key end

     0   :  { %8 = vsyncpa [#allocation4], 0  ;;  %s5585_s0 = inlined_call_operand.vmem [shape: bf16[8,144,56], index: 0, kind: input, shape index: {}]   ;;  %s5586_s1 = inlined_call_operand.vmem [shape: bf16[56,128], index: 1, kind: input, shape index: {}]   ;;  %s5587_s2 = inlined_call_operand.vmem [shape: bf16[1024,128], index: 2, kind: input, shape index: {}]   ;;  %s5588_s3 = inlined_call_operand.hbm [shape: f32[8,16,128], index: 3, kind: output, shape index: {}]  }
   0x1   :  { %10 = vsyncpa [#allocation4 + $0x1], 0  ;;  %s4433_s12 = smov 0   ;;  %s4435_s13 = smov 0  }
   0x2   :  { %s4437_s14 = smov 0   ;;  %s4439_s15 = smov 0  }
   0x3 LB: > { %s4454_s16 = sadd.s32 4294967295, %s4407_s15   ;;  %s3761_s17 = sadd.s32 4294967294, %s4407_s15   ;;  %s4407_s15 = sphi %s4439_s15, %s5606_s15   ;;  %s4403_s14 = sphi %s4437_s14, %s5605_s14   ;;  %s4399_s13 = sphi %s4435_s13, %s5604_s13   ;;  %s4395_s12 = sphi %s4433_s12, %s5603_s12  }
   0x4   : > { %s4458_s18 = sadd.s32 1, %s4407_s15   ;;  %s91_s19 = sadd.s32 1, %s4403_s14 }
   0x5   : > { %s88_s20 = ssub.s32 %s4407_s15, %s4458_s18  ;;  %p101_p0 = scmp.ne.s32.totalorder %s4403_s14, %s4399_s13 }
   0x6   : > { %p89_p1 = scmp.eq.s32.totalorder %s88_s20, 0  ;;  %p102_p2 = scmp.eq.s32.totalorder %s4454_s16, 1 }
   0x7   : > { %p107_p3 = scmp.ne.s32.totalorder %s4399_s13, %s4395_s12  ;;  %p108_p4 = scmp.eq.s32.totalorder %s3761_s17, 1 }
   0x8   : > { %s4469_s21 = scalar_select %p89_p1, %s4403_s14, %s91_s19  }
   0x9   : > { %p4471_p5 = por %p102_p2, %p101_p0  ;;  %p4475_p6 = por %p108_p4, %p107_p3 }
   0xa   : > { %p3764_p7 = scmp.ge.s32.totalorder %s4407_s15, 1  ;;  %p142_p8 = scmp.lt.s32.totalorder %s4407_s15, 3 }
   0xc   : > { %p143_p9 = pnand %p3764_p7, %p142_p8 }
   0xe   : > { %146 = sbr.rel (%p143_p9) target bundleno = 959 (0x3bf), region = 32 }
  0x15   : > { %v4240_v0 = vld [vmem:[%s5586_s1] sm:$0xff]   ;;  %v4241_v1 = vld [vmem:[%s5586_s1 + $0x8] sm:$0xff]   ;;  %s3766_s28 = sshll.u32 %s4454_s16, 2  ;;  %v4242_v2 = vld [vmem:[%s5586_s1 + $0x10] sm:$0xff]   ;;  %vm456_vm0 = vcmask 457728   ;;  %vm565_vm1 = vcmask 1043456  }
  0x16   : > { %4116 = vmatprep.subr.bf16.mxu0 %v4240_v0  ;;  %p168_p10 = scmp.lt.s32.totalorder %s3766_s28, 7  ;;  %v4243_v3 = vld [vmem:[%s5586_s1 + $0x18] ss:$0 sps:$4 sm:$0xff]   ;;  %v4280_v41 = vld [vmem:[%s5587_s2 + $0x40] sm:$0xff]   ;;  %v4282_v43 = vld [vmem:[%s5587_s2 + $0x48] sm:$0xff]   ;;  %vm946_vm2 = vcmask 1045504  }
  0x17   : > { %4117 = vmatpush3.bf16.msra.mxu0 %v4240_v0  ;;  %v567_v5 = vsel %vm565_vm1, %v4243_v3, 0  ;;  %v4281_v42 = vld [vmem:[%s5587_s2] sm:$0xff]   ;;  %3956 = vmatprep.subr.bf16.mxu1 %v4280_v41  ;;  %v4283_v44 = vld [vmem:[%s5587_s2 + $0x8] sm:$0xff]   ;;  %v4284_v45 = vld [vmem:[%s5587_s2 + $0x50] sm:$0xff]   ;;  %vm1395_vm3 = vcmask 1047558   ;;  %vm1876_vm4 = vcmask 1042434  }
  0x18   : > { %4118 = vmatprep.subr.bf16.mxu0 %v4241_v1  ;;  %s5608_s28 = smov (!%p168_p10, %s3766_s28), 7  ;;  %3957 = vmatpush3.bf16.msra.mxu1 %v4281_v42  ;;  %v4285_v49 = vld [vmem:[%s5587_s2 + $0x10] sm:$0xff]   ;;  %vm1878_vm5 = vcmask 1043459   ;;  %vm1880_vm6 = vcmask 1044484   ;;  %v4286_v41 = vld [vmem:[%s5587_s2 + $0x58] sm:$0xff]   ;;  %vm1882_vm7 = vcmask 1045509  }
  0x19   : > { %s4197_s6 = smul.u32 72, %s5608_s28  ;;  %3958 = vmatprep.subr.bf16.mxu1 %v4282_v43  ;;  %vm1884_vm8 = vcmask 1046534   ;;  %vm1886_vm9 = vcmask 1047559   ;;  %vm1939_vm10 = vcmask 1040384   ;;  %vm1888_vm11 = vcmask 1041409   ;;  %s164_s17 = sand.u32 1, %s4399_s13  }
  0x1a   : > { %vm2561_vm12 = vcmask 1044480   ;;  %vm2476_vm13 = vsmask.f32 5376  ;;  %vm2582_vm14 = vsmask.f32 4352  ;;  %vm2773_vm15 = vcmask 1042432  }
  0x1b   : > { %4119 = vmatpush3.bf16.msra.mxu0 %v4241_v1  ;;  %s4497_s9 = scalar_lea.vmem %s5585_s0, %s4197_s6  ;;  %s3765_s19 = sshll.u32 %s164_s17, 6 }
  0x1c   : > { %4120 = vmatprep.subr.bf16.mxu0 %v4242_v2  ;;  %v4244_v4 = vld [vmem:[%s4497_s9] sm:$0xff]   ;;  %v4245_v6 = vld [vmem:[%s4497_s9 + $0x8] sm:$0xff]   ;;  %v4246_v7 = vld [vmem:[%s4497_s9 + $0x10] sm:$0xff]   ;;  %3959 = vmatpush3.bf16.msra.mxu1 %v4283_v44  ;;  %s5523_s20 = scalar_lea.vmem [#allocation3], %s3765_s19  ;;  %s3915_s24 = sshll.u32 %s4454_s16, 10 }
  0x1d   : > { %4124 = vmatprep.mubr.msk.bf16.mxu0 %vm456_vm0, %v4244_v4  ;;  %v4247_v8 = vld [vmem:[%s4497_s9 + $0x18] sm:$0xff]   ;;  %v4248_v9 = vld [vmem:[%s4497_s9 + $0x20] sm:$0xff]   ;;  %v4249_v10 = vld [vmem:[%s4497_s9 + $0x28] sm:$0xff]   ;;  %3960 = vmatprep.subr.bf16.mxu1 %v4284_v45  ;;  %s3699_s25 = sshll.u32 %s5523_s20, 4  ;;  %s5536_s28 = scalar_lea.hbm %s5588_s3, %s3915_s24  ;;  %s5538_s25 = int_to_ptr.vmem [resolvable:$true] %s3699_s25 }
  0x1e   : > { %v4250_v11 = vld [vmem:[%s4497_s9 + $0x30] sm:$0xff]   ;;  %v4251_v12 = vld [vmem:[%s4497_s9 + $0x38] sm:$0xff]   ;;  %v4252_v13 = vld [vmem:[%s4497_s9 + $0x40] sm:$0xff]   ;;  %s5544_s29 = scalar_lea.sflag [#allocation4], %s164_s17  ;;  %s4345_s16 = scalar_lea.vmem %s5538_s25, 1024 }
  0x1f   : > { %4121 = vmatpush3.bf16.msra.mxu0 %v4242_v2  ;;  %v4253_v14 = vld [vmem:[%s4497_s9 + $0x48] sm:$0xff]   ;;  %v4254_v15 = vld [vmem:[%s4497_s9 + $0x50] sm:$0xff]   ;;  %v4255_v16 = vld [vmem:[%s4497_s9 + $0x58] sm:$0xff]   ;;  %p4346_p11 = scmp.ne.s32.totalorder %s5538_s25, %s4345_s16  ;;  %s4410_s30 = smov [#allocation3]  }
  0x20   : > { %4196 = vmatprep.subr.msk.bf16.mxu0 %vm565_vm1, %v4243_v3  ;;  %v4256_v17 = vld [vmem:[%s4497_s9 + $0x60] sm:$0xff]   ;;  %v4257_v18 = vld [vmem:[%s4497_s9 + $0x68] sm:$0xff]   ;;  %v4258_v19 = vld [vmem:[%s4497_s9 + $0x70] sm:$0xff]   ;;  %3961 = vmatpush3.bf16.msra.mxu1 %v4285_v49  ;;  %s4349_s4 = sshll.u32 %s4410_s30, 4  ;;  %s4350_s4 = int_to_ptr.vmem [resolvable:$false] %s4349_s4 }
  0x21   : > { %v4259_v20 = vld [vmem:[%s4497_s9 + $0x78] sm:$0xff]   ;;  %v4260_v21 = vld [vmem:[%s4497_s9 + $0x80] sm:$0xff]   ;;  %v4261_v22 = vld [vmem:[%s4497_s9 + $0x88] sm:$0xff]   ;;  %3962 = vmatprep.subr.bf16.mxu1 %v4286_v41  ;;  %p4347_p12 = pnand %p4346_p11, %p4471_p5  ;;  %s4351_s5 = scalar_lea.vmem %s4350_s4, 2048 }
  0x22   : > { %v4262_v23 = vld [vmem:[%s4497_s9 + $0x90] sm:$0xff]   ;;  %v4263_v24 = vld [vmem:[%s4497_s9 + $0x98] sm:$0xff]   ;;  %v4264_v25 = vld [vmem:[%s4497_s9 + $0xa0] sm:$0xff]   ;;  %p4352_p0 = scmp.lt.s32.totalorder %s5538_s25, %s4350_s4  ;;  %p4353_p1 = scmp.lt.s32.totalorder %s4351_s5, %s4345_s16 }
  0x23   : > { %4123 = vmatpush3.bf16.msra.mxu0 %v567_v5  ;;  %v4265_v26 = vld [vmem:[%s4497_s9 + $0xa8] sm:$0xff]   ;;  %v4266_v27 = vld [vmem:[%s4497_s9 + $0xb0] sm:$0xff]   ;;  %v4267_v28 = vld [vmem:[%s4497_s9 + $0xb8] sm:$0xff]   ;;  %p4348_p13 = pneg %p4347_p12 }
  0x24   : > { %v4268_v29 = vld [vmem:[%s4497_s9 + $0xc0] sm:$0xff]   ;;  %v4269_v30 = vld [vmem:[%s4497_s9 + $0xc8] sm:$0xff]   ;;  %v4270_v31 = vld [vmem:[%s4497_s9 + $0xd0] sm:$0xff]   ;;  %p4354_p2 = por %p4353_p1, %p4352_p0 }
  0x25   : > { %v4271_v32 = vld [vmem:[%s4497_s9 + $0xd8] sm:$0xff]   ;;  %v4272_v33 = vld [vmem:[%s4497_s9 + $0xe0] sm:$0xff]   ;;  %v4273_v34 = vld [vmem:[%s4497_s9 + $0xe8] sm:$0xff]  }
  0x26   : > { %4125 = vmatmul.mubr.msk.bf16.vlgmr.msra.gmra.mrb[0].mxu0 %vm456_vm0, %v4245_v6  ;;  %v4274_v35 = vld [vmem:[%s4497_s9 + $0xf0] sm:$0xff]   ;;  %v4275_v36 = vld [vmem:[%s4497_s9 + $0xf8] sm:$0xff]   ;;  %v4276_v37 = vld [vmem:[%s4497_s9 + $0x100] sm:$0xff]   ;;  %p4355_p3 = pnand %p4354_p2, %p4348_p13 }
  0x27   : > { %4128 = vmatprep.mubr.msk.bf16.mxu0 %vm456_vm0, %v4246_v7  ;;  %v4277_v38 = vld [vmem:[%s4497_s9 + $0x108] sm:$0xff]   ;;  %v4278_v39 = vld [vmem:[%s4497_s9 + $0x110] sm:$0xff]   ;;  %v4279_v40 = vld [vmem:[%s4497_s9 + $0x118] sm:$0xff]  }
  0x2e   : > { %4129 = vmatmul.mubr.msk.bf16.gmra.mrb[4].mxu0 %vm456_vm0, %v4247_v8 }
  0x2f   : > { %4132 = vmatprep.mubr.msk.bf16.mxu0 %vm456_vm0, %v4248_v9 }
  0x36   : > { %4133 = vmatmul.mubr.msk.bf16.gmra.mrb[8].mxu0 %vm456_vm0, %v4249_v10 }
  0x37   : > { %4136 = vmatprep.mubr.msk.bf16.mxu0 %vm456_vm0, %v4250_v11 }
  0x3e   : > { %4137 = vmatmul.mubr.msk.bf16.gmra.mrb[12].mxu0 %vm456_vm0, %v4251_v12 }
  0x3f   : > { %4140 = vmatprep.mubr.msk.bf16.mxu0 %vm456_vm0, %v4252_v13 }
  0x46   : > { %4141 = vmatmul.mubr.msk.bf16.gmra.mrb[16].mxu0 %vm456_vm0, %v4253_v14 }
  0x47   : > { %4144 = vmatprep.mubr.msk.bf16.mxu0 %vm456_vm0, %v4254_v15 }
  0x4e   : > { %4145 = vmatmul.mubr.msk.bf16.gmra.mrb[20].mxu0 %vm456_vm0, %v4255_v16 }
  0x4f   : > { %4148 = vmatprep.mubr.msk.bf16.mxu0 %vm456_vm0, %v4256_v17 }
  0x56   : > { %4149 = vmatmul.mubr.msk.bf16.gmra.mrb[24].mxu0 %vm456_vm0, %v4257_v18 }
  0x57   : > { %4152 = vmatprep.mubr.msk.bf16.mxu0 %vm456_vm0, %v4258_v19 }
  0x5e   : > { %4153 = vmatmul.mubr.msk.bf16.gmra.mrb[28].mxu0 %vm456_vm0, %v4259_v20 }
  0x5f   : > { %4156 = vmatprep.mubr.msk.bf16.mxu0 %vm456_vm0, %v4260_v21 }
  0x66   : > { %4157 = vmatmul.mubr.msk.bf16.gmra.mrb[32].mxu0 %vm456_vm0, %v4261_v22 }
  0x67   : > { %4160 = vmatprep.mubr.msk.bf16.mxu0 %vm456_vm0, %v4262_v23 }
  0x6e   : > { %4161 = vmatmul.mubr.msk.bf16.gmra.mrb[36].mxu0 %vm456_vm0, %v4263_v24 }
  0x6f   : > { %4164 = vmatprep.mubr.msk.bf16.mxu0 %vm456_vm0, %v4264_v25 }
  0x76   : > { %4165 = vmatmul.mubr.msk.bf16.gmra.mrb[40].mxu0 %vm456_vm0, %v4265_v26 }
  0x77   : > { %4168 = vmatprep.mubr.msk.bf16.mxu0 %vm456_vm0, %v4266_v27 }
  0x7e   : > { %4169 = vmatmul.mubr.msk.bf16.gmra.mrb[44].mxu0 %vm456_vm0, %v4267_v28 }
  0x7f   : > { %4172 = vmatprep.mubr.msk.bf16.mxu0 %vm456_vm0, %v4268_v29 }
  0x86   : > { %4173 = vmatmul.mubr.msk.bf16.gmra.mrb[48].mxu0 %vm456_vm0, %v4269_v30 }
  0x87   : > { %4176 = vmatprep.mubr.msk.bf16.mxu0 %vm456_vm0, %v4270_v31 }
  0x8e   : > { %4177 = vmatmul.mubr.msk.bf16.gmra.mrb[52].mxu0 %vm456_vm0, %v4271_v32 }
  0x8f   : > { %4180 = vmatprep.mubr.msk.bf16.mxu0 %vm456_vm0, %v4272_v33 }
  0x96   : > { %4181 = vmatmul.mubr.msk.bf16.gmra.mrb[56].mxu0 %vm456_vm0, %v4273_v34 }
  0x97   : > { %4184 = vmatprep.mubr.msk.bf16.mxu0 %vm456_vm0, %v4274_v35 }
  0x9e   : > { %4185 = vmatmul.mubr.msk.bf16.gmra.mrb[60].mxu0 %vm456_vm0, %v4275_v36 }
  0x9f   : > { %4188 = vmatprep.mubr.msk.bf16.mxu0 %vm456_vm0, %v4276_v37 }
  0xa6   : > { %4189 = vmatmul.mubr.msk.bf16.gmra.mrb[64].mxu0 %vm456_vm0, %v4277_v38 }
  0xa7   : > { %4192 = vmatprep.mubr.msk.bf16.mxu0 %vm456_vm0, %v4278_v39 }
  0xae   : > { %4193 = vmatmul.mubr.msk.bf16.gmra.mrb[68].mxu0 %vm456_vm0, %v4279_v40  ;;  %vm2688_vm0 = vsmask.f32 3328 }
  0xf9   : > { %v4126_v46 = vpop.f32.mrb[0].mxu0 }
  0xfa   : > { %v884_v47 = vmax.f32 %v4126_v46, 0.0  ;;  %v603_v48 = vpop.f32.mrb[1].mxu0 }
  0xfb   : > { %v882_v50 = vmax.f32 %v603_v48, 0.0  ;;  %v4127_v51 = vpop.f32.mrb[2].mxu0 }
  0xfc   : > { %v961_v52 = vsel %vm946_vm2, %v884_v47, -inf  ;;  %v1410_v53 = vsel %vm1395_vm3, %v884_v47, -inf  ;;  %v885_v54 = vmax.f32 %v4127_v51, 0.0  ;;  %v606_v55 = vpop.f32.mrb[3].mxu0  ;;  %v4287_v47 = vld [vmem:[%s5587_s2 + $0x18] sm:$0xff]  }
  0xfd   : > { %v962_v56 = vrot.slane %v961_v52, 4  ;;  %v1411_v57 = vrot.slane %v1410_v53, 4  ;;  %v947_v58 = vsel %vm946_vm2, %v882_v50, -inf  ;;  %v1396_v59 = vsel %vm1395_vm3, %v882_v50, -inf  ;;  %3963 = vmatpush3.bf16.msra.mxu1 %v4287_v47 }
  0xfe   : > { %v948_v60 = vrot.slane %v947_v58, 4  ;;  %v1397_v61 = vrot.slane %v1396_v59, 4  ;;  %v968_v62 = vsel %vm946_vm2, %v885_v54, -inf  ;;  %v1417_v63 = vsel %vm1395_vm3, %v885_v54, -inf }
  0xff   : > { %v963_v0 = vmax.f32 %v961_v52, %v962_v56  ;;  %v1412_v1 = vmax.f32 %v1410_v53, %v1411_v57  ;;  %v969_v2 = vrot.slane %v968_v62, 4  ;;  %v1418_v3 = vrot.slane %v1417_v63, 4 }
 0x100   : > { %v949_v4 = vmax.f32 %v947_v58, %v948_v60  ;;  %v1398_v5 = vmax.f32 %v1396_v59, %v1397_v61  ;;  %v883_v6 = vmax.f32 %v606_v55, 0.0 }
 0x101   : > { %v964_v7 = vrot.slane %v963_v0, 2  ;;  %v1413_v8 = vrot.slane %v1412_v1, 2  ;;  %v970_v9 = vmax.f32 %v968_v62, %v969_v2  ;;  %v1419_v10 = vmax.f32 %v1417_v63, %v1418_v3  ;;  %v4130_v11 = vpop.f32.mrb[4].mxu0  ;;  %v4288_v63 = vld [vmem:[%s5587_s2 + $0x60] sm:$0xff]  }
 0x102   : > { %v950_v12 = vrot.slane %v949_v4, 2  ;;  %v1399_v13 = vrot.slane %v1398_v5, 2  ;;  %v954_v14 = vsel %vm946_vm2, %v883_v6, -inf  ;;  %v1403_v15 = vsel %vm1395_vm3, %v883_v6, -inf  ;;  %v619_v16 = vpop.f32.mrb[5].mxu0  ;;  %3964 = vmatprep.subr.bf16.mxu1 %v4288_v63 }
 0x103   : > { %v965_v17 = vmax.f32 %v963_v0, %v964_v7  ;;  %v1414_v18 = vmax.f32 %v1412_v1, %v1413_v8  ;;  %v971_v19 = vrot.slane %v970_v9, 2  ;;  %v1420_v20 = vrot.slane %v1419_v10, 2  ;;  %v4131_v21 = vpop.f32.mrb[6].mxu0 }
 0x104   : > { %v951_v22 = vmax.f32 %v949_v4, %v950_v12  ;;  %v1400_v23 = vmax.f32 %v1398_v5, %v1399_v13  ;;  %v955_v24 = vrot.slane %v954_v14, 4  ;;  %v1404_v25 = vrot.slane %v1403_v15, 4  ;;  %v4599_v26 = vpop.f32.mrb[7].mxu0  ;;  %v4289_v4 = vld [vmem:[%s5587_s2 + $0x20] sm:$0xff]  }
 0x105   : > { %v966_v27 = vrot.slane %v965_v17, 1  ;;  %v1415_v28 = vrot.slane %v1414_v18, 1  ;;  %v4601_v29 = vmax.f32 %v970_v9, %v971_v19  ;;  %v1421_v30 = vmax.f32 %v1419_v10, %v1420_v20  ;;  %3965 = vmatpush3.bf16.msra.mxu1 %v4289_v4 }
 0x106   : > { %v952_v31 = vrot.slane %v951_v22, 1  ;;  %v1401_v32 = vrot.slane %v1400_v23, 1  ;;  %v956_v33 = vmax.f32 %v954_v14, %v955_v24  ;;  %v1405_v34 = vmax.f32 %v1403_v15, %v1404_v25 }
 0x107   : > { %v4603_v35 = vmax.f32 %v965_v17, %v966_v27  ;;  %v1422_v36 = vrot.slane %v1421_v30, 1  ;;  %v1416_v37 = vmax.f32 %v1414_v18, %v1415_v28  ;;  %v973_v38 = vrot.slane %v4601_v29, 1  ;;  %v4290_v17 = vld [vmem:[%s5587_s2 + $0x68] sm:$0xff]  }
 0x108   : > { %v957_v39 = vrot.slane %v956_v33, 2  ;;  %v1406_v40 = vrot.slane %v1405_v34, 2  ;;  %v4609_v42 = vmax.f32 %v951_v22, %v952_v31  ;;  %v1402_v43 = vmax.f32 %v1400_v23, %v1401_v32  ;;  %v4291_v23 = vld [vmem:[%s5587_s2 + $0x28] sm:$0xff]   ;;  %3966 = vmatprep.subr.bf16.mxu1 %v4290_v17 }
 0x109   : > { %v888_v44 = vmax.f32 %v4130_v11, 0.0  ;;  %v886_v45 = vmax.f32 %v619_v16, 0.0  ;;  %v4611_v46 = vpop.f32.mrb[8].mxu0  ;;  %v1423_v48 = vmax.f32 %v1421_v30, %v1422_v36  ;;  %v889_v51 = vmax.f32 %v4131_v21, 0.0  ;;  %3967 = vmatpush3.bf16.msra.mxu1 %v4291_v23 }
 0x10a   : > { %v4616_v49 = vmax.f32 %v956_v33, %v957_v39  ;;  %v1407_v50 = vmax.f32 %v1405_v34, %v1406_v40  ;;  %v4618_v52 = vpop.f32.mrb[9].mxu0  ;;  %v887_v61 = vmax.f32 %v4599_v26, 0.0  ;;  %v892_v63 = vmax.f32 %v4611_v46, 0.0 }
 0x10b   : > { %v989_v53 = vsel %vm946_vm2, %v888_v44, -inf  ;;  %v1438_v54 = vsel %vm1395_vm3, %v888_v44, -inf  ;;  %v975_v55 = vsel %vm946_vm2, %v886_v45, -inf  ;;  %v1424_v56 = vsel %vm1395_vm3, %v886_v45, -inf  ;;  %v4624_v57 = vpop.f32.mrb[10].mxu0 }
 0x10c   : > { %v1408_v58 = vrot.slane %v1407_v50, 1  ;;  %v990_v59 = vrot.slane %v989_v53, 4  ;;  %v1439_v60 = vrot.slane %v1438_v54, 4  ;;  %v4627_v62 = vpop.f32.mrb[11].mxu0  ;;  %v976_v0 = vrot.slane %v975_v55, 4 }
 0x10d   : > { %v1425_v1 = vrot.slane %v1424_v56, 4  ;;  %v996_v2 = vsel %vm946_vm2, %v889_v51, -inf  ;;  %v1445_v3 = vsel %vm1395_vm3, %v889_v51, -inf  ;;  %v959_v5 = vrot.slane %v4616_v49, 1 }
 0x10e   : > { %v1409_v6 = vmax.f32 %v1407_v50, %v1408_v58  ;;  %v991_v7 = vmax.f32 %v989_v53, %v990_v59  ;;  %v1440_v8 = vmax.f32 %v1438_v54, %v1439_v60  ;;  %v977_v9 = vmax.f32 %v975_v55, %v976_v0 }
 0x10f   : > { %v1426_v10 = vmax.f32 %v1424_v56, %v1425_v1  ;;  %v997_v11 = vrot.slane %v996_v2, 4  ;;  %v1446_v12 = vrot.slane %v1445_v3, 4  ;;  %v982_v16 = vsel %vm946_vm2, %v887_v61, -inf }
 0x110   : > { %v1877_v13 = vsel %vm1876_vm4, %v1409_v6, %v1402_v43  ;;  %v992_v14 = vrot.slane %v991_v7, 2  ;;  %v1441_v15 = vrot.slane %v1440_v8, 2  ;;  %v978_v19 = vrot.slane %v977_v9, 2  ;;  %v4292_v43 = vld [vmem:[%s5587_s2 + $0x70] sm:$0xff]  }
 0x111   : > { %v1879_v18 = vsel %vm1878_vm5, %v1416_v37, %v1877_v13  ;;  %v1427_v20 = vrot.slane %v1426_v10, 2  ;;  %v998_v21 = vmax.f32 %v996_v2, %v997_v11  ;;  %v4644_v22 = vpop.f32.mrb[12].mxu0  ;;  %v1447_v27 = vmax.f32 %v1445_v3, %v1446_v12  ;;  %3968 = vmatprep.subr.bf16.mxu1 %v4292_v43 }
 0x112   : > { %v993_v24 = vmax.f32 %v991_v7, %v992_v14  ;;  %v1442_v25 = vmax.f32 %v1440_v8, %v1441_v15  ;;  %v1881_v26 = vsel %vm1880_vm6, %v1423_v48, %v1879_v18  ;;  %v4650_v28 = vpop.f32.mrb[13].mxu0  ;;  %v979_v30 = vmax.f32 %v977_v9, %v978_v19  ;;  %v4293_v15 = vld [vmem:[%s5587_s2 + $0x30] sm:$0xff]  }
 0x113   : > { %v1428_v31 = vmax.f32 %v1426_v10, %v1427_v20  ;;  %v999_v32 = vrot.slane %v998_v21, 2  ;;  %v983_v33 = vrot.slane %v982_v16, 4  ;;  %v4652_v34 = vpop.f32.mrb[14].mxu0  ;;  %v1448_v39 = vrot.slane %v1447_v27, 2  ;;  %3969 = vmatpush3.bf16.msra.mxu1 %v4293_v15 }
 0x114   : > { %v994_v36 = vrot.slane %v993_v24, 1  ;;  %v1443_v37 = vrot.slane %v1442_v25, 1  ;;  %v1431_v40 = vsel %vm1395_vm3, %v887_v61, -inf  ;;  %v4655_v41 = vpop.f32.mrb[15].mxu0  ;;  %v980_v44 = vrot.slane %v979_v30, 1 }
 0x115   : > { %v1429_v45 = vrot.slane %v1428_v31, 1  ;;  %v1000_v47 = vmax.f32 %v998_v21, %v999_v32  ;;  %v984_v48 = vmax.f32 %v982_v16, %v983_v33  ;;  %v4663_v50 = vmax.f32 %v4601_v29, %v973_v38 }
 0x116   : > { %v4666_v51 = vmax.f32 %v4616_v49, %v959_v5  ;;  %v1449_v53 = vmax.f32 %v1447_v27, %v1448_v39  ;;  %v1432_v54 = vrot.slane %v1431_v40, 4  ;;  %v4668_v55 = vmax.f32 %v993_v24, %v994_v36 }
 0x117   : > { %v1430_v56 = vmax.f32 %v1428_v31, %v1429_v45  ;;  %v1001_v58 = vrot.slane %v1000_v47, 1  ;;  %v985_v59 = vrot.slane %v984_v48, 2  ;;  %v1444_v60 = vmax.f32 %v1442_v25, %v1443_v37 }
 0x118   : > { %v1433_v61 = vmax.f32 %v1431_v40, %v1432_v54  ;;  %v890_v29 = vmax.f32 %v4618_v52, 0.0  ;;  %v4672_v38 = vmax.f32 %v979_v30, %v980_v44  ;;  %v893_v1 = vmax.f32 %v4624_v57, 0.0 }
 0x119   : > { %v1883_v49 = vsel %vm1882_vm7, %v1430_v56, %v1881_v26  ;;  %v986_v0 = vmax.f32 %v984_v48, %v985_v59  ;;  %v4676_v2 = vpop.f32.mrb[16].mxu0  ;;  %v1450_v3 = vrot.slane %v1449_v53, 1  ;;  %v1017_v5 = vsel %vm946_vm2, %v892_v63, -inf }
 0x11a   : > { %v1434_v4 = vrot.slane %v1433_v61, 2  ;;  %v1466_v6 = vsel %vm1395_vm3, %v892_v63, -inf  ;;  %v667_v7 = vpop.f32.mrb[17].mxu0  ;;  %v4680_v46 = vmax.f32 %v1000_v47, %v1001_v58  ;;  %v1018_v52 = vrot.slane %v1017_v5, 4 }
 0x11b   : > { %v1467_v8 = vrot.slane %v1466_v6, 4  ;;  %v1003_v9 = vsel %vm946_vm2, %v890_v29, -inf  ;;  %v4683_v10 = vpop.f32.mrb[18].mxu0  ;;  %v1452_v57 = vsel %vm1395_vm3, %v890_v29, -inf  ;;  %v1024_v13 = vsel %vm946_vm2, %v893_v1, -inf }
 0x11c   : > { %v1435_v11 = vmax.f32 %v1433_v61, %v1434_v4  ;;  %v1004_v12 = vrot.slane %v1003_v9, 4  ;;  %v669_v14 = vpop.f32.mrb[19].mxu0  ;;  %v987_v16 = vrot.slane %v986_v0, 1  ;;  %v1019_v17 = vmax.f32 %v1017_v5, %v1018_v52 }
 0x11d   : > { %v1468_v18 = vmax.f32 %v1466_v6, %v1467_v8  ;;  %v1453_v19 = vrot.slane %v1452_v57, 4  ;;  %v1025_v23 = vrot.slane %v1024_v13, 4  ;;  %v1473_v24 = vsel %vm1395_vm3, %v893_v1, -inf }
 0x11e   : > { %v1436_v20 = vrot.slane %v1435_v11, 1  ;;  %v1005_v21 = vmax.f32 %v1003_v9, %v1004_v12  ;;  %v1020_v25 = vrot.slane %v1019_v17, 2  ;;  %v1474_v30 = vrot.slane %v1473_v24, 4 }
 0x11f   : > { %v1469_v26 = vrot.slane %v1468_v18, 2  ;;  %v1454_v27 = vmax.f32 %v1452_v57, %v1453_v19  ;;  %v1026_v33 = vmax.f32 %v1024_v13, %v1025_v23  ;;  %v891_v36 = vmax.f32 %v4627_v62, 0.0 }
 0x120   : > { %v1437_v31 = vmax.f32 %v1435_v11, %v1436_v20  ;;  %v1006_v32 = vrot.slane %v1005_v21, 2  ;;  %v4692_v37 = vmax.f32 %v1449_v53, %v1450_v3  ;;  %v1021_v39 = vmax.f32 %v1019_v17, %v1020_v25 }
 0x121   : > { %v4694_v40 = vmax.f32 %v1468_v18, %v1469_v26  ;;  %v1455_v43 = vrot.slane %v1454_v27, 2  ;;  %v4696_v44 = vpop.f32.mrb[20].mxu0  ;;  %v988_v45 = vmax.f32 %v986_v0, %v987_v16  ;;  %v4701_v54 = vmax.f32 %v1473_v24, %v1474_v30 }
 0x122   : > { %v1885_v47 = vsel %vm1884_vm8, %v1437_v31, %v1883_v49  ;;  %v4699_v48 = vmax.f32 %v1005_v21, %v1006_v32  ;;  %v4703_v56 = vpop.f32.mrb[21].mxu0  ;;  %v1022_v59 = vrot.slane %v1021_v39, 1  ;;  %v1027_v53 = vrot.slane %v1026_v33, 2 }
 0x123   : > { %v1887_v58 = vsel %vm1886_vm9, %v1444_v60, %v1885_v47  ;;  %v4709_v61 = vsel %vm946_vm2, %v891_v36, -inf  ;;  %v4711_v63 = vpop.f32.mrb[22].mxu0  ;;  %v1471_v49 = vrot.slane %v4694_v40, 1  ;;  %v1456_v1 = vmax.f32 %v1454_v27, %v1455_v43 }
 0x124   : > { %v1940_v29 = vsel %vm1939_vm10, 0.0, %v1887_v58  ;;  %v1008_v0 = vrot.slane %v4699_v48, 1  ;;  %v4716_v3 = vpop.f32.mrb[23].mxu0  ;;  %v1476_v43 = vrot.slane %v4701_v54, 2 }
 0x125   : > { %v1948_v4 = vrot.slane %v1940_v29, 1  ;;  %v1949_v60 = vrot.slane %v1940_v29, 2  ;;  %v1950_v5 = vrot.slane %v1940_v29, 3  ;;  %v1951_v6 = vrot.slane %v1940_v29, 4 }
 0x126   : > { %v1952_v7 = vrot.slane %v1940_v29, 5  ;;  %v1953_v52 = vrot.slane %v1940_v29, 6  ;;  %v1954_v8 = vrot.slane %v1940_v29, 7  ;;  %v2068_v9 = vmax.f32 %v4609_v42, %v1940_v29 }
 0x127   : > { %v2069_v11 = vmax.f32 %v4666_v51, %v1948_v4  ;;  %v2070_v12 = vmax.f32 %v4603_v35, %v1949_v60  ;;  %v2071_v57 = vmax.f32 %v4663_v50, %v1950_v5  ;;  %v2072_v13 = vmax.f32 %v4672_v38, %v1951_v6 }
 0x128   : > { %v2073_v14 = vmax.f32 %v988_v45, %v1952_v7  ;;  %v2074_v15 = vmax.f32 %v4668_v55, %v1953_v52  ;;  %v2075_v16 = vmax.f32 %v4680_v46, %v1954_v8  ;;  %v2140_v17 = vpack.c.bf16 %v2068_v9, %v2068_v9  ;;  %v4294_v55 = vld [vmem:[%s5587_s2 + $0x78] sm:$0xff]  }
 0x129   : > { %v2141_v18 = vpack.c.bf16 %v2069_v11, %v2069_v11  ;;  %v2142_v19 = vpack.c.bf16 %v2070_v12, %v2070_v12  ;;  %v2143_v20 = vpack.c.bf16 %v2071_v57, %v2071_v57  ;;  %v2144_v21 = vpack.c.bf16 %v2072_v13, %v2072_v13  ;;  %v4725_v23 = vpop.f32.mrb[24].mxu0  ;;  %3970 = vmatprep.subr.bf16.mxu1 %v4294_v55 }
 0x12a   : > { %v2145_v42 = vpack.c.bf16 %v2073_v14, %v2073_v14  ;;  %v2146_v51 = vpack.c.bf16 %v2074_v15, %v2074_v15  ;;  %v2147_v24 = vpack.c.bf16 %v2075_v16, %v2075_v16  ;;  %v4727_v35 = vmax.f32 %v1026_v33, %v1027_v53  ;;  %v4729_v50 = vpop.f32.mrb[25].mxu0 }
 0x12b   : > { %v2269_v38 = vunpack.c.l.b16 %v2141_v18  ;;  %v2270_v46 = vunpack.c.l.b16 %v2142_v19  ;;  %v2271_v25 = vunpack.c.l.b16 %v2143_v20  ;;  %v2272_v26 = vunpack.c.l.b16 %v2144_v21  ;;  %v4734_v27 = vpop.f32.mrb[26].mxu0 }
 0x12c   : > { %v2273_v30 = vunpack.c.l.b16 %v2145_v42  ;;  %v2274_v31 = vunpack.c.l.b16 %v2146_v51  ;;  %v2275_v32 = vunpack.c.l.b16 %v2147_v24  ;;  %v4737_v45 = vpop.f32.mrb[27].mxu0  ;;  %v2268_v33 = vunpack.c.l.b16 %v2140_v17 }
 0x12d   : > { %v2332_v47 = vrot.slane %v2269_v38, 7  ;;  %v2334_v58 = vrot.slane %v2270_v46, 6  ;;  %v4739_v53 = vmax.f32 %v1021_v39, %v1022_v59  ;;  %v2336_v29 = vrot.slane %v2271_v25, 5 }
 0x12e   : > { %v2338_v4 = vrot.slane %v2272_v26, 4  ;;  %v2340_v60 = vrot.slane %v2273_v30, 3  ;;  %v2342_v5 = vrot.slane %v2274_v31, 2  ;;  %v2344_v7 = vrot.slane %v2275_v32, 1 }
 0x12f   : > { %v2333_v6 = vsel %vm1888_vm11, %v2332_v47, %v2268_v33  ;;  %v4743_v52 = vmax.f32 %v4694_v40, %v1471_v49  ;;  %v1457_v8 = vrot.slane %v1456_v1, 1  ;;  %v1477_v11 = vmax.f32 %v4701_v54, %v1476_v43 }
 0x130   : > { %v2335_v9 = vsel %vm1876_vm4, %v2334_v58, %v2333_v6  ;;  %v1011_v12 = vrot.slane %v4709_v61, 4  ;;  %v1459_v39 = vsel %vm1395_vm3, %v891_v36, -inf  ;;  %v4753_v57 = vmax.f32 %v4699_v48, %v1008_v0 }
 0x131   : > { %v2337_v59 = vsel %vm1878_vm5, %v2336_v29, %v2335_v9  ;;  %v1458_v13 = vmax.f32 %v1456_v1, %v1457_v8  ;;  %v1460_v14 = vrot.slane %v1459_v39, 4  ;;  %v4755_v40 = vpop.f32.mrb[28].mxu0  ;;  %v1029_v15 = vrot.slane %v4727_v35, 1 }
 0x132   : > { %v2339_v49 = vsel %vm1880_vm6, %v2338_v4, %v2337_v59  ;;  %v1012_v54 = vmax.f32 %v4709_v61, %v1011_v12  ;;  %v896_v16 = vmax.f32 %v4644_v22, 0.0  ;;  %v4761_v62 = vpop.f32.mrb[29].mxu0  ;;  %v894_v1 = vmax.f32 %v4650_v28, 0.0 }
 0x133   : > { %v2341_v36 = vsel %vm1882_vm7, %v2340_v60, %v2339_v49  ;;  %v1889_v48 = vsel %vm1888_vm11, %v1458_v13, %v4692_v37  ;;  %v1461_v0 = vmax.f32 %v1459_v39, %v1460_v14  ;;  %v4767_v17 = vpop.f32.mrb[30].mxu0  ;;  %v1478_v19 = vrot.slane %v1477_v11, 1 }
 0x134   : > { %v2343_v18 = vsel %vm1884_vm8, %v2342_v5, %v2341_v36  ;;  %v1013_v20 = vrot.slane %v1012_v54, 2  ;;  %v1045_v61 = vsel %vm946_vm2, %v896_v16, -inf  ;;  %v4771_v21 = vpop.f32.mrb[31].mxu0  ;;  %v1494_v24 = vsel %vm1395_vm3, %v896_v16, -inf }
 0x135   : > { %v2345_v22 = vsel %vm1886_vm9, %v2344_v7, %v2343_v18  ;;  %v1462_v42 = vrot.slane %v1461_v0, 2  ;;  %v1046_v51 = vrot.slane %v1045_v61, 4  ;;  %v1495_v38 = vrot.slane %v1494_v24, 4  ;;  %v4295_v18 = vld [vmem:[%s5587_s2 + $0x38] sm:$0xff]  }
 0x136   : > { %v2444_v37 = vpack.c.b16 %v2345_v22, %v2345_v22  ;;  %v1014_v55 = vmax.f32 %v1012_v54, %v1013_v20  ;;  %v1031_v28 = vsel %vm946_vm2, %v894_v1, -inf  ;;  %v1480_v30 = vsel %vm1395_vm3, %v894_v1, -inf  ;;  %3971 = vmatpush3.bf16.msra.mxu1 %v4295_v18 }
 0x137   : > { %v1463_v46 = vmax.f32 %v1461_v0, %v1462_v42  ;;  %v1047_v25 = vmax.f32 %v1045_v61, %v1046_v51  ;;  %v1032_v26 = vrot.slane %v1031_v28, 4  ;;  %v1479_v31 = vmax.f32 %v1477_v11, %v1478_v19 }
 0x138   : > { %2460 = vst [vmem:[#allocation2] sm:$0xf0] %v2444_v37  ;;  %v1496_v32 = vmax.f32 %v1494_v24, %v1495_v38  ;;  %v1481_v43 = vrot.slane %v1480_v30, 4  ;;  %v897_v33 = vmax.f32 %v4652_v34, 0.0  ;;  %v895_v4 = vmax.f32 %v4655_v41, 0.0 }
 0x139   : > { %v1464_v47 = vrot.slane %v1463_v46, 1  ;;  %v1048_v58 = vrot.slane %v1047_v25, 2  ;;  %v1033_v29 = vmax.f32 %v1031_v28, %v1032_v26  ;;  %v4158_v60 = vpop.f32.mrb[32].mxu0  ;;  %v1015_v5 = vrot.slane %v1014_v55, 1 }
 0x13a   : > { %v1497_v6 = vrot.slane %v1496_v32, 2  ;;  %v1482_v7 = vmax.f32 %v1480_v30, %v1481_v43  ;;  %v1052_v8 = vsel %vm946_vm2, %v897_v33, -inf  ;;  %v4780_v9 = vpop.f32.mrb[33].mxu0  ;;  %v1038_v49 = vsel %vm946_vm2, %v895_v4, -inf }
 0x13b   : > { %v1465_v12 = vmax.f32 %v1463_v46, %v1464_v47  ;;  %v1049_v39 = vmax.f32 %v1047_v25, %v1048_v58  ;;  %v1034_v11 = vrot.slane %v1033_v29, 2  ;;  %v1053_v59 = vrot.slane %v1052_v8, 4  ;;  %v4159_v13 = vpop.f32.mrb[34].mxu0 }
 0x13c   : > { %v1498_v14 = vmax.f32 %v1496_v32, %v1497_v6  ;;  %v1483_v34 = vrot.slane %v1482_v7, 2  ;;  %v1487_v54 = vsel %vm1395_vm3, %v895_v4, -inf  ;;  %v4784_v41 = vpop.f32.mrb[35].mxu0  ;;  %v1039_v22 = vrot.slane %v1038_v49, 4 }
 0x13d   : > { %v1890_v16 = vsel %vm1876_vm4, %v1465_v12, %v1889_v48  ;;  %v1050_v36 = vrot.slane %v1049_v39, 1  ;;  %v1035_v0 = vmax.f32 %v1033_v29, %v1034_v11  ;;  %v1054_v1 = vmax.f32 %v1052_v8, %v1053_v59 }
 0x13e   : > { %v1891_v19 = vsel %vm1878_vm5, %v4743_v52, %v1890_v16  ;;  %v1499_v20 = vrot.slane %v1498_v14, 1  ;;  %v1484_v61 = vmax.f32 %v1482_v7, %v1483_v34  ;;  %v4793_v42 = vmax.f32 %v4727_v35, %v1029_v15 }
 0x13f   : > { %v4795_v51 = vmax.f32 %v1014_v55, %v1015_v5  ;;  %v1892_v48 = vsel %vm1880_vm6, %v1479_v31, %v1891_v19  ;;  %v1055_v24 = vrot.slane %v1054_v1, 2  ;;  %v4798_v37 = vmax.f32 %v1049_v39, %v1050_v36 }
 0x140   : > { %v1485_v38 = vrot.slane %v1484_v61, 1  ;;  %v1040_v28 = vmax.f32 %v1038_v49, %v1039_v22  ;;  %v1488_v46 = vrot.slane %v1487_v54, 4  ;;  %v1036_v25 = vrot.slane %v1035_v0, 1 }
 0x141   : > { %v1056_v26 = vmax.f32 %v1054_v1, %v1055_v24  ;;  %v898_v52 = vmax.f32 %v4676_v2, 0.0  ;;  %v899_v30 = vmax.f32 %v4683_v10, 0.0  ;;  %v4802_v32 = vpop.f32.mrb[36].mxu0  ;;  %v1500_v35 = vmax.f32 %v1498_v14, %v1499_v20 }
 0x142   : > { %v1486_v15 = vmax.f32 %v1484_v61, %v1485_v38  ;;  %v1041_v55 = vrot.slane %v1040_v28, 2  ;;  %v1489_v43 = vmax.f32 %v1487_v54, %v1488_v46  ;;  %v4804_v31 = vpop.f32.mrb[37].mxu0  ;;  %v902_v29 = vmax.f32 %v4696_v44, 0.0 }
 0x143   : > { %v1059_v33 = vsel %vm946_vm2, %v898_v52, -inf  ;;  %v1501_v47 = vsel %vm1395_vm3, %v898_v52, -inf  ;;  %v1066_v58 = vsel %vm946_vm2, %v899_v30, -inf  ;;  %v4810_v4 = vpop.f32.mrb[38].mxu0  ;;  %v1057_v7 = vrot.slane %v1056_v26, 1 }
 0x144   : > { %v1893_v2 = vsel %vm1882_vm7, %v1486_v15, %v1892_v48  ;;  %v1042_v10 = vmax.f32 %v1040_v28, %v1041_v55  ;;  %v1490_v60 = vrot.slane %v1489_v43, 2  ;;  %v1060_v5 = vrot.slane %v1059_v33, 4  ;;  %v4813_v6 = vpop.f32.mrb[39].mxu0 }
 0x145   : > { %v1502_v8 = vrot.slane %v1501_v47, 4  ;;  %v1067_v12 = vrot.slane %v1066_v58, 4  ;;  %v1508_v39 = vsel %vm1395_vm3, %v899_v30, -inf  ;;  %v1087_v49 = vsel %vm946_vm2, %v902_v29, -inf }
 0x146   : > { %v1043_v11 = vrot.slane %v1042_v10, 1  ;;  %v1491_v59 = vmax.f32 %v1489_v43, %v1490_v60  ;;  %v1061_v13 = vmax.f32 %v1059_v33, %v1060_v5  ;;  %v1509_v14 = vrot.slane %v1508_v39, 4 }
 0x147   : > { %v1503_v34 = vmax.f32 %v1501_v47, %v1502_v8  ;;  %v1068_v44 = vmax.f32 %v1066_v58, %v1067_v12  ;;  %v1529_v54 = vsel %vm1395_vm3, %v902_v29, -inf  ;;  %v1037_v16 = vmax.f32 %v1035_v0, %v1036_v25 }
 0x148   : > { %v1492_v36 = vrot.slane %v1491_v59, 1  ;;  %v1062_v1 = vrot.slane %v1061_v13, 2  ;;  %v1510_v18 = vmax.f32 %v1508_v39, %v1509_v14  ;;  %v1088_v61 = vrot.slane %v1087_v49, 4 }
 0x149   : > { %v1504_v19 = vrot.slane %v1503_v34, 2  ;;  %v1069_v20 = vrot.slane %v1068_v44, 2  ;;  %v1530_v22 = vrot.slane %v1529_v54, 4  ;;  %v4818_v48 = vpop.f32.mrb[40].mxu0  ;;  %v900_v46 = vmax.f32 %v4703_v56, 0.0 }
 0x14a   : > { %v1493_v24 = vmax.f32 %v1491_v59, %v1492_v36  ;;  %v1063_v38 = vmax.f32 %v1061_v13, %v1062_v1  ;;  %v1511_v28 = vrot.slane %v1510_v18, 2  ;;  %v4821_v52 = vpop.f32.mrb[41].mxu0  ;;  %v1058_v30 = vmax.f32 %v1056_v26, %v1057_v7 }
 0x14b   : > { %v1044_v15 = vmax.f32 %v1042_v10, %v1043_v11  ;;  %v4823_v55 = vmax.f32 %v1503_v34, %v1504_v19  ;;  %v4825_v0 = vmax.f32 %v1068_v44, %v1069_v20  ;;  %v4827_v25 = vpop.f32.mrb[42].mxu0  ;;  %v1089_v47 = vmax.f32 %v1087_v49, %v1088_v61 }
 0x14c   : > { %v1894_v43 = vsel %vm1884_vm8, %v1493_v24, %v1893_v2  ;;  %v1064_v33 = vrot.slane %v1063_v38, 1  ;;  %v1531_v58 = vmax.f32 %v1529_v54, %v1530_v22  ;;  %v4830_v29 = vpop.f32.mrb[43].mxu0  ;;  %v1512_v8 = vmax.f32 %v1510_v18, %v1511_v28 }
 0x14d   : > { %v1895_v60 = vsel %vm1886_vm9, %v1500_v35, %v1894_v43  ;;  %v1506_v5 = vrot.slane %v4823_v55, 1  ;;  %v1073_v26 = vsel %vm946_vm2, %v900_v46, -inf }
 0x14e   : > { %v1955_v10 = vrot.slane %v1895_v60, 1  ;;  %v1956_v7 = vrot.slane %v1895_v60, 2  ;;  %v1957_v12 = vrot.slane %v1895_v60, 3  ;;  %v1958_v39 = vrot.slane %v1895_v60, 4 }
 0x14f   : > { %v1959_v11 = vrot.slane %v1895_v60, 5  ;;  %v1960_v2 = vrot.slane %v1895_v60, 6  ;;  %v1961_v59 = vrot.slane %v1895_v60, 7  ;;  %v2076_v13 = vmax.f32 %v4753_v57, %v1895_v60 }
 0x150   : > { %v2077_v14 = vmax.f32 %v4795_v51, %v1955_v10  ;;  %v2078_v35 = vmax.f32 %v4739_v53, %v1956_v7  ;;  %v2079_v34 = vmax.f32 %v4793_v42, %v1957_v12  ;;  %v2080_v44 = vmax.f32 %v1037_v16, %v1958_v39 }
 0x151   : > { %v2081_v49 = vmax.f32 %v1044_v15, %v1959_v11  ;;  %v2082_v54 = vmax.f32 %v4798_v37, %v1960_v2  ;;  %v2083_v36 = vmax.f32 %v1058_v30, %v1961_v59  ;;  %v2148_v1 = vpack.c.bf16 %v2076_v13, %v2076_v13 }
 0x152   : > { %v2149_v18 = vpack.c.bf16 %v2077_v14, %v2077_v14  ;;  %v2150_v19 = vpack.c.bf16 %v2078_v35, %v2078_v35  ;;  %v2151_v20 = vpack.c.bf16 %v2079_v34, %v2079_v34  ;;  %v2152_v61 = vpack.c.bf16 %v2080_v44, %v2080_v44 }
 0x153   : > { %v2153_v22 = vpack.c.bf16 %v2081_v49, %v2081_v49  ;;  %v2154_v24 = vpack.c.bf16 %v2082_v54, %v2082_v54  ;;  %v2155_v28 = vpack.c.bf16 %v2083_v36, %v2083_v36  ;;  %v1090_v57 = vrot.slane %v1089_v47, 2 }
 0x154   : > { %v2277_v43 = vunpack.c.l.b16 %v2149_v18  ;;  %v2278_v51 = vunpack.c.l.b16 %v2150_v19  ;;  %v2279_v60 = vunpack.c.l.b16 %v2151_v20  ;;  %v2280_v53 = vunpack.c.l.b16 %v2152_v61 }
 0x155   : > { %v2281_v10 = vunpack.c.l.b16 %v2153_v22  ;;  %v2282_v42 = vunpack.c.l.b16 %v2154_v24  ;;  %v2283_v16 = vunpack.c.l.b16 %v2155_v28  ;;  %v1071_v15 = vrot.slane %v4825_v0, 1 }
 0x156   : > { %v2276_v37 = vunpack.c.l.b16 %v2148_v1  ;;  %v2346_v30 = vrot.slane %v2277_v43, 7  ;;  %v2348_v7 = vrot.slane %v2278_v51, 6  ;;  %v4843_v12 = vmax.f32 %v1063_v38, %v1064_v33  ;;  %v4850_v1 = vpop.f32.mrb[44].mxu0 }
 0x157   : > { %v2350_v39 = vrot.slane %v2279_v60, 5  ;;  %v2352_v11 = vrot.slane %v2280_v53, 4  ;;  %v2354_v2 = vrot.slane %v2281_v10, 3  ;;  %v2356_v59 = vrot.slane %v2282_v42, 2  ;;  %v4854_v20 = vpop.f32.mrb[45].mxu0 }
 0x158   : > { %v2347_v13 = vsel %vm1888_vm11, %v2346_v30, %v2276_v37  ;;  %v2358_v14 = vrot.slane %v2283_v16, 1  ;;  %v1513_v35 = vrot.slane %v1512_v8, 1  ;;  %v1091_v34 = vmax.f32 %v1089_v47, %v1090_v57  ;;  %v4858_v28 = vpop.f32.mrb[46].mxu0 }
 0x159   : > { %v2349_v44 = vsel %vm1876_vm4, %v2348_v7, %v2347_v13  ;;  %v1532_v49 = vrot.slane %v1531_v58, 2  ;;  %v1074_v54 = vrot.slane %v1073_v26, 4  ;;  %v1515_v36 = vsel %vm1395_vm3, %v900_v46, -inf  ;;  %v4862_v51 = vpop.f32.mrb[47].mxu0 }
 0x15a   : > { %v2351_v38 = vsel %vm1878_vm5, %v2350_v39, %v2349_v44  ;;  %v1507_v33 = vmax.f32 %v4823_v55, %v1506_v5  ;;  %v1514_v18 = vmax.f32 %v1512_v8, %v1513_v35  ;;  %v1516_v19 = vrot.slane %v1515_v36, 4  ;;  %v4878_v35 = vpop.f32.mrb[48].mxu0 }
 0x15b   : > { %v2353_v47 = vsel %vm1880_vm6, %v2352_v11, %v2351_v38  ;;  %v1533_v61 = vmax.f32 %v1531_v58, %v1532_v49  ;;  %v1075_v22 = vmax.f32 %v1073_v26, %v1074_v54  ;;  %v903_v24 = vmax.f32 %v4711_v63, 0.0  ;;  %v4882_v54 = vpop.f32.mrb[49].mxu0 }
 0x15c   : > { %v2355_v56 = vsel %vm1882_vm7, %v2354_v2, %v2353_v47  ;;  %v1896_v46 = vsel %vm1876_vm4, %v1514_v18, %v1507_v33  ;;  %v1092_v57 = vrot.slane %v1091_v34, 1  ;;  %v1517_v43 = vmax.f32 %v1515_v36, %v1516_v19 }
 0x15d   : > { %v2357_v55 = vsel %vm1884_vm8, %v2356_v59, %v2355_v56  ;;  %v1534_v5 = vrot.slane %v1533_v61, 1  ;;  %v1076_v8 = vrot.slane %v1075_v22, 2  ;;  %v1094_v60 = vsel %vm946_vm2, %v903_v24, -inf }
 0x15e   : > { %v2359_v58 = vsel %vm1886_vm9, %v2358_v14, %v2357_v55  ;;  %v1518_v26 = vrot.slane %v1517_v43, 2  ;;  %v1095_v63 = vrot.slane %v1094_v60, 4  ;;  %v1536_v53 = vsel %vm1395_vm3, %v903_v24, -inf }
 0x15f   : > { %v2445_v10 = vpack.c.b16 %v2359_v58, %v2359_v58  ;;  %v4869_v42 = vmax.f32 %v4825_v0, %v1071_v15  ;;  %v1077_v16 = vmax.f32 %v1075_v22, %v1076_v8  ;;  %v1537_v37 = vrot.slane %v1536_v53, 4  ;;  %v4891_v58 = vpop.f32.mrb[50].mxu0 }
 0x160   : > { %v1519_v30 = vmax.f32 %v1517_v43, %v1518_v26  ;;  %v1096_v7 = vmax.f32 %v1094_v60, %v1095_v63  ;;  %v901_v39 = vmax.f32 %v4716_v3, 0.0  ;;  %v906_v11 = vmax.f32 %v4725_v23, 0.0 }
 0x161   : > { %2461 = vst [vmem:[#allocation2 + $0x8] sm:$0xf] %v2445_v10  ;;  %v4873_v2 = vmax.f32 %v1091_v34, %v1092_v57  ;;  %v4875_v59 = vmax.f32 %v1533_v61, %v1534_v5  ;;  %v1538_v13 = vmax.f32 %v1536_v53, %v1537_v37  ;;  %v904_v14 = vmax.f32 %v4729_v50, 0.0  ;;  %v4894_v37 = vpop.f32.mrb[51].mxu0 }
 0x162   : > { %v1520_v0 = vrot.slane %v1519_v30, 1  ;;  %v1097_v15 = vrot.slane %v1096_v7, 2  ;;  %v1080_v44 = vsel %vm946_vm2, %v901_v39, -inf  ;;  %v1522_v49 = vsel %vm1395_vm3, %v901_v39, -inf  ;;  %5591 = vst [vmem:[#allocation6_spill] sm:$0xff] %v4894_v37 }
 0x163   : > { %v1078_v3 = vrot.slane %v1077_v16, 1  ;;  %v1539_v23 = vrot.slane %v1538_v13, 2  ;;  %v1081_v36 = vrot.slane %v1080_v44, 4  ;;  %v1523_v34 = vrot.slane %v1522_v49, 4 }
 0x164   : > { %v1521_v38 = vmax.f32 %v1519_v30, %v1520_v0  ;;  %v1098_v33 = vmax.f32 %v1096_v7, %v1097_v15  ;;  %v1115_v18 = vsel %vm946_vm2, %v906_v11, -inf  ;;  %v1557_v50 = vsel %vm1395_vm3, %v906_v11, -inf }
 0x165   : > { %v1540_v19 = vmax.f32 %v1538_v13, %v1539_v23  ;;  %v1082_v47 = vmax.f32 %v1080_v44, %v1081_v36  ;;  %v1524_v61 = vmax.f32 %v1522_v49, %v1523_v34  ;;  %v1116_v22 = vrot.slane %v1115_v18, 4 }
 0x166   : > { %v1897_v24 = vsel %vm1878_vm5, %v1521_v38, %v1896_v46  ;;  %v1558_v56 = vrot.slane %v1557_v50, 4  ;;  %v1101_v57 = vsel %vm946_vm2, %v904_v14, -inf  ;;  %v907_v43 = vmax.f32 %v4734_v27, 0.0 }
 0x167   : > { %v4889_v55 = vmax.f32 %v1077_v16, %v1078_v3  ;;  %v1083_v5 = vrot.slane %v1082_v47, 2  ;;  %v1525_v8 = vrot.slane %v1524_v61, 2  ;;  %v1117_v60 = vmax.f32 %v1115_v18, %v1116_v22 }
 0x168   : > { %v1099_v26 = vrot.slane %v1098_v33, 1  ;;  %v1559_v63 = vmax.f32 %v1557_v50, %v1558_v56  ;;  %v1102_v53 = vrot.slane %v1101_v57, 4  ;;  %v1543_v10 = vsel %vm1395_vm3, %v904_v14, -inf }
 0x169   : > { %v1541_v46 = vrot.slane %v1540_v19, 1  ;;  %v1084_v30 = vmax.f32 %v1082_v47, %v1083_v5  ;;  %v1526_v7 = vmax.f32 %v1524_v61, %v1525_v8  ;;  %v1118_v39 = vrot.slane %v1117_v60, 2 }
 0x16a   : > { %v1560_v11 = vrot.slane %v1559_v63, 2  ;;  %v1103_v27 = vmax.f32 %v1101_v57, %v1102_v53  ;;  %v1544_v16 = vrot.slane %v1543_v10, 4  ;;  %v1122_v13 = vsel %vm946_vm2, %v907_v43, -inf }
 0x16b   : > { %v1085_v0 = vrot.slane %v1084_v30, 1  ;;  %v1527_v15 = vrot.slane %v1526_v7, 1  ;;  %v4897_v44 = vmax.f32 %v1117_v60, %v1118_v39  ;;  %v1123_v49 = vrot.slane %v1122_v13, 4 }
 0x16c   : > { %v1561_v3 = vmax.f32 %v1559_v63, %v1560_v11  ;;  %v1104_v23 = vrot.slane %v1103_v27, 2  ;;  %v1545_v36 = vmax.f32 %v1543_v10, %v1544_v16  ;;  %v1564_v14 = vsel %vm1395_vm3, %v907_v43, -inf }
 0x16d   : > { %v1100_v34 = vmax.f32 %v1098_v33, %v1099_v26  ;;  %v1542_v38 = vmax.f32 %v1540_v19, %v1541_v46  ;;  %v1528_v18 = vmax.f32 %v1526_v7, %v1527_v15  ;;  %v1124_v50 = vmax.f32 %v1122_v13, %v1123_v49  ;;  %v4905_v19 = vpop.f32.mrb[52].mxu0 }
 0x16e   : > { %v1562_v47 = vrot.slane %v1561_v3, 1  ;;  %v1105_v61 = vmax.f32 %v1103_v27, %v1104_v23  ;;  %v1546_v22 = vrot.slane %v1545_v36, 2  ;;  %v1565_v56 = vrot.slane %v1564_v14, 4  ;;  %5592 = vst [vmem:[#allocation7_spill] sm:$0xff] %v4905_v19 }
 0x16f   : > { %v1086_v57 = vmax.f32 %v1084_v30, %v1085_v0  ;;  %v1898_v5 = vsel %vm1880_vm6, %v1528_v18, %v1897_v24  ;;  %v1125_v8 = vrot.slane %v1124_v50, 2  ;;  %v905_v60 = vmax.f32 %v4737_v45, 0.0  ;;  %v807_v24 = vpop.f32.mrb[53].mxu0 }
 0x170   : > { %v1899_v63 = vsel %vm1882_vm7, %v4875_v59, %v1898_v5  ;;  %v1106_v43 = vrot.slane %v1105_v61, 1  ;;  %v1547_v33 = vmax.f32 %v1545_v36, %v1546_v22  ;;  %v1566_v46 = vmax.f32 %v1564_v14, %v1565_v56  ;;  %v4914_v11 = vpop.f32.mrb[54].mxu0 }
 0x171   : > { %v1900_v26 = vsel %vm1884_vm8, %v1542_v38, %v1899_v63  ;;  %v4908_v10 = vmax.f32 %v1124_v50, %v1125_v8  ;;  %v1108_v30 = vsel %vm946_vm2, %v905_v60, -inf  ;;  %v4911_v7 = vmax.f32 %v1561_v3, %v1562_v47  ;;  %5593 = vst [vmem:[#allocation8_spill] sm:$0xff] %v4914_v11  ;;  %v809_v15 = vpop.f32.mrb[55].mxu0 }
 0x172   : > { %v1548_v45 = vrot.slane %v1547_v33, 1  ;;  %v1109_v39 = vrot.slane %v1108_v30, 4  ;;  %v1550_v59 = vsel %vm1395_vm3, %v905_v60, -inf  ;;  %v1107_v27 = vmax.f32 %v1105_v61, %v1106_v43 }
 0x173   : > { %v1567_v16 = vrot.slane %v1566_v46, 2  ;;  %v1551_v13 = vrot.slane %v1550_v59, 4  ;;  %v910_v0 = vmax.f32 %v4755_v40, 0.0 }
 0x174   : > { %v1549_v49 = vmax.f32 %v1547_v33, %v1548_v45  ;;  %v1110_v36 = vmax.f32 %v1108_v30, %v1109_v39 }
 0x175   : > { %v1568_v3 = vmax.f32 %v1566_v46, %v1567_v16  ;;  %v1552_v38 = vmax.f32 %v1550_v59, %v1551_v13  ;;  %v1143_v18 = vsel %vm946_vm2, %v910_v0, -inf  ;;  %v1585_v56 = vsel %vm1395_vm3, %v910_v0, -inf }
 0x176   : > { %v1901_v47 = vsel %vm1886_vm9, %v1549_v49, %v1900_v26  ;;  %v1111_v61 = vrot.slane %v1110_v36, 2  ;;  %v1144_v22 = vrot.slane %v1143_v18, 4  ;;  %v1586_v60 = vrot.slane %v1585_v56, 4 }
 0x177   : > { %v1941_v40 = vsel %vm1939_vm10, 0.0, %v1901_v47  ;;  %v1569_v5 = vrot.slane %v1568_v3, 1  ;;  %v1553_v8 = vrot.slane %v1552_v38, 2 }
 0x178   : > { %v1962_v63 = vrot.slane %v1941_v40, 1  ;;  %v1963_v43 = vrot.slane %v1941_v40, 2  ;;  %v1964_v33 = vrot.slane %v1941_v40, 3  ;;  %v1965_v46 = vrot.slane %v1941_v40, 4 }
 0x179   : > { %v1966_v30 = vrot.slane %v1941_v40, 5  ;;  %v1967_v24 = vrot.slane %v1941_v40, 6  ;;  %v2084_v45 = vmax.f32 %v4843_v12, %v1941_v40  ;;  %v1570_v39 = vmax.f32 %v1568_v3, %v1569_v5 }
 0x17a   : > { %v2085_v26 = vmax.f32 %v4869_v42, %v1962_v63  ;;  %v2086_v59 = vmax.f32 %v4889_v55, %v1963_v43  ;;  %v2087_v16 = vmax.f32 %v1086_v57, %v1964_v33  ;;  %v2088_v13 = vmax.f32 %v4873_v2, %v1965_v46 }
 0x17b   : > { %v2089_v0 = vmax.f32 %v1100_v34, %v1966_v30  ;;  %v2090_v15 = vmax.f32 %v1107_v27, %v1967_v24  ;;  %v2156_v49 = vpack.c.bf16 %v2084_v45, %v2084_v45  ;;  %v1112_v47 = vmax.f32 %v1110_v36, %v1111_v61 }
 0x17c   : > { %v2157_v23 = vpack.c.bf16 %v2085_v26, %v2085_v26  ;;  %v2158_v50 = vpack.c.bf16 %v2086_v59, %v2086_v59  ;;  %v2159_v53 = vpack.c.bf16 %v2087_v16, %v2087_v16  ;;  %v2160_v14 = vpack.c.bf16 %v2088_v13, %v2088_v13 }
 0x17d   : > { %v2161_v11 = vpack.c.bf16 %v2089_v0, %v2089_v0  ;;  %v2162_v19 = vpack.c.bf16 %v2090_v15, %v2090_v15  ;;  %v2284_v37 = vunpack.c.l.b16 %v2156_v49  ;;  %v1113_v12 = vrot.slane %v1112_v47, 1 }
 0x17e   : > { %v2285_v3 = vunpack.c.l.b16 %v2157_v23  ;;  %v2286_v5 = vunpack.c.l.b16 %v2158_v50  ;;  %v2287_v42 = vunpack.c.l.b16 %v2159_v53  ;;  %v2288_v63 = vunpack.c.l.b16 %v2160_v14 }
 0x17f   : > { %v2289_v55 = vunpack.c.l.b16 %v2161_v11  ;;  %v2290_v57 = vunpack.c.l.b16 %v2162_v19  ;;  %v1114_v43 = vmax.f32 %v1112_v47, %v1113_v12  ;;  %v1554_v2 = vmax.f32 %v1552_v38, %v1553_v8  ;;  %v4932_v11 = vpop.f32.mrb[56].mxu0 }
 0x180   : > { %v2360_v34 = vrot.slane %v2285_v3, 7  ;;  %v2362_v27 = vrot.slane %v2286_v5, 6  ;;  %v2364_v33 = vrot.slane %v2287_v42, 5  ;;  %v2366_v36 = vrot.slane %v2288_v63, 4 }
 0x181   : > { %v2368_v61 = vrot.slane %v2289_v55, 3  ;;  %v2370_v46 = vrot.slane %v2290_v57, 2  ;;  %v1555_v30 = vrot.slane %v1554_v2, 1  ;;  %v1968_v24 = vrot.slane %v1941_v40, 7 }
 0x182   : > { %v2361_v45 = vsel %vm1888_vm11, %v2360_v34, %v2284_v37  ;;  %v1145_v26 = vmax.f32 %v1143_v18, %v1144_v22  ;;  %v1587_v59 = vmax.f32 %v1585_v56, %v1586_v60  ;;  %v5594_v23 = vmax.f32 %v4761_v62, 0.0 }
 0x183   : > { %v2363_v19 = vsel %vm1876_vm4, %v2362_v27, %v2361_v45  ;;  %v1556_v14 = vmax.f32 %v1554_v2, %v1555_v30  ;;  %v2091_v38 = vmax.f32 %v1114_v43, %v1968_v24  ;;  %v5596_v42 = vrot.slane %v4897_v44, 1  ;;  %v4961_v30 = vpop.f32.mrb[57].mxu0 }
 0x184   : > { %v1129_v53 = vsel %vm946_vm2, %v5594_v23, -inf  ;;  %v2365_v8 = vsel %vm1878_vm5, %v2364_v33, %v2363_v19  ;;  %v1146_v16 = vrot.slane %v1145_v26, 2  ;;  %v1588_v13 = vrot.slane %v1587_v59, 2 }
 0x185   : > { %v1130_v50 = vrot.slane %v1129_v53, 4  ;;  %v5595_v40 = vmov %v5594_v23  ;;  %v2367_v18 = vsel %vm1880_vm6, %v2366_v36, %v2365_v8  ;;  %v1902_v22 = vsel %vm1888_vm11, %v4911_v7, %v1556_v14  ;;  %v4965_v23 = vpop.f32.mrb[58].mxu0 }
 0x186   : > { %v1571_v37 = vsel %vm1395_vm3, %v5595_v40, -inf  ;;  %v2163_v56 = vpack.c.bf16 %v2091_v38, %v2091_v38  ;;  %v2369_v0 = vsel %vm1882_vm7, %v2368_v61, %v2367_v18  ;;  %v1147_v15 = vmax.f32 %v1145_v26, %v1146_v16 }
 0x187   : > { %v1131_v60 = vmax.f32 %v1129_v53, %v1130_v50  ;;  %v1589_v49 = vmax.f32 %v1587_v59, %v1588_v13  ;;  %v1572_v47 = vrot.slane %v1571_v37, 4  ;;  %v2371_v12 = vsel %vm1884_vm8, %v2370_v46, %v2369_v0 }
 0x188   : > { %v2291_v3 = vunpack.c.l.b16 %v2163_v56  ;;  %v1903_v62 = vsel %vm1876_vm4, %v1570_v39, %v1902_v22  ;;  %v4948_v63 = vmax.f32 %v4897_v44, %v5596_v42  ;;  %v5597_v7 = vmax.f32 %v4767_v17, 0.0 }
 0x189   : > { %v1132_v5 = vrot.slane %v1131_v60, 2  ;;  %v1573_v55 = vmax.f32 %v1571_v37, %v1572_v47  ;;  %v1148_v2 = vrot.slane %v1147_v15, 1  ;;  %v5599_v36 = vrot.slane %v4908_v10, 1 }
 0x18a   : > { %v1150_v57 = vsel %vm946_vm2, %v5597_v7, -inf  ;;  %v2372_v43 = vrot.slane %v2291_v3, 1  ;;  %v5598_v27 = vmov %v5597_v7  ;;  %v1590_v61 = vrot.slane %v1589_v49, 1 }
 0x18b   : > { %v1151_v34 = vrot.slane %v1150_v57, 4  ;;  %v1592_v33 = vsel %vm1395_vm3, %v5598_v27, -inf  ;;  %v4959_v39 = vmax.f32 %v4908_v10, %v5599_v36  ;;  %v1574_v44 = vrot.slane %v1573_v55, 2  ;;  %v4968_v10 = vpop.f32.mrb[59].mxu0 }
 0x18c   : > { %v1593_v46 = vrot.slane %v1592_v33, 4  ;;  %v2373_v24 = vsel %vm1886_vm9, %v2372_v43, %v2371_v12  ;;  %v1133_v45 = vmax.f32 %v1131_v60, %v1132_v5  ;;  %v909_v59 = vmax.f32 %v4771_v21, 0.0 }
 0x18d   : > { %v1152_v26 = vmax.f32 %v1150_v57, %v1151_v34  ;;  %v2446_v17 = vpack.c.b16 %v2373_v24, %v2373_v24  ;;  %v1575_v53 = vmax.f32 %v1573_v55, %v1574_v44  ;;  %v912_v14 = vmax.f32 %v4780_v9, 0.0 }
 0x18e   : > { %v1594_v19 = vmax.f32 %v1592_v33, %v1593_v46  ;;  %v4970_v38 = vmax.f32 %v1147_v15, %v1148_v2  ;;  %v1136_v8 = vsel %vm946_vm2, %v909_v59, -inf  ;;  %v1578_v16 = vsel %vm1395_vm3, %v909_v59, -inf }
 0x18f   : > { %v1153_v50 = vrot.slane %v1152_v26, 2  ;;  %2462 = vst [vmem:[#allocation2 + $0x10] sm:$0xf0] %v2446_v17  ;;  %v1576_v13 = vrot.slane %v1575_v53, 1  ;;  %v1137_v21 = vrot.slane %v1136_v8, 4  ;;  %v1579_v37 = vrot.slane %v1578_v16, 4 }
 0x190   : > { %v1595_v40 = vrot.slane %v1594_v19, 2  ;;  %v1157_v22 = vsel %vm946_vm2, %v912_v14, -inf  ;;  %v1599_v56 = vsel %vm1395_vm3, %v912_v14, -inf  ;;  %v913_v9 = vmax.f32 %v4784_v41, 0.0 }
 0x191   : > { %v1154_v18 = vmax.f32 %v1152_v26, %v1153_v50  ;;  %v1577_v60 = vmax.f32 %v1575_v53, %v1576_v13  ;;  %v1138_v15 = vmax.f32 %v1136_v8, %v1137_v21  ;;  %v1580_v47 = vmax.f32 %v1578_v16, %v1579_v37 }
 0x192   : > { %v1596_v0 = vmax.f32 %v1594_v19, %v1595_v40  ;;  %v1591_v12 = vmax.f32 %v1589_v49, %v1590_v61  ;;  %v1158_v3 = vrot.slane %v1157_v22, 4  ;;  %v1600_v5 = vrot.slane %v1599_v56, 4 }
 0x193   : > { %v1164_v42 = vsel %vm946_vm2, %v913_v9, -inf  ;;  %v1134_v55 = vrot.slane %v1133_v45, 1  ;;  %v1904_v7 = vsel %vm1878_vm5, %v1577_v60, %v1903_v62  ;;  %v1139_v57 = vrot.slane %v1138_v15, 2 }
 0x194   : > { %v1581_v43 = vrot.slane %v1580_v47, 2  ;;  %v1155_v2 = vrot.slane %v1154_v18, 1  ;;  %v1159_v34 = vmax.f32 %v1157_v22, %v1158_v3  ;;  %v1601_v27 = vmax.f32 %v1599_v56, %v1600_v5 }
 0x195   : > { %v1165_v33 = vrot.slane %v1164_v42, 4  ;;  %v1597_v36 = vrot.slane %v1596_v0, 1  ;;  %v1140_v41 = vmax.f32 %v1138_v15, %v1139_v57  ;;  %v916_v46 = vmax.f32 %v4802_v32, 0.0 }
 0x196   : > { %v1582_v44 = vmax.f32 %v1580_v47, %v1581_v43  ;;  %v1160_v24 = vrot.slane %v1159_v34, 2  ;;  %v1602_v49 = vrot.slane %v1601_v27, 2  ;;  %v914_v26 = vmax.f32 %v4804_v31, 0.0 }
 0x197   : > { %v1166_v61 = vmax.f32 %v1164_v42, %v1165_v33  ;;  %v1141_v59 = vrot.slane %v1140_v41, 1  ;;  %v1185_v62 = vsel %vm946_vm2, %v916_v46, -inf  ;;  %v1620_v53 = vsel %vm1395_vm3, %v916_v46, -inf }
 0x198   : > { %v1583_v17 = vrot.slane %v1582_v44, 1  ;;  %v1161_v19 = vmax.f32 %v1159_v34, %v1160_v24  ;;  %v1603_v14 = vmax.f32 %v1601_v27, %v1602_v49  ;;  %v1186_v8 = vrot.slane %v1185_v62, 4  ;;  %v4990_v24 = vpop.f32.mrb[60].mxu0 }
 0x199   : > { %v1167_v50 = vrot.slane %v1166_v61, 2  ;;  %v1135_v16 = vmax.f32 %v1133_v45, %v1134_v55  ;;  %v1621_v40 = vrot.slane %v1620_v53, 4  ;;  %v1171_v32 = vsel %vm946_vm2, %v914_v26, -inf }
 0x19a   : > { %v1584_v13 = vmax.f32 %v1582_v44, %v1583_v17  ;;  %v1162_v21 = vrot.slane %v1161_v19, 1  ;;  %v1604_v37 = vrot.slane %v1603_v14, 1  ;;  %v1187_v56 = vmax.f32 %v1185_v62, %v1186_v8 }
 0x19b   : > { %v1168_v22 = vmax.f32 %v1166_v61, %v1167_v50  ;;  %v1156_v31 = vmax.f32 %v1154_v18, %v1155_v2  ;;  %v1598_v9 = vmax.f32 %v1596_v0, %v1597_v36  ;;  %v1622_v15 = vmax.f32 %v1620_v53, %v1621_v40 }
 0x19c   : > { %v1905_v60 = vsel %vm1880_vm6, %v1584_v13, %v1904_v7  ;;  %v1142_v47 = vmax.f32 %v1140_v41, %v1141_v59  ;;  %v1605_v5 = vmax.f32 %v1603_v14, %v1604_v37  ;;  %v1163_v57 = vmax.f32 %v1161_v19, %v1162_v21 }
 0x19d   : > { %v1906_v3 = vsel %vm1882_vm7, %v1591_v12, %v1905_v60  ;;  %v1169_v42 = vrot.slane %v1168_v22, 1  ;;  %v1172_v55 = vrot.slane %v1171_v32, 4  ;;  %v1606_v43 = vsel %vm1395_vm3, %v914_v26, -inf }
 0x19e   : > { %v1907_v45 = vsel %vm1884_vm8, %v1598_v9, %v1906_v3  ;;  %v1188_v33 = vrot.slane %v1187_v56, 2  ;;  %v1623_v18 = vrot.slane %v1622_v15, 2  ;;  %v1607_v37 = vrot.slane %v1606_v43, 4 }
 0x19f   : > { %v1908_v34 = vsel %vm1886_vm9, %v1605_v5, %v1907_v45  ;;  %v1170_v27 = vmax.f32 %v1168_v22, %v1169_v42 }
 0x1a0   : > { %v1969_v0 = vrot.slane %v1908_v34, 1  ;;  %v1970_v2 = vrot.slane %v1908_v34, 2  ;;  %v1971_v7 = vrot.slane %v1908_v34, 3  ;;  %v1972_v36 = vrot.slane %v1908_v34, 4 }
 0x1a1   : > { %v1973_v41 = vrot.slane %v1908_v34, 5  ;;  %v1974_v44 = vrot.slane %v1908_v34, 6  ;;  %v2092_v12 = vmax.f32 %v4948_v63, %v1908_v34  ;;  %v1975_v46 = vrot.slane %v1908_v34, 7 }
 0x1a2   : > { %v2093_v49 = vmax.f32 %v4959_v39, %v1969_v0  ;;  %v2094_v61 = vmax.f32 %v1135_v16, %v1970_v2  ;;  %v2095_v26 = vmax.f32 %v1142_v47, %v1971_v7  ;;  %v2096_v59 = vmax.f32 %v4970_v38, %v1972_v36 }
 0x1a3   : > { %v2097_v17 = vmax.f32 %v1156_v31, %v1973_v41  ;;  %v2098_v62 = vmax.f32 %v1163_v57, %v1974_v44  ;;  %v2164_v53 = vpack.c.bf16 %v2092_v12, %v2092_v12  ;;  %v2099_v19 = vmax.f32 %v1170_v27, %v1975_v46  ;;  %v4995_v31 = vpop.f32.mrb[61].mxu0 }
 0x1a4   : > { %v2165_v14 = vpack.c.bf16 %v2093_v49, %v2093_v49  ;;  %v2166_v50 = vpack.c.bf16 %v2094_v61, %v2094_v61  ;;  %v2167_v8 = vpack.c.bf16 %v2095_v26, %v2095_v26  ;;  %v2168_v13 = vpack.c.bf16 %v2096_v59, %v2096_v59 }
 0x1a5   : > { %v2169_v40 = vpack.c.bf16 %v2097_v17, %v2097_v17  ;;  %v2170_v21 = vpack.c.bf16 %v2098_v62, %v2098_v62  ;;  %v2171_v63 = vpack.c.bf16 %v2099_v19, %v2099_v19  ;;  %v1173_v47 = vmax.f32 %v1171_v32, %v1172_v55  ;;  %v5005_v17 = vpop.f32.mrb[62].mxu0 }
 0x1a6   : > { %v2293_v22 = vunpack.c.l.b16 %v2165_v14  ;;  %v2294_v9 = vunpack.c.l.b16 %v2166_v50  ;;  %v2295_v60 = vunpack.c.l.b16 %v2167_v8  ;;  %v2296_v39 = vunpack.c.l.b16 %v2168_v13  ;;  %v5009_v50 = vpop.f32.mrb[63].mxu0 }
 0x1a7   : > { %v2297_v16 = vunpack.c.l.b16 %v2169_v40  ;;  %v917_v38 = vmax.f32 %v4810_v4, 0.0  ;;  %v2292_v3 = vunpack.c.l.b16 %v2164_v53  ;;  %v2298_v5 = vunpack.c.l.b16 %v2170_v21 }
 0x1a8   : > { %v2374_v42 = vrot.slane %v2293_v22, 7  ;;  %v2376_v57 = vrot.slane %v2294_v9, 6  ;;  %v2378_v45 = vrot.slane %v2295_v60, 5  ;;  %v2299_v34 = vunpack.c.l.b16 %v2171_v63 }
 0x1a9   : > { %v1189_v27 = vmax.f32 %v1187_v56, %v1188_v33  ;;  %v2380_v2 = vrot.slane %v2296_v39, 4  ;;  %v1624_v7 = vmax.f32 %v1622_v15, %v1623_v18  ;;  %v1608_v36 = vmax.f32 %v1606_v43, %v1607_v37  ;;  %v2469_v39 = vld [vmem:[#allocation2 + $0x8] sm:$0x7] }
 0x1aa   : > { %v2375_v0 = vsel %vm1888_vm11, %v2374_v42, %v2292_v3  ;;  %v2382_v44 = vrot.slane %v2297_v16, 3  ;;  %v1192_v32 = vsel %vm946_vm2, %v917_v38, -inf  ;;  %v1627_v4 = vsel %vm1395_vm3, %v917_v38, -inf }
 0x1ab   : > { %v2377_v41 = vsel %vm1876_vm4, %v2376_v57, %v2375_v0  ;;  %v2384_v12 = vrot.slane %v2298_v5, 2  ;;  %v1174_v46 = vrot.slane %v1173_v47, 2  ;;  %v1609_v49 = vrot.slane %v1608_v36, 2 }
 0x1ac   : > { %v2379_v55 = vsel %vm1878_vm5, %v2378_v45, %v2377_v41  ;;  %v1193_v56 = vrot.slane %v1192_v32, 4  ;;  %v1628_v33 = vrot.slane %v1627_v4, 4  ;;  %v915_v26 = vmax.f32 %v4813_v6, 0.0  ;;  %v5020_v45 = vpop.f32.mrb[64].mxu0 }
 0x1ad   : > { %v2381_v61 = vsel %vm1880_vm6, %v2380_v2, %v2379_v55  ;;  %v2386_v43 = vrot.slane %v2299_v34, 1  ;;  %v1190_v18 = vrot.slane %v1189_v27, 1  ;;  %v1625_v59 = vrot.slane %v1624_v7, 1 }
 0x1ae   : > { %v2383_v15 = vsel %vm1882_vm7, %v2382_v44, %v2381_v61  ;;  %v1194_v53 = vmax.f32 %v1192_v32, %v1193_v56  ;;  %v1629_v19 = vmax.f32 %v1627_v4, %v1628_v33  ;;  %v1178_v14 = vsel %vm946_vm2, %v915_v26, -inf }
 0x1af   : > { %v2385_v62 = vsel %vm1884_vm8, %v2384_v12, %v2383_v15  ;;  %v5012_v13 = vmax.f32 %v1173_v47, %v1174_v46  ;;  %v1610_v6 = vmax.f32 %v1608_v36, %v1609_v49  ;;  %v1179_v40 = vrot.slane %v1178_v14, 4  ;;  %v5023_v36 = vpop.f32.mrb[65].mxu0 }
 0x1b0   : > { %v2387_v8 = vsel %vm1886_vm9, %v2386_v43, %v2385_v62  ;;  %v1195_v63 = vrot.slane %v1194_v53, 2  ;;  %v1630_v37 = vrot.slane %v1629_v19, 2  ;;  %v1613_v22 = vsel %vm1395_vm3, %v915_v26, -inf  ;;  %v5026_v4 = vpop.f32.mrb[66].mxu0 }
 0x1b1   : > { %v2447_v21 = vpack.c.b16 %v2387_v8, %v2387_v8  ;;  %v1180_v9 = vmax.f32 %v1178_v14, %v1179_v40  ;;  %v1614_v60 = vrot.slane %v1613_v22, 4  ;;  %v5015_v16 = vmax.f32 %v1189_v27, %v1190_v18 }
 0x1b2   : > { %v5017_v38 = vmax.f32 %v1194_v53, %v1195_v63  ;;  %v4409_v3 = vmov 0   ;;  %v1626_v47 = vmax.f32 %v1624_v7, %v1625_v59  ;;  %v1176_v5 = vrot.slane %v5012_v13, 1 }
 0x1b3   : > { %2463 = vst [vmem:[#allocation2 + $0x18] sm:$0xf] %v2447_v21  ;;  %2132 = vst [vmem:[#allocation2] sm:$0xf] %v4409_v3  ;;  %v1631_v42 = vmax.f32 %v1629_v19, %v1630_v37  ;;  %v1615_v57 = vmax.f32 %v1613_v22, %v1614_v60  ;;  %v1611_v34 = vrot.slane %v1610_v6, 1  ;;  %v1181_v27 = vrot.slane %v1180_v9, 2 }
 0x1b4   : > { %2133 = vst [vmem:[#allocation2 + $0x10] sm:$0xf] %v4409_v3  ;;  %2134 = vst [vmem:[#allocation2 + $0x20] sm:$0xf] %v4409_v3  ;;  %v2486_v0 = vshrl.u32 %v2469_v39, 16  ;;  %v920_v2 = vmax.f32 %v4818_v48, 0.0 }
 0x1b5   : > { %2135 = vst [vmem:[#allocation2 + $0x30] sm:$0xf] %v4409_v3  ;;  %2136 = vst [vmem:[#allocation2 + $0x8] sm:$0xf0] %v4409_v3  ;;  %v1616_v41 = vrot.slane %v1615_v57, 2  ;;  %v2489_v44 = vshll.u32 %v2469_v39, 16  ;;  %v1182_v56 = vmax.f32 %v1180_v9, %v1181_v27  ;;  %v1612_v43 = vmax.f32 %v1610_v6, %v1611_v34 }
 0x1b6   : > { %2137 = vst [vmem:[#allocation2 + $0x18] sm:$0xf0] %v4409_v3  ;;  %2138 = vst [vmem:[#allocation2 + $0x28] sm:$0xf0] %v4409_v3  ;;  %v918_v32 = vmax.f32 %v4821_v52, 0.0  ;;  %v1197_v7 = vrot.slane %v5017_v38, 1 }
 0x1b7   : > { %2139 = vst [vmem:[#allocation2 + $0x38] sm:$0xf0] %v4409_v3  ;;  %v2563_v55 = vrot.slane %v2469_v39, 3  ;;  %v1213_v12 = vsel %vm946_vm2, %v920_v2, -inf  ;;  %v1632_v46 = vrot.slane %v1631_v42, 1  ;;  %v1617_v49 = vmax.f32 %v1615_v57, %v1616_v41  ;;  %v5034_v6 = vpop.f32.mrb[67].mxu0 }
 0x1b8   : > { %v1214_v61 = vrot.slane %v1213_v12, 4  ;;  %v1648_v48 = vsel %vm1395_vm3, %v920_v2, -inf  ;;  %v2488_v33 = vrot.slane %v2486_v0, 2  ;;  %v1199_v15 = vsel %vm946_vm2, %v918_v32, -inf  ;;  %v4194_v2 = vpop.f32.mrb[68].mxu0 }
 0x1b9   : > { %v1649_v26 = vrot.slane %v1648_v48, 4  ;;  %v1618_v52 = vrot.slane %v1617_v49, 1  ;;  %v2491_v62 = vrot.slane %v2489_v44, 3  ;;  %v1200_v8 = vrot.slane %v1199_v15, 4 }
 0x1ba   : > { %v2549_v18 = vld [vmem:[#allocation2] sm:$0xf8]  ;;  %v1215_v53 = vmax.f32 %v1213_v12, %v1214_v61  ;;  %v1634_v40 = vsel %vm1395_vm3, %v918_v32, -inf  ;;  %v1633_v9 = vmax.f32 %v1631_v42, %v1632_v46  ;;  %v1183_v60 = vrot.slane %v1182_v56, 1 }
 0x1bb   : > { %v2468_v59 = vld [vmem:[#allocation2] sm:$0xfc]  ;;  %v2562_v19 = vrot.slane %v2549_v18, 3  ;;  %v1619_v21 = vmax.f32 %v1617_v49, %v1618_v52  ;;  %v1650_v22 = vmax.f32 %v1648_v48, %v1649_v26  ;;  %v2492_v27 = vor.u32 %v2491_v62, %v2488_v33 }
 0x1bc   : > { %v2478_v14 = vshrl.u32 %v2468_v59, 16  ;;  %v2481_v63 = vshll.u32 %v2468_v59, 16  ;;  %v1216_v37 = vrot.slane %v1215_v53, 2  ;;  %v1635_v32 = vrot.slane %v1634_v40, 4 }
 0x1bd   : > { %v2564_v39 = vsel %vm2561_vm12, %v2562_v19, %v2563_v55  ;;  %v1909_v57 = vsel %vm1876_vm4, %v1619_v21, %v1612_v43  ;;  %v1651_v44 = vrot.slane %v1650_v22, 2  ;;  %v921_v12 = vmax.f32 %v4827_v25, 0.0 }
 0x1be   : > { %v2480_v3 = vrot.slane %v2478_v14, 2  ;;  %3440 = vmatprep.mubr.bf16.mxu1 %v2564_v39  ;;  %v2483_v34 = vrot.slane %v2481_v63, 3  ;;  %v1217_v0 = vmax.f32 %v1215_v53, %v1216_v37  ;;  %v1910_v41 = vsel %vm1878_vm5, %v1626_v47, %v1909_v57  ;;  %v5055_v14 = vpop.f32.mrb[69].mxu0 }
 0x1bf   : > { %v1201_v49 = vmax.f32 %v1199_v15, %v1200_v8  ;;  %v1911_v55 = vsel %vm1880_vm6, %v1633_v9, %v1910_v41  ;;  %v5041_v61 = vmax.f32 %v5012_v13, %v1176_v5  ;;  %v1636_v48 = vmax.f32 %v1634_v40, %v1635_v32  ;;  %v4195_v40 = vpop.f32.mrb[70].mxu0 }
 0x1c0   : > { %v2484_v42 = vor.u32 %v2483_v34, %v2480_v3  ;;  %v1218_v46 = vrot.slane %v1217_v0, 1  ;;  %v1220_v26 = vsel %vm946_vm2, %v921_v12, -inf  ;;  %v1655_v33 = vsel %vm1395_vm3, %v921_v12, -inf }
 0x1c1   : > { %v5046_v43 = vmax.f32 %v5017_v38, %v1197_v7  ;;  %v5048_v47 = vmax.f32 %v1182_v56, %v1183_v60  ;;  %v1221_v52 = vrot.slane %v1220_v26, 4  ;;  %v1652_v15 = vmax.f32 %v1650_v22, %v1651_v44  ;;  %v5061_v22 = vpop.f32.mrb[71].mxu0 }
 0x1c2   : > { %v2493_v25 = vsel %vm2476_vm13, %v2484_v42, %v2492_v27  ;;  %v1637_v18 = vrot.slane %v1636_v48, 2  ;;  %v1656_v59 = vrot.slane %v1655_v33, 4  ;;  %v919_v13 = vmax.f32 %v4830_v29, 0.0 }
 0x1c3   : > { %3441 = vmatmul.mubr.bf16.vlgmr.msra.gmra.mrb[0].mxu1 %v2493_v25  ;;  %v5052_v5 = vmax.f32 %v1217_v0, %v1218_v46  ;;  %v1202_v62 = vrot.slane %v1201_v49, 2  ;;  %v1222_v53 = vmax.f32 %v1220_v26, %v1221_v52  ;;  %v924_v19 = vmax.f32 %v4850_v1, 0.0 }
 0x1c4   : > { %v1638_v38 = vmax.f32 %v1636_v48, %v1637_v18  ;;  %v1657_v7 = vmax.f32 %v1655_v33, %v1656_v59  ;;  %v1206_v56 = vsel %vm946_vm2, %v919_v13, -inf  ;;  %v922_v8 = vmax.f32 %v4854_v20, 0.0 }
 0x1c5   : > { %v1223_v21 = vrot.slane %v1222_v53, 2  ;;  %v1207_v63 = vrot.slane %v1206_v56, 4  ;;  %v1641_v37 = vsel %vm1395_vm3, %v919_v13, -inf  ;;  %v1241_v29 = vsel %vm946_vm2, %v924_v19, -inf }
 0x1c6   : > { %v1653_v9 = vrot.slane %v1652_v15, 1  ;;  %v1639_v60 = vrot.slane %v1638_v38, 1  ;;  %v1658_v1 = vrot.slane %v1657_v7, 2  ;;  %v1642_v39 = vrot.slane %v1641_v37, 4 }
 0x1c7   : > { %v1203_v3 = vmax.f32 %v1201_v49, %v1202_v62  ;;  %v1208_v57 = vmax.f32 %v1206_v56, %v1207_v63  ;;  %v1242_v34 = vrot.slane %v1241_v29, 4  ;;  %v1676_v27 = vsel %vm1395_vm3, %v924_v19, -inf }
 0x1c8   : > { %v1640_v0 = vmax.f32 %v1638_v38, %v1639_v60  ;;  %v1224_v20 = vmax.f32 %v1222_v53, %v1223_v21  ;;  %v1643_v2 = vmax.f32 %v1641_v37, %v1642_v39  ;;  %v1677_v41 = vrot.slane %v1676_v27, 4 }
 0x1c9   : > { %v1659_v44 = vmax.f32 %v1657_v7, %v1658_v1  ;;  %v1209_v32 = vrot.slane %v1208_v57, 2  ;;  %v1243_v12 = vmax.f32 %v1241_v29, %v1242_v34  ;;  %v1227_v42 = vsel %vm946_vm2, %v922_v8, -inf }
 0x1ca   : > { %v1654_v46 = vmax.f32 %v1652_v15, %v1653_v9  ;;  %v1912_v48 = vsel %vm1882_vm7, %v1640_v0, %v1911_v55  ;;  %v1644_v26 = vrot.slane %v1643_v2, 2  ;;  %v1678_v33 = vmax.f32 %v1676_v27, %v1677_v41 }
 0x1cb   : > { %v1204_v25 = vrot.slane %v1203_v3, 1  ;;  %v1210_v49 = vmax.f32 %v1208_v57, %v1209_v32  ;;  %v1244_v52 = vrot.slane %v1243_v12, 2  ;;  %v1228_v18 = vrot.slane %v1227_v42, 4 }
 0x1cc   : > { %v1225_v59 = vrot.slane %v1224_v20, 1  ;;  %v1645_v13 = vmax.f32 %v1643_v2, %v1644_v26  ;;  %v1679_v62 = vrot.slane %v1678_v33, 2  ;;  %v1662_v53 = vsel %vm1395_vm3, %v922_v8, -inf }
 0x1cd   : > { %v1660_v19 = vrot.slane %v1659_v44, 1  ;;  %v1245_v38 = vmax.f32 %v1243_v12, %v1244_v52  ;;  %v1229_v7 = vmax.f32 %v1227_v42, %v1228_v18  ;;  %v1663_v56 = vrot.slane %v1662_v53, 4 }
 0x1ce   : > { %v1211_v40 = vrot.slane %v1210_v49, 1  ;;  %v1646_v21 = vrot.slane %v1645_v13, 1  ;;  %v5067_v15 = vmax.f32 %v1678_v33, %v1679_v62  ;;  %v925_v55 = vmax.f32 %v4858_v28, 0.0 }
 0x1cf   : > { %v1246_v63 = vrot.slane %v1245_v38, 1  ;;  %v1230_v37 = vrot.slane %v1229_v7, 2  ;;  %v1664_v29 = vmax.f32 %v1662_v53, %v1663_v56  ;;  %v923_v9 = vmax.f32 %v4862_v51, 0.0 }
 0x1d0   : > { %v1205_v60 = vmax.f32 %v1203_v3, %v1204_v25  ;;  %v1647_v1 = vmax.f32 %v1645_v13, %v1646_v21  ;;  %v1248_v39 = vsel %vm946_vm2, %v925_v55, -inf  ;;  %v1683_v8 = vsel %vm1395_vm3, %v925_v55, -inf }
 0x1d1   : > { %v1226_v57 = vmax.f32 %v1224_v20, %v1225_v59  ;;  %v5073_v34 = vmax.f32 %v1659_v44, %v1660_v19  ;;  %v1665_v27 = vrot.slane %v1664_v29, 2  ;;  %v1249_v0 = vrot.slane %v1248_v39, 4 }
 0x1d2   : > { %v1212_v2 = vmax.f32 %v1210_v49, %v1211_v40  ;;  %v1913_v41 = vsel %vm1884_vm8, %v1647_v1, %v1912_v48  ;;  %v1681_v28 = vrot.slane %v5067_v15, 1  ;;  %v1684_v32 = vrot.slane %v1683_v8, 4 }
 0x1d3   : > { %v1914_v12 = vsel %vm1886_vm9, %v1654_v46, %v1913_v41  ;;  %v5078_v51 = vmax.f32 %v1245_v38, %v1246_v63  ;;  %v5080_v3 = vmax.f32 %v1229_v7, %v1230_v37  ;;  %v1234_v42 = vsel %vm946_vm2, %v923_v9, -inf }
 0x1d4   : > { %v1942_v20 = vsel %vm1939_vm10, 0.0, %v1914_v12  ;;  %v1666_v44 = vmax.f32 %v1664_v29, %v1665_v27  ;;  %v1250_v26 = vmax.f32 %v1248_v39, %v1249_v0  ;;  %v1685_v33 = vmax.f32 %v1683_v8, %v1684_v32 }
 0x1d5   : > { %v1976_v25 = vrot.slane %v1942_v20, 1  ;;  %v1977_v49 = vrot.slane %v1942_v20, 2  ;;  %v1978_v52 = vrot.slane %v1942_v20, 3  ;;  %v1979_v48 = vrot.slane %v1942_v20, 4 }
 0x1d6   : > { %v1980_v18 = vrot.slane %v1942_v20, 5  ;;  %v1981_v59 = vrot.slane %v1942_v20, 6  ;;  %v1982_v13 = vrot.slane %v1942_v20, 7  ;;  %v2100_v46 = vmax.f32 %v5041_v61, %v1942_v20 }
 0x1d7   : > { %v2101_v62 = vmax.f32 %v5048_v47, %v1976_v25  ;;  %v2102_v53 = vmax.f32 %v5015_v16, %v1977_v49  ;;  %v2103_v19 = vmax.f32 %v5046_v43, %v1978_v52  ;;  %v2104_v38 = vmax.f32 %v1205_v60, %v1979_v48 }
 0x1d8   : > { %v2105_v7 = vmax.f32 %v1212_v2, %v1980_v18  ;;  %v2106_v56 = vmax.f32 %v5052_v5, %v1981_v59  ;;  %v2107_v40 = vmax.f32 %v1226_v57, %v1982_v13  ;;  %v2172_v21 = vpack.c.bf16 %v2100_v46, %v2100_v46 }
 0x1d9   : > { %v2173_v55 = vpack.c.bf16 %v2101_v62, %v2101_v62  ;;  %v2174_v63 = vpack.c.bf16 %v2102_v53, %v2102_v53  ;;  %v2175_v37 = vpack.c.bf16 %v2103_v19, %v2103_v19  ;;  %v2176_v29 = vpack.c.bf16 %v2104_v38, %v2104_v38 }
 0x1da   : > { %v2177_v1 = vpack.c.bf16 %v2105_v7, %v2105_v7  ;;  %v2178_v39 = vpack.c.bf16 %v2106_v56, %v2106_v56  ;;  %v2179_v8 = vpack.c.bf16 %v2107_v40, %v2107_v40  ;;  %v1235_v61 = vrot.slane %v1234_v42, 4 }
 0x1db   : > { %v2301_v27 = vunpack.c.l.b16 %v2173_v55  ;;  %v2302_v47 = vunpack.c.l.b16 %v2174_v63  ;;  %v2303_v0 = vunpack.c.l.b16 %v2175_v37  ;;  %v2304_v16 = vunpack.c.l.b16 %v2176_v29 }
 0x1dc   : > { %v2300_v41 = vunpack.c.l.b16 %v2172_v21  ;;  %v2305_v43 = vunpack.c.l.b16 %v2177_v1  ;;  %v1232_v60 = vrot.slane %v5080_v3, 1  ;;  %v1669_v5 = vsel %vm1395_vm3, %v923_v9, -inf }
 0x1dd   : > { %v2306_v57 = vunpack.c.l.b16 %v2178_v39  ;;  %v2307_v2 = vunpack.c.l.b16 %v2179_v8  ;;  %v2388_v32 = vrot.slane %v2301_v27, 7  ;;  %v2390_v12 = vrot.slane %v2302_v47, 6  ;;  %v4298_v8 = vld [vmem:[%s5587_s2 + $0xc8] sm:$0xff]  }
 0x1de   : > { %v2392_v20 = vrot.slane %v2303_v0, 5  ;;  %v2394_v25 = vrot.slane %v2304_v16, 4  ;;  %v2396_v49 = vrot.slane %v2305_v43, 3  ;;  %v1667_v52 = vrot.slane %v1666_v44, 1 }
 0x1df   : > { %v2389_v48 = vsel %vm1888_vm11, %v2388_v32, %v2300_v41  ;;  %v1251_v18 = vrot.slane %v1250_v26, 2  ;;  %v1686_v59 = vrot.slane %v1685_v33, 2  ;;  %v1236_v13 = vmax.f32 %v1234_v42, %v1235_v61 }
 0x1e0   : > { %v2391_v46 = vsel %vm1876_vm4, %v2390_v12, %v2389_v48  ;;  %v1668_v62 = vmax.f32 %v1666_v44, %v1667_v52  ;;  %v1670_v53 = vrot.slane %v1669_v5, 4  ;;  %v928_v19 = vmax.f32 %v4878_v35, 0.0  ;;  %v5600_v12 = vld [vmem:[#allocation6_spill] sm:$0xff] }
 0x1e1   : > { %v2393_v9 = vsel %vm1878_vm5, %v2392_v20, %v2391_v46  ;;  %v2398_v38 = vrot.slane %v2306_v57, 2  ;;  %v5095_v7 = vmax.f32 %v1250_v26, %v1251_v18  ;;  %v1687_v56 = vmax.f32 %v1685_v33, %v1686_v59  ;;  %v4296_v33 = vld [vmem:[%s5587_s2 + $0xc0] sm:$0xff]  }
 0x1e2   : > { %v2395_v40 = vsel %vm1880_vm6, %v2394_v25, %v2393_v9  ;;  %v1915_v21 = vsel %vm1888_vm11, %v1668_v62, %v5073_v34  ;;  %v1671_v55 = vmax.f32 %v1669_v5, %v1670_v53  ;;  %v1269_v42 = vsel %vm946_vm2, %v928_v19, -inf  ;;  %v4297_v34 = vld [vmem:[%s5587_s2 + $0x80] sm:$0xff]   ;;  %3996 = vmatprep.subr.bf16.mxu1 %v4296_v33 }
 0x1e3   : > { %v2397_v63 = vsel %vm1882_vm7, %v2396_v49, %v2395_v40  ;;  %v2400_v44 = vrot.slane %v2307_v2, 1  ;;  %v1688_v37 = vrot.slane %v1687_v56, 1  ;;  %v1237_v29 = vrot.slane %v1236_v13, 2  ;;  %3997 = vmatpush3.bf16.msra.mxu1 %v4297_v34  ;;  %v4300_v49 = vld [vmem:[%s5587_s2 + $0xd0] sm:$0xff]  }
 0x1e4   : > { %v2399_v35 = vsel %vm1884_vm8, %v2398_v38, %v2397_v63  ;;  %v1672_v1 = vrot.slane %v1671_v55, 2  ;;  %v1270_v39 = vrot.slane %v1269_v42, 4  ;;  %v1704_v26 = vsel %vm1395_vm3, %v928_v19, -inf  ;;  %3998 = vmatprep.subr.bf16.mxu1 %v4298_v8  ;;  %v4301_v38 = vld [vmem:[%s5587_s2 + $0x90] sm:$0xff]  }
 0x1e5   : > { %v2401_v61 = vsel %vm1886_vm9, %v2400_v44, %v2399_v35  ;;  %v1682_v27 = vmax.f32 %v5067_v15, %v1681_v28  ;;  %v5118_v47 = vmax.f32 %v5080_v3, %v1232_v60  ;;  %v1253_v0 = vrot.slane %v5095_v7, 1  ;;  %v4299_v15 = vld [vmem:[%s5587_s2 + $0x88] sm:$0xff]   ;;  %v4302_v44 = vld [vmem:[%s5587_s2 + $0xd8] sm:$0xff]  }
 0x1e6   : > { %v2448_v16 = vpack.c.b16 %v2401_v61, %v2401_v61  ;;  %v1673_v41 = vmax.f32 %v1671_v55, %v1672_v1  ;;  %v1271_v43 = vmax.f32 %v1269_v42, %v1270_v39  ;;  %v1705_v5 = vrot.slane %v1704_v26, 4  ;;  %v5601_v42 = vld [vmem:[#allocation7_spill] sm:$0xff] }
 0x1e7   : > { %v1238_v57 = vmax.f32 %v1236_v13, %v1237_v29  ;;  %v926_v2 = vmax.f32 %v4882_v54, 0.0  ;;  %v929_v32 = vmax.f32 %v4891_v58, 0.0  ;;  %v927_v20 = vmax.f32 %v5600_v12, 0.0  ;;  %3999 = vmatpush3.bf16.msra.mxu1 %v4299_v15 }
 0x1e8   : > { %2464 = vst [vmem:[#allocation2 + $0x20] sm:$0xf0] %v2448_v16  ;;  %v1689_v28 = vmax.f32 %v1687_v56, %v1688_v37  ;;  %v1674_v3 = vrot.slane %v1673_v41, 1  ;;  %v1272_v60 = vrot.slane %v1271_v43, 2  ;;  %v1706_v25 = vmax.f32 %v1704_v26, %v1705_v5  ;;  %4000 = vmatprep.subr.bf16.mxu1 %v4300_v49 }
 0x1e9   : > { %v1255_v54 = vsel %vm946_vm2, %v926_v2, -inf  ;;  %v1690_v58 = vsel %vm1395_vm3, %v926_v2, -inf  ;;  %v1276_v52 = vsel %vm946_vm2, %v929_v32, -inf  ;;  %v1262_v48 = vsel %vm946_vm2, %v927_v20, -inf  ;;  %v4304_v32 = vld [vmem:[%s5587_s2 + $0xe0] sm:$0xff]  }
 0x1ea   : > { %v1675_v18 = vmax.f32 %v1673_v41, %v1674_v3  ;;  %v1273_v59 = vmax.f32 %v1271_v43, %v1272_v60  ;;  %v1707_v13 = vrot.slane %v1706_v25, 2  ;;  %v1256_v46 = vrot.slane %v1255_v54, 4  ;;  %v4303_v41 = vld [vmem:[%s5587_s2 + $0x98] sm:$0xff]  }
 0x1eb   : > { %v1239_v62 = vrot.slane %v1238_v57, 1  ;;  %v1691_v53 = vrot.slane %v1690_v58, 4  ;;  %v1277_v19 = vrot.slane %v1276_v52, 4  ;;  %v1263_v9 = vrot.slane %v1262_v48, 4  ;;  %4001 = vmatpush3.bf16.msra.mxu1 %v4301_v38 }
 0x1ec   : > { %v1916_v56 = vsel %vm1876_vm4, %v1675_v18, %v1915_v21  ;;  %v1257_v40 = vmax.f32 %v1255_v54, %v1256_v46  ;;  %v1697_v55 = vsel %vm1395_vm3, %v927_v20, -inf  ;;  %v930_v63 = vmax.f32 %v5601_v42, 0.0  ;;  %4002 = vmatprep.subr.bf16.mxu1 %v4302_v44 }
 0x1ed   : > { %v1917_v37 = vsel %vm1878_vm5, %v1682_v27, %v1916_v56  ;;  %v1692_v29 = vmax.f32 %v1690_v58, %v1691_v53  ;;  %v1278_v35 = vmax.f32 %v1276_v52, %v1277_v19  ;;  %v1264_v1 = vmax.f32 %v1262_v48, %v1263_v9  ;;  %v4305_v48 = vld [vmem:[%s5587_s2 + $0xa0] sm:$0xff]  }
 0x1ee   : > { %v1274_v39 = vrot.slane %v1273_v59, 1  ;;  %v1708_v26 = vmax.f32 %v1706_v25, %v1707_v13  ;;  %v1258_v33 = vrot.slane %v1257_v40, 2  ;;  %v1918_v21 = vsel %vm1880_vm6, %v1689_v28, %v1917_v37 }
 0x1ef   : > { %v1693_v34 = vrot.slane %v1692_v29, 2  ;;  %v1279_v8 = vrot.slane %v1278_v35, 2  ;;  %v1265_v61 = vrot.slane %v1264_v1, 2  ;;  %v1698_v16 = vrot.slane %v1697_v55, 4  ;;  %4003 = vmatpush3.bf16.msra.mxu1 %v4303_v41 }
 0x1f0   : > { %v5149_v43 = vmax.f32 %v5095_v7, %v1253_v0  ;;  %v1259_v27 = vmax.f32 %v1257_v40, %v1258_v33  ;;  %v1283_v5 = vsel %vm946_vm2, %v930_v63, -inf  ;;  %v1711_v2 = vsel %vm1395_vm3, %v930_v63, -inf  ;;  %v5602_v7 = vld [vmem:[#allocation8_spill] sm:$0xff]  ;;  %4004 = vmatprep.subr.bf16.mxu1 %v4304_v32 }
 0x1f1   : > { %v1694_v12 = vmax.f32 %v1692_v29, %v1693_v34  ;;  %v1280_v20 = vmax.f32 %v1278_v35, %v1279_v8  ;;  %v1266_v15 = vmax.f32 %v1264_v1, %v1265_v61  ;;  %v1699_v28 = vmax.f32 %v1697_v55, %v1698_v16  ;;  %v5171_v29 = vld [vmem:[#allocation2 + $0x10] sm:$0xf8]  ;;  %v4307_v35 = vld [vmem:[%s5587_s2 + $0xa8] sm:$0xff]  }
 0x1f2   : > { %v5156_v3 = vmax.f32 %v1238_v57, %v1239_v62  ;;  %v1284_v60 = vrot.slane %v1283_v5, 4  ;;  %v1712_v25 = vrot.slane %v1711_v2, 4  ;;  %v931_v0 = vmax.f32 %v5602_v7, 0.0  ;;  %v4306_v62 = vld [vmem:[%s5587_s2 + $0xe8] sm:$0xff]  }
 0x1f3   : > { %v5159_v49 = vmax.f32 %v1273_v59, %v1274_v39  ;;  %v1709_v54 = vrot.slane %v1708_v26, 1  ;;  %v1695_v58 = vrot.slane %v1694_v12, 1  ;;  %v1700_v52 = vrot.slane %v1699_v28, 2  ;;  %4005 = vmatpush3.bf16.msra.mxu1 %v4305_v48 }
 0x1f4   : > { %v1260_v18 = vrot.slane %v1259_v27, 1  ;;  %v1285_v13 = vmax.f32 %v1283_v5, %v1284_v60  ;;  %v1713_v46 = vmax.f32 %v1711_v2, %v1712_v25  ;;  %v1290_v57 = vsel %vm946_vm2, %v931_v0, -inf  ;;  %4006 = vmatprep.subr.bf16.mxu1 %v4306_v62  ;;  %v4309_v25 = vld [vmem:[%s5587_s2 + $0xb0] sm:$0xff]  }
 0x1f5   : > { %v1696_v59 = vmax.f32 %v1694_v12, %v1695_v58  ;;  %v1281_v53 = vrot.slane %v1280_v20, 1  ;;  %v1267_v19 = vrot.slane %v1266_v15, 1  ;;  %v1701_v9 = vmax.f32 %v1699_v28, %v1700_v52 }
 0x1f6   : > { %v1286_v38 = vrot.slane %v1285_v13, 2  ;;  %v1714_v56 = vrot.slane %v1713_v46, 2  ;;  %v1291_v40 = vrot.slane %v1290_v57, 4  ;;  %v1718_v55 = vsel %vm1395_vm3, %v931_v0, -inf }
 0x1f7   : > { %v1919_v42 = vsel %vm1882_vm7, %v1696_v59, %v1918_v21  ;;  %v1702_v63 = vrot.slane %v1701_v9, 1  ;;  %v1719_v44 = vrot.slane %v1718_v55, 4  ;;  %v934_v37 = vmax.f32 %v4932_v11, 0.0  ;;  %v4308_v21 = vld [vmem:[%s5587_s2 + $0xf0] sm:$0xff]   ;;  %4007 = vmatpush3.bf16.msra.mxu1 %v4307_v35 }
 0x1f8   : > { %v1710_v1 = vmax.f32 %v1708_v26, %v1709_v54  ;;  %v5176_v39 = vmax.f32 %v1285_v13, %v1286_v38  ;;  %v1715_v33 = vmax.f32 %v1713_v46, %v1714_v56  ;;  %v1292_v34 = vmax.f32 %v1290_v57, %v1291_v40  ;;  %4008 = vmatprep.subr.bf16.mxu1 %v4308_v21  ;;  %v4311_v38 = vld [vmem:[%s5587_s2 + $0xb8] sm:$0xff]  }
 0x1f9   : > { %v1703_v8 = vmax.f32 %v1701_v9, %v1702_v63  ;;  %v5181_v61 = vmax.f32 %v1718_v55, %v1719_v44  ;;  %v5184_v11 = vsel %vm946_vm2, %v934_v37, -inf  ;;  %v5187_v16 = vsel %vm1395_vm3, %v934_v37, -inf  ;;  %v5206_v9 = vld [vmem:[#allocation2 + $0x18] sm:$0x7] }
 0x1fa   : > { %v1261_v41 = vmax.f32 %v1259_v27, %v1260_v18  ;;  %v1282_v26 = vmax.f32 %v1280_v20, %v1281_v53  ;;  %v1268_v5 = vmax.f32 %v1266_v15, %v1267_v19  ;;  %v2565_v2 = vrot.slane %v5171_v29, 3  ;;  %v4310_v15 = vld [vmem:[%s5587_s2 + $0xf8] sm:$0xff]  }
 0x1fb   : > { %v1920_v32 = vsel %vm1884_vm8, %v1703_v8, %v1919_v42  ;;  %v1288_v12 = vrot.slane %v5176_v39, 1  ;;  %v1716_v28 = vrot.slane %v1715_v33, 1  ;;  %v1293_v60 = vrot.slane %v1292_v34, 2  ;;  %4009 = vmatpush3.bf16.msra.mxu1 %v4309_v25 }
 0x1fc   : > { %v1921_v7 = vsel %vm1886_vm9, %v1710_v1, %v1920_v32  ;;  %v1721_v0 = vrot.slane %v5181_v61, 2  ;;  %v1312_v27 = vrot.slane %v5184_v11, 4  ;;  %v1740_v20 = vrot.slane %v5187_v16, 4  ;;  %4010 = vmatprep.subr.bf16.mxu1 %v4310_v15 }
 0x1fd   : > { %v1983_v54 = vrot.slane %v1921_v7, 1  ;;  %v1984_v58 = vrot.slane %v1921_v7, 2  ;;  %v1985_v52 = vrot.slane %v1921_v7, 3  ;;  %v1986_v48 = vrot.slane %v1921_v7, 4 }
 0x1fe   : > { %v1987_v18 = vrot.slane %v1921_v7, 5  ;;  %v1988_v13 = vrot.slane %v1921_v7, 6  ;;  %v1989_v46 = vrot.slane %v1921_v7, 7  ;;  %v2108_v57 = vmax.f32 %v5118_v47, %v1921_v7 }
 0x1ff   : > { %v2109_v62 = vmax.f32 %v5156_v3, %v1983_v54  ;;  %v2110_v59 = vmax.f32 %v5078_v51, %v1984_v58  ;;  %v2111_v53 = vmax.f32 %v5149_v43, %v1985_v52  ;;  %v2112_v19 = vmax.f32 %v1261_v41, %v1986_v48  ;;  %v4312_v51 = vld [vmem:[%s5587_s2 + $0x140] sm:$0xff]   ;;  %4011 = vmatpush3.bf16.msra.mxu1 %v4311_v38 }
 0x200   : > { %v2113_v56 = vmax.f32 %v1268_v5, %v1987_v18  ;;  %v2114_v40 = vmax.f32 %v5159_v49, %v1988_v13  ;;  %v2115_v55 = vmax.f32 %v1282_v26, %v1989_v46  ;;  %v2180_v42 = vpack.c.bf16 %v2108_v57, %v2108_v57  ;;  %4036 = vmatprep.subr.bf16.mxu1 %v4312_v51 }
 0x201   : > { %v2181_v47 = vpack.c.bf16 %v2109_v62, %v2109_v62  ;;  %v2182_v43 = vpack.c.bf16 %v2110_v59, %v2110_v59  ;;  %v2183_v3 = vpack.c.bf16 %v2111_v53, %v2111_v53  ;;  %v2184_v63 = vpack.c.bf16 %v2112_v19, %v2112_v19 }
 0x202   : > { %v2185_v44 = vpack.c.bf16 %v2113_v56, %v2113_v56  ;;  %v2186_v37 = vpack.c.bf16 %v2114_v40, %v2114_v40  ;;  %v2187_v35 = vpack.c.bf16 %v2115_v55, %v2115_v55  ;;  %v2566_v1 = vrot.slane %v5206_v9, 3 }
 0x203   : > { %v2309_v21 = vunpack.c.l.b16 %v2181_v47  ;;  %v2310_v8 = vunpack.c.l.b16 %v2182_v43  ;;  %v2311_v41 = vunpack.c.l.b16 %v2183_v3  ;;  %v2312_v49 = vunpack.c.l.b16 %v2184_v63 }
 0x204   : > { %v2313_v26 = vunpack.c.l.b16 %v2185_v44  ;;  %v2314_v5 = vunpack.c.l.b16 %v2186_v37  ;;  %v1717_v32 = vmax.f32 %v1715_v33, %v1716_v28  ;;  %v1294_v25 = vmax.f32 %v1292_v34, %v1293_v60 }
 0x205   : > { %v2308_v7 = vunpack.c.l.b16 %v2180_v42  ;;  %v2315_v15 = vunpack.c.l.b16 %v2187_v35  ;;  %v2402_v54 = vrot.slane %v2309_v21, 7  ;;  %v2404_v58 = vrot.slane %v2310_v8, 6 }
 0x206   : > { %v2406_v52 = vrot.slane %v2311_v41, 5  ;;  %v2408_v48 = vrot.slane %v2312_v49, 4  ;;  %v2410_v18 = vrot.slane %v2313_v26, 3  ;;  %v2412_v13 = vrot.slane %v2314_v5, 2 }
 0x207   : > { %v2403_v46 = vsel %vm1888_vm11, %v2402_v54, %v2308_v7  ;;  %v1722_v57 = vmax.f32 %v5181_v61, %v1721_v0  ;;  %v1313_v62 = vmax.f32 %v5184_v11, %v1312_v27  ;;  %v1741_v59 = vmax.f32 %v5187_v16, %v1740_v20 }
 0x208   : > { %v2405_v33 = vsel %vm1876_vm4, %v2404_v58, %v2403_v46  ;;  %v2567_v34 = vsel %vm2561_vm12, %v2565_v2, %v2566_v1  ;;  %v932_v28 = vmax.f32 %v4961_v30, 0.0  ;;  %v935_v60 = vmax.f32 %v4965_v23, 0.0  ;;  %v2470_v1 = vld [vmem:[#allocation2 + $0x10] sm:$0xfc] }
 0x209   : > { %v2407_v53 = vsel %vm1878_vm5, %v2406_v52, %v2405_v33  ;;  %v2414_v19 = vrot.slane %v2315_v15, 1  ;;  %v1723_v38 = vrot.slane %v1722_v57, 1  ;;  %v1742_v56 = vrot.slane %v1741_v59, 2  ;;  %3448 = vmatprep.mubr.bf16.mxu1 %v2567_v34 }
 0x20a   : > { %v2409_v61 = vsel %vm1880_vm6, %v2408_v48, %v2407_v53  ;;  %v1297_v11 = vsel %vm946_vm2, %v932_v28, -inf  ;;  %v1725_v16 = vsel %vm1395_vm3, %v932_v28, -inf  ;;  %v1318_v0 = vsel %vm946_vm2, %v935_v60, -inf }
 0x20b   : > { %v2411_v2 = vsel %vm1882_vm7, %v2410_v18, %v2409_v61  ;;  %v1724_v27 = vmax.f32 %v1722_v57, %v1723_v38  ;;  %v1314_v30 = vrot.slane %v1313_v62, 2  ;;  %v1743_v20 = vmax.f32 %v1741_v59, %v1742_v56 }
 0x20c   : > { %v2413_v23 = vsel %vm1884_vm8, %v2412_v13, %v2411_v2  ;;  %v1298_v40 = vrot.slane %v1297_v11, 4  ;;  %v1726_v55 = vrot.slane %v1725_v16, 4  ;;  %v1319_v42 = vrot.slane %v1318_v0, 4 }
 0x20d   : > { %v2415_v51 = vsel %vm1886_vm9, %v2414_v19, %v2413_v23  ;;  %v5237_v47 = vmax.f32 %v5176_v39, %v1288_v12  ;;  %v1295_v43 = vrot.slane %v1294_v25, 1  ;;  %v1922_v3 = vsel %vm1876_vm4, %v1724_v27, %v1717_v32 }
 0x20e   : > { %v2449_v63 = vpack.c.b16 %v2415_v51, %v2415_v51  ;;  %v1299_v44 = vmax.f32 %v1297_v11, %v1298_v40  ;;  %v1727_v37 = vmax.f32 %v1725_v16, %v1726_v55  ;;  %v1320_v35 = vmax.f32 %v1318_v0, %v1319_v42 }
 0x20f   : > { %v5240_v21 = vmax.f32 %v1313_v62, %v1314_v30  ;;  %v1744_v8 = vrot.slane %v1743_v20, 1  ;;  %v1746_v41 = vsel %vm1395_vm3, %v935_v60, -inf  ;;  %v933_v49 = vmax.f32 %v4968_v10, 0.0 }
 0x210   : > { %2465 = vst [vmem:[#allocation2 + $0x28] sm:$0xf] %v2449_v63  ;;  %v1300_v26 = vrot.slane %v1299_v44, 2  ;;  %v1728_v5 = vrot.slane %v1727_v37, 2  ;;  %v1321_v39 = vrot.slane %v1320_v35, 2  ;;  %v1747_v12 = vrot.slane %v1746_v41, 4 }
 0x211   : > { %v1304_v7 = vsel %vm946_vm2, %v933_v49, -inf  ;;  %v1732_v32 = vsel %vm1395_vm3, %v933_v49, -inf  ;;  %v2495_v15 = vshrl.u32 %v2470_v1, 16  ;;  %v2498_v54 = vshll.u32 %v2470_v1, 16 }
 0x212   : > { %v5246_v58 = vmax.f32 %v1299_v44, %v1300_v26  ;;  %v1729_v52 = vmax.f32 %v1727_v37, %v1728_v5  ;;  %v5248_v48 = vmax.f32 %v1320_v35, %v1321_v39  ;;  %v1748_v18 = vmax.f32 %v1746_v41, %v1747_v12 }
 0x213   : > { %v5250_v13 = vmax.f32 %v1294_v25, %v1295_v43  ;;  %v1316_v10 = vrot.slane %v5240_v21, 1  ;;  %v1305_v46 = vrot.slane %v1304_v7, 4  ;;  %v1733_v57 = vrot.slane %v1732_v32, 4 }
 0x214   : > { %v1745_v62 = vmax.f32 %v1743_v20, %v1744_v8  ;;  %v1730_v59 = vrot.slane %v1729_v52, 1  ;;  %v1749_v33 = vrot.slane %v1748_v18, 2  ;;  %v2497_v34 = vrot.slane %v2495_v15, 2 }
 0x215   : > { %v1306_v28 = vmax.f32 %v1304_v7, %v1305_v46  ;;  %v1734_v60 = vmax.f32 %v1732_v32, %v1733_v57  ;;  %v2500_v53 = vrot.slane %v2498_v54, 3  ;;  %v2503_v19 = vshrl.u32 %v5206_v9, 16 }
 0x216   : > { %v1302_v38 = vrot.slane %v5246_v58, 1  ;;  %v1731_v56 = vmax.f32 %v1729_v52, %v1730_v59  ;;  %v1323_v61 = vrot.slane %v5248_v48, 1  ;;  %v1750_v25 = vmax.f32 %v1748_v18, %v1749_v33 }
 0x217   : > { %v1307_v11 = vrot.slane %v1306_v28, 2  ;;  %v1735_v16 = vrot.slane %v1734_v60, 2  ;;  %v2505_v0 = vrot.slane %v2503_v19, 2  ;;  %v2506_v2 = vshll.u32 %v5206_v9, 16 }
 0x218   : > { %v1923_v27 = vsel %vm1878_vm5, %v1731_v56, %v1922_v3  ;;  %v1751_v30 = vrot.slane %v1750_v25, 1  ;;  %v938_v20 = vmax.f32 %v4990_v24, 0.0  ;;  %v936_v23 = vmax.f32 %v4995_v31, 0.0 }
 0x219   : > { %v1308_v40 = vmax.f32 %v1306_v28, %v1307_v11  ;;  %v1736_v55 = vmax.f32 %v1734_v60, %v1735_v16  ;;  %v2508_v42 = vrot.slane %v2506_v2, 3  ;;  %v939_v51 = vmax.f32 %v5005_v17, 0.0 }
 0x21a   : > { %v2501_v43 = vor.u32 %v2500_v53, %v2497_v34  ;;  %v1339_v63 = vsel %vm946_vm2, %v938_v20, -inf  ;;  %v1767_v44 = vsel %vm1395_vm3, %v938_v20, -inf  ;;  %v1325_v37 = vsel %vm946_vm2, %v936_v23, -inf }
 0x21b   : > { %v1752_v9 = vmax.f32 %v1750_v25, %v1751_v30  ;;  %v1737_v35 = vrot.slane %v1736_v55, 1  ;;  %v2509_v3 = vor.u32 %v2508_v42, %v2505_v0  ;;  %v1340_v1 = vrot.slane %v1339_v63, 4 }
 0x21c   : > { %v1768_v8 = vrot.slane %v1767_v44, 4  ;;  %v1326_v24 = vrot.slane %v1325_v37, 4  ;;  %v1753_v31 = vsel %vm1395_vm3, %v936_v23, -inf  ;;  %v1346_v41 = vsel %vm946_vm2, %v939_v51, -inf }
 0x21d   : > { %v1309_v49 = vrot.slane %v1308_v40, 1  ;;  %v1738_v26 = vmax.f32 %v1736_v55, %v1737_v35  ;;  %v2510_v17 = vsel %vm2476_vm13, %v2501_v43, %v2509_v3  ;;  %v1341_v5 = vmax.f32 %v1339_v63, %v1340_v1 }
 0x21e   : > { %3449 = vmatmul.mubr.bf16.gmra.mrb[4].mxu1 %v2510_v17  ;;  %v1769_v39 = vmax.f32 %v1767_v44, %v1768_v8  ;;  %v1327_v12 = vmax.f32 %v1325_v37, %v1326_v24  ;;  %v1754_v7 = vrot.slane %v1753_v31, 4  ;;  %v1347_v32 = vrot.slane %v1346_v41, 4 }
 0x21f   : > { %v1924_v15 = vsel %vm1880_vm6, %v1738_v26, %v1923_v27  ;;  %v1342_v54 = vrot.slane %v1341_v5, 2  ;;  %v1774_v52 = vsel %vm1395_vm3, %v939_v51, -inf  ;;  %v937_v18 = vmax.f32 %v5009_v50, 0.0 }
 0x220   : > { %v1925_v46 = vsel %vm1882_vm7, %v1745_v62, %v1924_v15  ;;  %v1770_v57 = vrot.slane %v1769_v39, 2  ;;  %v1328_v59 = vrot.slane %v1327_v12, 2  ;;  %v1755_v33 = vmax.f32 %v1753_v31, %v1754_v7 }
 0x221   : > { %v5271_v34 = vmax.f32 %v1341_v5, %v1342_v54  ;;  %v1926_v28 = vsel %vm1884_vm8, %v1752_v9, %v1925_v46  ;;  %v1348_v60 = vmax.f32 %v1346_v41, %v1347_v32  ;;  %v1775_v53 = vrot.slane %v1774_v52, 4 }
 0x222   : > { %v1771_v19 = vmax.f32 %v1769_v39, %v1770_v57  ;;  %v1329_v56 = vmax.f32 %v1327_v12, %v1328_v59  ;;  %v1756_v25 = vrot.slane %v1755_v33, 2  ;;  %v1332_v11 = vsel %vm946_vm2, %v937_v18, -inf }
 0x223   : > { %v1317_v50 = vmax.f32 %v5240_v21, %v1316_v10  ;;  %v1349_v16 = vrot.slane %v1348_v60, 2  ;;  %v1776_v62 = vmax.f32 %v1774_v52, %v1775_v53  ;;  %v1333_v0 = vrot.slane %v1332_v11, 4 }
 0x224   : > { %v1772_v2 = vrot.slane %v1771_v19, 1  ;;  %v1330_v27 = vrot.slane %v1329_v56, 1  ;;  %v1757_v30 = vmax.f32 %v1755_v33, %v1756_v25  ;;  %v1760_v20 = vsel %vm1395_vm3, %v937_v18, -inf }
 0x225   : > { %v1303_v23 = vmax.f32 %v5246_v58, %v1302_v38  ;;  %v1324_v55 = vmax.f32 %v5248_v48, %v1323_v61  ;;  %v1777_v42 = vrot.slane %v1776_v62, 2  ;;  %v1334_v51 = vmax.f32 %v1332_v11, %v1333_v0 }
 0x226   : > { %v1310_v43 = vmax.f32 %v1308_v40, %v1309_v49  ;;  %v1344_v63 = vrot.slane %v5271_v34, 1  ;;  %v1758_v44 = vrot.slane %v1757_v30, 1  ;;  %v1761_v37 = vrot.slane %v1760_v20, 4 }
 0x227   : > { %v5282_v21 = vmax.f32 %v1348_v60, %v1349_v16  ;;  %v1778_v10 = vmax.f32 %v1776_v62, %v1777_v42  ;;  %v1335_v9 = vrot.slane %v1334_v51, 2  ;;  %v942_v35 = vmax.f32 %v5020_v45, 0.0 }
 0x228   : > { %v1773_v3 = vmax.f32 %v1771_v19, %v1772_v2  ;;  %v1331_v1 = vmax.f32 %v1329_v56, %v1330_v27  ;;  %v1759_v8 = vmax.f32 %v1757_v30, %v1758_v44  ;;  %v1762_v24 = vmax.f32 %v1760_v20, %v1761_v37 }
 0x229   : > { %v1779_v58 = vrot.slane %v1778_v10, 1  ;;  %v1336_v38 = vmax.f32 %v1334_v51, %v1335_v9  ;;  %v1367_v48 = vsel %vm946_vm2, %v942_v35, -inf  ;;  %v940_v61 = vmax.f32 %v5023_v36, 0.0 }
 0x22a   : > { %v1927_v40 = vsel %vm1886_vm9, %v1759_v8, %v1926_v28  ;;  %v1763_v31 = vrot.slane %v1762_v24, 2  ;;  %v1795_v41 = vsel %vm1395_vm3, %v942_v35, -inf  ;;  %v943_v49 = vmax.f32 %v5026_v4, 0.0 }
 0x22b   : > { %v1943_v26 = vsel %vm1939_vm10, 0.0, %v1927_v40  ;;  %v1780_v45 = vmax.f32 %v1778_v10, %v1779_v58  ;;  %v1337_v17 = vrot.slane %v1336_v38, 1  ;;  %v1368_v5 = vrot.slane %v1367_v48, 4 }
 0x22c   : > { %v1990_v39 = vrot.slane %v1943_v26, 1  ;;  %v1991_v12 = vrot.slane %v1943_v26, 2  ;;  %v1992_v7 = vrot.slane %v1943_v26, 3  ;;  %v1993_v32 = vrot.slane %v1943_v26, 4 }
 0x22d   : > { %v1994_v15 = vrot.slane %v1943_v26, 5  ;;  %v1995_v54 = vrot.slane %v1943_v26, 6  ;;  %v2116_v36 = vmax.f32 %v5237_v47, %v1943_v26  ;;  %v1796_v52 = vrot.slane %v1795_v41, 4 }
 0x22e   : > { %v2117_v18 = vmax.f32 %v5250_v13, %v1990_v39  ;;  %v2118_v46 = vmax.f32 %v1303_v23, %v1991_v12  ;;  %v2119_v57 = vmax.f32 %v1310_v43, %v1992_v7  ;;  %v2120_v59 = vmax.f32 %v1317_v50, %v1993_v32 }
 0x22f   : > { %v2121_v33 = vmax.f32 %v1324_v55, %v1994_v15  ;;  %v2122_v28 = vmax.f32 %v1331_v1, %v1995_v54  ;;  %v2188_v60 = vpack.c.bf16 %v2116_v36, %v2116_v36  ;;  %v1764_v53 = vmax.f32 %v1762_v24, %v1763_v31 }
 0x230   : > { %v2189_v19 = vpack.c.bf16 %v2117_v18, %v2117_v18  ;;  %v2190_v56 = vpack.c.bf16 %v2118_v46, %v2118_v46  ;;  %v2191_v25 = vpack.c.bf16 %v2119_v57, %v2119_v57  ;;  %v2192_v11 = vpack.c.bf16 %v2120_v59, %v2120_v59 }
 0x231   : > { %v2193_v16 = vpack.c.bf16 %v2121_v33, %v2121_v33  ;;  %v2194_v62 = vpack.c.bf16 %v2122_v28, %v2122_v28  ;;  %v1338_v0 = vmax.f32 %v1336_v38, %v1337_v17  ;;  %v1765_v2 = vrot.slane %v1764_v53, 1 }
 0x232   : > { %v2317_v27 = vunpack.c.l.b16 %v2189_v19  ;;  %v2318_v47 = vunpack.c.l.b16 %v2190_v56  ;;  %v2319_v30 = vunpack.c.l.b16 %v2191_v25  ;;  %v2320_v20 = vunpack.c.l.b16 %v2192_v11 }
 0x233   : > { %v2316_v13 = vunpack.c.l.b16 %v2188_v60  ;;  %v2321_v23 = vunpack.c.l.b16 %v2193_v16  ;;  %v1766_v42 = vmax.f32 %v1764_v53, %v1765_v2  ;;  %v1996_v50 = vrot.slane %v1943_v26, 7 }
 0x234   : > { %v2322_v55 = vunpack.c.l.b16 %v2194_v62  ;;  %v2416_v51 = vrot.slane %v2317_v27, 7  ;;  %v2418_v43 = vrot.slane %v2318_v47, 6  ;;  %v2420_v44 = vrot.slane %v2319_v30, 5 }
 0x235   : > { %v2422_v37 = vrot.slane %v2320_v20, 4  ;;  %v2424_v10 = vrot.slane %v2321_v23, 3  ;;  %v1928_v9 = vsel %vm1888_vm11, %v1773_v3, %v1766_v42  ;;  %v2123_v35 = vmax.f32 %v1338_v0, %v1996_v50 }
 0x236   : > { %v2417_v1 = vsel %vm1888_vm11, %v2416_v51, %v2316_v13  ;;  %v1369_v8 = vmax.f32 %v1367_v48, %v1368_v5  ;;  %v1797_v24 = vmax.f32 %v1795_v41, %v1796_v52  ;;  %v1353_v58 = vsel %vm946_vm2, %v940_v61, -inf }
 0x237   : > { %v2419_v38 = vsel %vm1876_vm4, %v2418_v43, %v2417_v1  ;;  %v2195_v40 = vpack.c.bf16 %v2123_v35, %v2123_v35  ;;  %v1354_v31 = vrot.slane %v1353_v58, 4  ;;  %v1781_v26 = vsel %vm1395_vm3, %v940_v61, -inf }
 0x238   : > { %v2421_v17 = vsel %vm1878_vm5, %v2420_v44, %v2419_v38  ;;  %v2426_v39 = vrot.slane %v2322_v55, 2  ;;  %v1370_v12 = vrot.slane %v1369_v8, 2  ;;  %v1782_v7 = vrot.slane %v1781_v26, 4 }
 0x239   : > { %v2423_v3 = vsel %vm1880_vm6, %v2422_v37, %v2421_v17  ;;  %v2323_v32 = vunpack.c.l.b16 %v2195_v40  ;;  %v1798_v15 = vrot.slane %v1797_v24, 2  ;;  %v1929_v48 = vsel %vm1876_vm4, %v1780_v45, %v1928_v9 }
 0x23a   : > { %v2425_v41 = vsel %vm1882_vm7, %v2424_v10, %v2423_v3  ;;  %v1351_v5 = vrot.slane %v5282_v21, 1  ;;  %v1355_v54 = vmax.f32 %v1353_v58, %v1354_v31  ;;  %v1783_v36 = vmax.f32 %v1781_v26, %v1782_v7 }
 0x23b   : > { %v2427_v52 = vsel %vm1884_vm8, %v2426_v39, %v2425_v41  ;;  %v2428_v61 = vrot.slane %v2323_v32, 1  ;;  %v1371_v18 = vmax.f32 %v1369_v8, %v1370_v12  ;;  %v1374_v46 = vsel %vm946_vm2, %v943_v49, -inf  ;;  %v2473_v8 = vld [vmem:[#allocation2 + $0x28] sm:$0x7] }
 0x23c   : > { %v5310_v57 = vmax.f32 %v5271_v34, %v1344_v63  ;;  %v1784_v45 = vrot.slane %v1783_v36, 2  ;;  %v1375_v59 = vrot.slane %v1374_v46, 4  ;;  %v1799_v28 = vmax.f32 %v1797_v24, %v1798_v15  ;;  %v5327_v24 = vld [vmem:[#allocation2 + $0x20] sm:$0xf8] }
 0x23d   : > { %v2429_v33 = vsel %vm1886_vm9, %v2428_v61, %v2427_v52  ;;  %v1802_v60 = vsel %vm1395_vm3, %v943_v49, -inf  ;;  %v941_v53 = vmax.f32 %v5034_v6, 0.0  ;;  %v5318_v19 = vmax.f32 %v5282_v21, %v1351_v5  ;;  %v2472_v15 = vld [vmem:[#allocation2 + $0x20] sm:$0xfc] }
 0x23e   : > { %v2450_v56 = vpack.c.b16 %v2429_v33, %v2429_v33  ;;  %v1356_v25 = vrot.slane %v1355_v54, 2  ;;  %v1785_v11 = vmax.f32 %v1783_v36, %v1784_v45  ;;  %v1372_v16 = vrot.slane %v1371_v18, 1 }
 0x23f   : > { %v1376_v34 = vmax.f32 %v1374_v46, %v1375_v59  ;;  %v1803_v63 = vrot.slane %v1802_v60, 4  ;;  %v1360_v62 = vsel %vm946_vm2, %v941_v53, -inf  ;;  %v1788_v4 = vsel %vm1395_vm3, %v941_v53, -inf }
 0x240   : > { %2466 = vst [vmem:[#allocation2 + $0x30] sm:$0xf0] %v2450_v56  ;;  %v1786_v0 = vrot.slane %v1785_v11, 1  ;;  %v1361_v2 = vrot.slane %v1360_v62, 4  ;;  %v944_v49 = vmax.f32 %v5055_v14, 0.0  ;;  %v1800_v27 = vrot.slane %v1799_v28, 1 }
 0x241   : > { %v1377_v6 = vrot.slane %v1376_v34, 2  ;;  %v1804_v47 = vmax.f32 %v1802_v60, %v1803_v63  ;;  %v1789_v21 = vrot.slane %v1788_v4, 4  ;;  %v1357_v42 = vmax.f32 %v1355_v54, %v1356_v25 }
 0x242   : > { %v1787_v30 = vmax.f32 %v1785_v11, %v1786_v0  ;;  %v1362_v20 = vmax.f32 %v1360_v62, %v1361_v2  ;;  %v1381_v13 = vsel %vm946_vm2, %v944_v49, -inf  ;;  %v1809_v23 = vsel %vm1395_vm3, %v944_v49, -inf }
 0x243   : > { %v1805_v50 = vrot.slane %v1804_v47, 2  ;;  %v1790_v55 = vmax.f32 %v1788_v4, %v1789_v21  ;;  %v1382_v51 = vrot.slane %v1381_v13, 4  ;;  %v1810_v37 = vrot.slane %v1809_v23, 4 }
 0x244   : > { %v1930_v43 = vsel %vm1878_vm5, %v1787_v30, %v1929_v48  ;;  %v1363_v44 = vrot.slane %v1362_v20, 2  ;;  %v945_v14 = vmax.f32 %v5061_v22, 0.0  ;;  %v1378_v10 = vmax.f32 %v1376_v34, %v1377_v6 }
 0x245   : > { %v1806_v9 = vmax.f32 %v1804_v47, %v1805_v50  ;;  %v1791_v35 = vrot.slane %v1790_v55, 2  ;;  %v1383_v1 = vmax.f32 %v1381_v13, %v1382_v51  ;;  %v1373_v58 = vmax.f32 %v1371_v18, %v1372_v16 }
 0x246   : > { %v1364_v38 = vmax.f32 %v1362_v20, %v1363_v44  ;;  %v1811_v40 = vmax.f32 %v1809_v23, %v1810_v37  ;;  %v1388_v31 = vsel %vm946_vm2, %v945_v14, -inf  ;;  %v1801_v26 = vmax.f32 %v1799_v28, %v1800_v27 }
 0x247   : > { %v1358_v17 = vrot.slane %v1357_v42, 1  ;;  %v1792_v39 = vmax.f32 %v1790_v55, %v1791_v35  ;;  %v1384_v12 = vrot.slane %v1383_v1, 2  ;;  %v1389_v3 = vrot.slane %v1388_v31, 4 }
 0x248   : > { %v1812_v7 = vrot.slane %v1811_v40, 2  ;;  %v2568_v22 = vrot.slane %v5327_v24, 3  ;;  %v2569_v32 = vrot.slane %v2473_v8, 3  ;;  %v1379_v48 = vrot.slane %v1378_v10, 1 }
 0x249   : > { %v1807_v41 = vrot.slane %v1806_v9, 1  ;;  %v1793_v5 = vrot.slane %v1792_v39, 1  ;;  %v1385_v54 = vmax.f32 %v1383_v1, %v1384_v12  ;;  %v1365_v36 = vrot.slane %v1364_v38, 1 }
 0x24a   : > { %v1813_v52 = vmax.f32 %v1811_v40, %v1812_v7  ;;  %v1390_v61 = vmax.f32 %v1388_v31, %v1389_v3  ;;  %v2570_v18 = vsel %vm2561_vm12, %v2568_v22, %v2569_v32  ;;  %v2512_v59 = vshrl.u32 %v2472_v15, 16 }
 0x24b   : > { %v1794_v46 = vmax.f32 %v1792_v39, %v1793_v5  ;;  %v1386_v45 = vrot.slane %v1385_v54, 1  ;;  %3456 = vmatprep.mubr.bf16.mxu1 %v2570_v18  ;;  %v2515_v33 = vshll.u32 %v2472_v15, 16  ;;  %v2520_v53 = vshrl.u32 %v2473_v8, 16 }
 0x24c   : > { %v1814_v28 = vrot.slane %v1813_v52, 1  ;;  %v1391_v60 = vrot.slane %v1390_v61, 2  ;;  %v2523_v56 = vshll.u32 %v2473_v8, 16  ;;  %v1359_v25 = vmax.f32 %v1357_v42, %v1358_v17 }
 0x24d   : > { %v1380_v11 = vmax.f32 %v1378_v10, %v1379_v48  ;;  %v1808_v16 = vmax.f32 %v1806_v9, %v1807_v41  ;;  %v1931_v34 = vsel %vm1880_vm6, %v1794_v46, %v1930_v43  ;;  %v1366_v63 = vmax.f32 %v1364_v38, %v1365_v36 }
 0x24e   : > { %v1932_v62 = vsel %vm1882_vm7, %v1801_v26, %v1931_v34  ;;  %v1815_v0 = vmax.f32 %v1813_v52, %v1814_v28  ;;  %v1392_v2 = vmax.f32 %v1390_v61, %v1391_v60  ;;  %v1387_v4 = vmax.f32 %v1385_v54, %v1386_v45 }
 0x24f   : > { %v1933_v49 = vsel %vm1884_vm8, %v1808_v16, %v1932_v62  ;;  %v2514_v27 = vrot.slane %v2512_v59, 2  ;;  %v2517_v6 = vrot.slane %v2515_v33, 3  ;;  %v2522_v30 = vrot.slane %v2520_v53, 2 }
 0x250   : > { %v1934_v47 = vsel %vm1886_vm9, %v1815_v0, %v1933_v49  ;;  %v1393_v21 = vrot.slane %v1392_v2, 1  ;;  %v2525_v20 = vrot.slane %v2523_v56, 3  ;;  %v5346_v0 = vld [vmem:[#allocation2 + $0x30] sm:$0xf8]  ;;  %vm2794_vm2 = vsmask.f32 2304 }
 0x251   : > { %v1997_v13 = vrot.slane %v1934_v47, 1  ;;  %v1998_v23 = vrot.slane %v1934_v47, 2  ;;  %v1999_v42 = vrot.slane %v1934_v47, 3  ;;  %v2000_v50 = vrot.slane %v1934_v47, 4 }
 0x252   : > { %v2001_v55 = vrot.slane %v1934_v47, 5  ;;  %v2002_v51 = vrot.slane %v1934_v47, 6  ;;  %v2124_v43 = vmax.f32 %v5310_v57, %v1934_v47  ;;  %v1394_v44 = vmax.f32 %v1392_v2, %v1393_v21 }
 0x253   : > { %v2125_v37 = vmax.f32 %v5318_v19, %v1997_v13  ;;  %v2126_v14 = vmax.f32 %v1359_v25, %v1998_v23  ;;  %v2127_v10 = vmax.f32 %v1366_v63, %v1999_v42  ;;  %v2128_v9 = vmax.f32 %v1373_v58, %v2000_v50  ;;  %v2474_v63 = vld [vmem:[#allocation2 + $0x30] sm:$0xfc] }
 0x254   : > { %v2129_v35 = vmax.f32 %v1380_v11, %v2001_v55  ;;  %v2130_v1 = vmax.f32 %v1387_v4, %v2002_v51  ;;  %v2196_v8 = vpack.c.bf16 %v2124_v43, %v2124_v43  ;;  %v2003_v38 = vrot.slane %v1934_v47, 7  ;;  %v2578_v4 = vld [vmem:[#allocation2 + $0x8] sm:$0xf]  ;;  %v5350_v51 = vld [vmem:[#allocation2] sm:$0xf0] }
 0x255   : > { %v2197_v40 = vpack.c.bf16 %v2125_v37, %v2125_v37  ;;  %v2198_v31 = vpack.c.bf16 %v2126_v14, %v2126_v14  ;;  %v2199_v26 = vpack.c.bf16 %v2127_v10, %v2127_v10  ;;  %v2200_v17 = vpack.c.bf16 %v2128_v9, %v2128_v9 }
 0x256   : > { %v2201_v39 = vpack.c.bf16 %v2129_v35, %v2129_v35  ;;  %v2202_v12 = vpack.c.bf16 %v2130_v1, %v2130_v1  ;;  %v2131_v7 = vmax.f32 %v1394_v44, %v2003_v38  ;;  %v2518_v19 = vor.u32 %v2517_v6, %v2514_v27  ;;  %v4344_v44 = vld [vmem:[#allocation2] sm:$0xf8] }
 0x257   : > { %v2325_v3 = vunpack.c.l.b16 %v2197_v40  ;;  %v2326_v22 = vunpack.c.l.b16 %v2198_v31  ;;  %v2327_v57 = vunpack.c.l.b16 %v2199_v26  ;;  %v2328_v32 = vunpack.c.l.b16 %v2200_v17  ;;  %v2579_v31 = vld [vmem:[#allocation2 + $0x18] sm:$0xf] }
 0x258   : > { %v2203_v15 = vpack.c.bf16 %v2131_v7, %v2131_v7  ;;  %v2526_v48 = vor.u32 %v2525_v20, %v2522_v30  ;;  %v2324_v41 = vunpack.c.l.b16 %v2196_v8  ;;  %v2329_v58 = vunpack.c.l.b16 %v2201_v39 }
 0x259   : > { %v2430_v5 = vrot.slane %v2325_v3, 7  ;;  %v2432_v54 = vrot.slane %v2326_v22, 6  ;;  %v2330_v36 = vunpack.c.l.b16 %v2202_v12  ;;  %v2434_v18 = vrot.slane %v2327_v57, 5  ;;  %v5355_v12 = vld [vmem:[#allocation2 + $0x10] sm:$0xf0] }
 0x25a   : > { %v2527_v52 = vsel %vm2476_vm13, %v2518_v19, %v2526_v48  ;;  %v2331_v46 = vunpack.c.l.b16 %v2203_v15  ;;  %v2436_v59 = vrot.slane %v2328_v32, 4  ;;  %v2438_v28 = vrot.slane %v2329_v58, 3  ;;  %v4313_v32 = vld [vmem:[%s5587_s2 + $0x100] sm:$0xff]  }
 0x25b   : > { %v2431_v61 = vsel %vm1888_vm11, %v2430_v5, %v2324_v41  ;;  %3457 = vmatmul.mubr.bf16.gmra.mrb[8].mxu1 %v2527_v52  ;;  %v2440_v53 = vrot.slane %v2330_v36, 2  ;;  %v2529_v62 = vshrl.u32 %v2474_v63, 16  ;;  %v2532_v2 = vshll.u32 %v2474_v63, 16  ;;  %v4314_v41 = vld [vmem:[%s5587_s2 + $0x148] sm:$0xff]  }
 0x25c   : > { %v2433_v45 = vsel %vm1876_vm4, %v2432_v54, %v2431_v61  ;;  %v2442_v25 = vrot.slane %v2331_v46, 1  ;;  %v2571_v27 = vrot.slane %v5346_v0, 3  ;;  %v2592_v13 = vshrl.u32 %v2578_v4, 16  ;;  %v2580_v52 = vld [vmem:[#allocation2 + $0x28] sm:$0xf]  ;;  %v4316_v46 = vld [vmem:[%s5587_s2 + $0x150] sm:$0xff]  }
 0x25d   : > { %v2435_v33 = vsel %vm1878_vm5, %v2434_v18, %v2433_v45  ;;  %v2531_v6 = vrot.slane %v2529_v62, 2  ;;  %v2534_v21 = vrot.slane %v2532_v2, 3  ;;  %v2595_v55 = vshll.u32 %v2578_v4, 16 }
 0x25e   : > { %v2437_v60 = vsel %vm1880_vm6, %v2436_v59, %v2435_v33  ;;  %v2669_v43 = vrot.slane %v2578_v4, 4  ;;  %v2584_v37 = vshrl.u32 %v4344_v44, 16  ;;  %v2587_v14 = vshll.u32 %v4344_v44, 16  ;;  %v5374_v59 = vld [vmem:[#allocation2 + $0x20] sm:$0xf0] }
 0x25f   : > { %v2439_v56 = vsel %vm1882_vm7, %v2438_v28, %v2437_v60  ;;  %v2535_v10 = vor.u32 %v2534_v21, %v2531_v6  ;;  %v2668_v35 = vrot.slane %v5350_v51, 4  ;;  %v2594_v8 = vrot.slane %v2592_v13, 3 }
 0x260   : > { %v2441_v11 = vsel %vm1884_vm8, %v2440_v53, %v2439_v56  ;;  %v2597_v38 = vrot.slane %v2595_v55, 4  ;;  %v2586_v26 = vrot.slane %v2584_v37, 3  ;;  %v2589_v17 = vrot.slane %v2587_v14, 4  ;;  %v4317_v56 = vld [vmem:[%s5587_s2 + $0x110] sm:$0xff]   ;;  %v4322_v37 = vld [vmem:[%s5587_s2 + $0x168] sm:$0xff]  }
 0x261   : > { %v2443_v16 = vsel %vm1886_vm9, %v2442_v25, %v2441_v11  ;;  %v2670_v40 = vsel %vm565_vm1, %v2668_v35, %v2669_v43  ;;  %v2609_v7 = vshrl.u32 %v2579_v31, 16  ;;  %v2612_v3 = vshll.u32 %v2579_v31, 16 }
 0x262   : > { %v2451_v34 = vpack.c.b16 %v2443_v16, %v2443_v16  ;;  %v2598_v39 = vor.u32 %v2597_v38, %v2594_v8  ;;  %v2672_v22 = vrot.slane %v2579_v31, 4  ;;  %v2590_v57 = vor.u32 %v2589_v17, %v2586_v26 }
 0x263   : > { %v2601_v15 = vshrl.u32 %v5171_v29, 16  ;;  %v2604_v19 = vshll.u32 %v5171_v29, 16  ;;  %v2671_v48 = vrot.slane %v5355_v12, 4  ;;  %v2611_v5 = vrot.slane %v2609_v7, 3  ;;  %v4315_v29 = vld [vmem:[%s5587_s2 + $0x108] sm:$0xff]  }
 0x264   : > { %2467 = vst [vmem:[#allocation2 + $0x38] sm:$0xf] %v2451_v34  ;;  %v2599_v58 = vsel %vm2582_vm14, %v2590_v57, %v2598_v39  ;;  %v2614_v54 = vrot.slane %v2612_v3, 4  ;;  %v2626_v33 = vshrl.u32 %v2580_v52, 16  ;;  %v2629_v28 = vshll.u32 %v2580_v52, 16  ;;  %v4318_v34 = vld [vmem:[%s5587_s2 + $0x158] sm:$0xff]  }
 0x265   : > { %v2673_v36 = vsel %vm565_vm1, %v2671_v48, %v2672_v22  ;;  %v2603_v61 = vrot.slane %v2601_v15, 3  ;;  %v2606_v18 = vrot.slane %v2604_v19, 4  ;;  %v2675_v60 = vrot.slane %v2580_v52, 4  ;;  %v5412_v39 = vld [vmem:[#allocation2] sm:$0xe0]  ;;  %v4326_v19 = vld [vmem:[%s5587_s2 + $0x178] sm:$0xff]  }
 0x266   : > { %v2615_v45 = vor.u32 %v2614_v54, %v2611_v5  ;;  %v2618_v25 = vshrl.u32 %v5327_v24, 16  ;;  %v2621_v11 = vshll.u32 %v5327_v24, 16  ;;  %v2674_v16 = vrot.slane %v5374_v59, 4  ;;  %v4319_v24 = vld [vmem:[%s5587_s2 + $0x118] sm:$0xff]  }
 0x267   : > { %v2607_v53 = vor.u32 %v2606_v18, %v2603_v61  ;;  %v2628_v62 = vrot.slane %v2626_v33, 3  ;;  %v2631_v2 = vrot.slane %v2629_v28, 4  ;;  %v2635_v55 = vshrl.u32 %v5346_v0, 16  ;;  %v2685_v5 = vld [vmem:[#allocation2 + $0x18] sm:$0x1f] }
 0x268   : > { %v2676_v4 = vsel %vm565_vm1, %v2674_v16, %v2675_v60  ;;  %v2623_v6 = vrot.slane %v2621_v11, 4  ;;  %v2638_v43 = vshll.u32 %v5346_v0, 16  ;;  %v4323_v0 = vld [vmem:[%s5587_s2 + $0x128] sm:$0xff]   ;;  %v2690_v3 = vshrl.u32 %v5350_v51, 16  ;;  %v4327_v52 = vld [vmem:[%s5587_s2 + $0x138] sm:$0xff]   ;;  %v4329_v11 = vld [vmem:[%s5587_s2 + $0x180] sm:$0xff]  }
 0x269   : > { %v2616_v63 = vsel %vm2582_vm14, %v2607_v53, %v2615_v45  ;;  %v2632_v21 = vor.u32 %v2631_v2, %v2628_v62  ;;  %v2637_v8 = vrot.slane %v2635_v55, 3  ;;  %v2693_v22 = vshll.u32 %v5350_v51, 16  ;;  %v4330_v2 = vld [vmem:[%s5587_s2 + $0x1c8] sm:$0xff]  }
 0x26a   : > { %v2640_v38 = vrot.slane %v2638_v43, 4  ;;  %v2774_v15 = vrot.slane %v5412_v39, 5  ;;  %v2692_v54 = vrot.slane %v2690_v3, 4  ;;  %v2715_v45 = vshrl.u32 %v2685_v5, 16  ;;  %v5473_v3 = vld [vmem:[#allocation2 + $0x30] sm:$0xe0] }
 0x26b   : > { %v2475_v49 = vld [vmem:[#allocation2 + $0x38] sm:$0x7]  ;;  %v2718_v33 = vshll.u32 %v2685_v5, 16  ;;  %v2778_v60 = vrot.slane %v2685_v5, 5  ;;  %v2707_v16 = vshrl.u32 %v5355_v12, 16 }
 0x26c   : > { %v2572_v47 = vrot.slane %v2475_v49, 3  ;;  %v2537_v30 = vshrl.u32 %v2475_v49, 16  ;;  %v2540_v20 = vshll.u32 %v2475_v49, 16  ;;  %v2581_v49 = vld [vmem:[#allocation2 + $0x38] sm:$0xf]  ;;  %v2641_v57 = vor.u32 %v2640_v38, %v2637_v8 }
 0x26d   : > { %v2646_v13 = vshll.u32 %v2581_v49, 16 }
 0x26e   : > { %v2573_v23 = vsel %vm2561_vm12, %v2571_v27, %v2572_v47  ;;  %v2539_v42 = vrot.slane %v2537_v30, 2  ;;  %v2542_v50 = vrot.slane %v2540_v20, 3  ;;  %v2620_v27 = vrot.slane %v2618_v25, 3  ;;  %v4320_v47 = vld [vmem:[%s5587_s2 + $0x160] sm:$0xff]   ;;  %v5393_v30 = vld [vmem:[#allocation2 + $0x30] sm:$0xf0] }
 0x26f   : > { %3464 = vmatprep.mubr.bf16.mxu1 %v2573_v23  ;;  %v2643_v20 = vshrl.u32 %v2581_v49, 16  ;;  %v2678_v23 = vrot.slane %v2581_v49, 4  ;;  %v2677_v44 = vrot.slane %v5393_v30, 4 }
 0x270   : > { %v2543_v9 = vor.u32 %v2542_v50, %v2539_v42  ;;  %v2624_v42 = vor.u32 %v2623_v6, %v2620_v27  ;;  %v4321_v50 = vld [vmem:[%s5587_s2 + $0x120] sm:$0xff]   ;;  %v2720_v27 = vrot.slane %v2718_v33, 5 }
 0x271   : > { %v2679_v35 = vsel %vm565_vm1, %v2677_v44, %v2678_v23  ;;  %vm2879_vm1 = vcmask 1041408  }
 0x272   : > { %v2544_v1 = vsel %vm2476_vm13, %v2535_v10, %v2543_v9  ;;  %v2633_v14 = vsel %vm2582_vm14, %v2624_v42, %v2632_v21  ;;  %v2645_v10 = vrot.slane %v2643_v20, 3  ;;  %v2648_v9 = vrot.slane %v2646_v13, 4  ;;  %v4332_v13 = vld [vmem:[%s5587_s2 + $0x1d0] sm:$0xff]   ;;  %v5454_v42 = vld [vmem:[#allocation2 + $0x20] sm:$0xe0] }
 0x273   : > { %3465 = vmatmul.mubr.bf16.gmra.mrb[12].mxu1 %v2544_v1  ;;  %v2684_v1 = vld [vmem:[#allocation2 + $0x8] sm:$0x1f]  ;;  %v2709_v21 = vrot.slane %v2707_v16, 4  ;;  %v2799_v16 = vshll.u32 %v5412_v39, 16 }
 0x274   : > { %3505 = vmatprep.mubr.bf16.mxu1 %v2670_v40  ;;  %v4324_v40 = vld [vmem:[%s5587_s2 + $0x170] sm:$0xff]   ;;  %v2649_v31 = vor.u32 %v2648_v9, %v2645_v10  ;;  %v2698_v26 = vshrl.u32 %v2684_v1, 16  ;;  %v2701_v17 = vshll.u32 %v2684_v1, 16  ;;  %v2775_v7 = vrot.slane %v2684_v1, 5 }
 0x275   : > { %v2727_v10 = vshll.u32 %v5374_v59, 16  ;;  %v2780_v9 = vrot.slane %v5454_v42, 5 }
 0x276   : > { %v2650_v48 = vsel %vm2582_vm14, %v2641_v57, %v2649_v31  ;;  %v2776_v51 = vsel %vm2773_vm15, %v2774_v15, %v2775_v7 }
 0x27b   : > { %3506 = vmatmul.mubr.bf16.vlgmr.msra.gmra.mrb[16].mxu1 %v2599_v58  ;;  %v2703_v58 = vrot.slane %v2701_v17, 5  ;;  %v4336_v17 = vld [vmem:[%s5587_s2 + $0x1e0] sm:$0xff]  }
 0x27c   : > { %4037 = vmatpush3.bf16.msra.mxu1 %v4313_v32  ;;  %3513 = vmatprep.mubr.bf16.mxu1 %v2673_v36  ;;  %v4325_v32 = vld [vmem:[%s5587_s2 + $0x130] sm:$0xff]   ;;  %v2695_v36 = vrot.slane %v2693_v22, 5 }
 0x27d   : > { %4038 = vmatprep.subr.bf16.mxu1 %v4314_v41  ;;  %v2700_v41 = vrot.slane %v2698_v26, 4  ;;  %v2729_v26 = vrot.slane %v2727_v10, 5 }
 0x27e   : > { %v2696_v25 = vor.u32 %v2695_v36, %v2692_v54 }
 0x27f   : > { %v2704_v18 = vor.u32 %v2703_v58, %v2700_v41  ;;  %v2744_v41 = vshll.u32 %v5393_v30, 16  ;;  %v2783_v58 = vrot.slane %v5473_v3, 5 }
 0x280   : > { %4039 = vmatpush3.bf16.msra.mxu1 %v4315_v29  ;;  %v4328_v29 = vld [vmem:[%s5587_s2 + $0x1c0] sm:$0xff]  }
 0x281   : > { %4040 = vmatprep.subr.bf16.mxu1 %v4316_v46  ;;  %v5431_v46 = vld [vmem:[#allocation2 + $0x10] sm:$0xe0]  ;;  %v2705_v49 = vsel %vm2688_vm0, %v2696_v25, %v2704_v18  ;;  %v2746_v18 = vrot.slane %v2744_v41, 5  ;;  %v2793_v41 = vld [vmem:[#allocation2 + $0x38] sm:$0x3f] }
 0x282   : > { %v2777_v62 = vrot.slane %v5431_v46, 5 }
 0x283   : > { %3514 = vmatmul.mubr.bf16.gmra.mrb[20].mxu1 %v2616_v63 }
 0x284   : > { %4041 = vmatpush3.bf16.msra.mxu1 %v4317_v56  ;;  %3521 = vmatprep.mubr.bf16.mxu1 %v2676_v4  ;;  %v2779_v6 = vsel %vm2773_vm15, %v2777_v62, %v2778_v60 }
 0x285   : > { %4042 = vmatprep.subr.bf16.mxu1 %v4318_v34  ;;  %v2710_v34 = vshll.u32 %v5355_v12, 16  ;;  %v4331_v12 = vld [vmem:[%s5587_s2 + $0x188] sm:$0xff]  }
 0x287   : > { %v2712_v20 = vrot.slane %v2710_v34, 5 }
 0x288   : > { %4043 = vmatpush3.bf16.msra.mxu1 %v4319_v24  ;;  %v2717_v24 = vrot.slane %v2715_v45, 4  ;;  %v4340_v45 = vld [vmem:[%s5587_s2 + $0x1f0] sm:$0xff]  }
 0x289   : > { %4044 = vmatprep.subr.bf16.mxu1 %v4320_v47  ;;  %v2686_v47 = vld [vmem:[#allocation2 + $0x28] sm:$0x1f]  ;;  %v2713_v44 = vor.u32 %v2712_v20, %v2709_v21  ;;  %v4343_v21 = vld [vmem:[%s5587_s2 + $0x1b8] sm:$0xff]  }
 0x28a   : > { %v2721_v23 = vor.u32 %v2720_v27, %v2717_v24  ;;  %v2735_v55 = vshll.u32 %v2686_v47, 16  ;;  %v2781_v43 = vrot.slane %v2686_v47, 5 }
 0x28b   : > { %3522 = vmatmul.mubr.bf16.gmra.mrb[24].mxu1 %v2633_v14  ;;  %v2724_v14 = vshrl.u32 %v5374_v59, 16  ;;  %v4335_v59 = vld [vmem:[%s5587_s2 + $0x198] sm:$0xff]  }
 0x28c   : > { %4045 = vmatpush3.bf16.msra.mxu1 %v4321_v50  ;;  %3529 = vmatprep.mubr.bf16.mxu1 %v2679_v35  ;;  %v2732_v50 = vshrl.u32 %v2686_v47, 16  ;;  %v4334_v35 = vld [vmem:[%s5587_s2 + $0x1d8] sm:$0xff]   ;;  %v2722_v1 = vsel %vm2688_vm0, %v2713_v44, %v2721_v23  ;;  %v2737_v8 = vrot.slane %v2735_v55, 5  ;;  %v2782_v38 = vsel %vm2773_vm15, %v2780_v9, %v2781_v43 }
 0x28d   : > { %4046 = vmatprep.subr.bf16.mxu1 %v4322_v37  ;;  %v4333_v37 = vld [vmem:[%s5587_s2 + $0x190] sm:$0xff]   ;;  %v2726_v31 = vrot.slane %v2724_v14, 4  ;;  %v2813_v44 = vshrl.u32 %v5431_v46, 16 }
 0x28f   : > { %v2730_v15 = vor.u32 %v2729_v26, %v2726_v31 }
 0x290   : > { %4047 = vmatpush3.bf16.msra.mxu1 %v4323_v0  ;;  %v2734_v0 = vrot.slane %v2732_v50, 4 }
 0x291   : > { %4048 = vmatprep.subr.bf16.mxu1 %v4324_v40  ;;  %v2687_v40 = vld [vmem:[#allocation2 + $0x38] sm:$0x1f] }
 0x292   : > { %v2738_v7 = vor.u32 %v2737_v8, %v2734_v0  ;;  %v2749_v22 = vshrl.u32 %v2687_v40, 16  ;;  %v2752_v57 = vshll.u32 %v2687_v40, 16  ;;  %v2792_v0 = vld [vmem:[#allocation2 + $0x28] sm:$0x3f]  ;;  %v2815_v8 = vrot.slane %v2813_v44, 5 }
 0x293   : > { %3530 = vmatmul.mubr.bf16.gmra.mrb[28].mxu1 %v2650_v48  ;;  %v2741_v48 = vshrl.u32 %v5393_v30, 16  ;;  %v4339_v30 = vld [vmem:[%s5587_s2 + $0x1a8] sm:$0xff]   ;;  %v2838_v31 = vshrl.u32 %v2792_v0, 16  ;;  %v2841_v26 = vshll.u32 %v2792_v0, 16 }
 0x294   : > { %4049 = vmatpush3.bf16.msra.mxu1 %v4325_v32  ;;  %3570 = vmatprep.mubr.bf16.mxu1 %v2776_v51  ;;  %v2784_v32 = vrot.slane %v2687_v40, 5  ;;  %v4338_v51 = vld [vmem:[%s5587_s2 + $0x1e8] sm:$0xff]   ;;  %v2739_v5 = vsel %vm2688_vm0, %v2730_v15, %v2738_v7  ;;  %v2751_v54 = vrot.slane %v2749_v22, 4  ;;  %v2754_v36 = vrot.slane %v2752_v57, 5 }
 0x295   : > { %4050 = vmatprep.subr.bf16.mxu1 %v4326_v19  ;;  %v4337_v19 = vld [vmem:[%s5587_s2 + $0x1a0] sm:$0xff]   ;;  %v2833_v22 = vshll.u32 %v5454_v42, 16  ;;  %v2840_v15 = vrot.slane %v2838_v31, 5 }
 0x296   : > { %v3972_v61 = vpop.f32.mrb[0].mxu1  ;;  %v2755_v33 = vor.u32 %v2754_v36, %v2751_v54  ;;  %v2870_v54 = vld [vmem:[#allocation2 + $0x30] sm:$0xc0]  ;;  %v2855_v36 = vshrl.u32 %v2793_v41, 16 }
 0x297   : > { %v3973_v28 = vpop.f32.mrb[1].mxu1 }
 0x298   : > { %v5433_v53 = vadd.f32 %v3973_v28, %v3972_v61  ;;  %v3975_v56 = vpop.f32.mrb[2].mxu1  ;;  %4051 = vmatpush3.bf16.msra.mxu1 %v4327_v52  ;;  %v2785_v52 = vsel %vm2773_vm15, %v2783_v58, %v2784_v32  ;;  %v2743_v61 = vrot.slane %v2741_v48, 4 }
 0x299   : > { %v3976_v63 = vpop.f32.mrb[3].mxu1  ;;  %4076 = vmatprep.subr.bf16.mxu1 %v4328_v29  ;;  %v2790_v29 = vld [vmem:[#allocation2 + $0x8] sm:$0x3f] }
 0x29a   : > { %v5444_v4 = vadd.f32 %v3976_v63, %v3975_v56  ;;  %v2804_v28 = vshrl.u32 %v2790_v29, 16  ;;  %v2807_v60 = vshll.u32 %v2790_v29, 16  ;;  %v2867_v56 = vld [vmem:[#allocation2] sm:$0xc0]  ;;  %v2881_v25 = vrot.slane %v2790_v29, 6  ;;  %v4341_v63 = vld [vmem:[%s5587_s2 + $0x1b0] sm:$0xff]  }
 0x29b   : > { %3571 = vmatmul.mubr.bf16.vlgmr.msra.gmra.mrb[32].mxu1 %v2705_v49  ;;  %v2747_v34 = vor.u32 %v2746_v18, %v2743_v61  ;;  %v2880_v62 = vrot.slane %v2867_v56, 6  ;;  %v2890_v29 = vrot.slane %v2793_v41, 6  ;;  %v2850_v61 = vshll.u32 %v5473_v3, 16 }
 0x29c   : > { %4077 = vmatpush3.bf16.msra.mxu1 %v4329_v11  ;;  %3578 = vmatprep.mubr.bf16.mxu1 %v2779_v6  ;;  %v2796_v11 = vshrl.u32 %v5412_v39, 16  ;;  %v2806_v24 = vrot.slane %v2804_v28, 5  ;;  %v2809_v27 = vrot.slane %v2807_v60, 6  ;;  %v2791_v6 = vld [vmem:[#allocation2 + $0x18] sm:$0x3f]  ;;  %v2889_v18 = vrot.slane %v2870_v54, 6 }
 0x29d   : > { %4078 = vmatprep.subr.bf16.mxu1 %v4330_v2  ;;  %v4342_v2 = vld [vmem:[%s5587_s2 + $0x1f8] sm:$0xff]   ;;  %v2756_v49 = vsel %vm2688_vm0, %v2747_v34, %v2755_v33  ;;  %v2882_v39 = vsel %vm2879_vm1, %v2880_v62, %v2881_v25  ;;  %v2821_v23 = vshrl.u32 %v2791_v6, 16  ;;  %v2824_v50 = vshll.u32 %v2791_v6, 16 }
 0x29e   : > { %v2798_v47 = vrot.slane %v2796_v11, 5  ;;  %v2810_v20 = vor.u32 %v2809_v27, %v2806_v24  ;;  %v2884_v55 = vrot.slane %v2791_v6, 6  ;;  %v2857_v33 = vrot.slane %v2855_v36, 5 }
 0x29f   : > { %v2823_v9 = vrot.slane %v2821_v23, 5  ;;  %v2891_v60 = vsel %vm2879_vm1, %v2889_v18, %v2890_v29  ;;  %v2852_v25 = vrot.slane %v2850_v61, 6 }
 0x2a0   : > { %4079 = vmatpush3.bf16.msra.mxu1 %v4331_v12  ;;  %v2801_v12 = vrot.slane %v2799_v16, 6 }
 0x2a1   : > { %4080 = vmatprep.subr.bf16.mxu1 %v4332_v13  ;;  %v2868_v13 = vld [vmem:[#allocation2 + $0x10] sm:$0xc0] }
 0x2a2   : > { %v2802_v43 = vor.u32 %v2801_v12, %v2798_v47  ;;  %v2883_v14 = vrot.slane %v2868_v13, 6 }
 0x2a3   : > { %3579 = vmatmul.mubr.bf16.gmra.mrb[36].mxu1 %v2722_v1 }
 0x2a4   : > { %4081 = vmatpush3.bf16.msra.mxu1 %v4333_v37  ;;  %3586 = vmatprep.mubr.bf16.mxu1 %v2782_v38  ;;  %v2816_v37 = vshll.u32 %v5431_v46, 16  ;;  %v2811_v10 = vsel %vm2794_vm2, %v2802_v43, %v2810_v20  ;;  %v2885_v1 = vsel %vm2879_vm1, %v2883_v14, %v2884_v55  ;;  %v2830_v46 = vshrl.u32 %v5454_v42, 16 }
 0x2a5   : > { %4082 = vmatprep.subr.bf16.mxu1 %v4334_v35  ;;  %v2826_v35 = vrot.slane %v2824_v50, 6  ;;  %v2847_v42 = vshrl.u32 %v5473_v3, 16 }
 0x2a6   : > { %v2818_v38 = vrot.slane %v2816_v37, 6  ;;  %v2832_v58 = vrot.slane %v2830_v46, 5 }
 0x2a7   : > { %v2827_v40 = vor.u32 %v2826_v35, %v2823_v9  ;;  %v2849_v56 = vrot.slane %v2847_v42, 5 }
 0x2a8   : > { %4083 = vmatpush3.bf16.msra.mxu1 %v4335_v59  ;;  %v2869_v59 = vld [vmem:[#allocation2 + $0x20] sm:$0xc0]  ;;  %v2819_v7 = vor.u32 %v2818_v38, %v2815_v8 }
 0x2a9   : > { %4084 = vmatprep.subr.bf16.mxu1 %v4336_v17  ;;  %v2887_v17 = vrot.slane %v2792_v0, 6  ;;  %v2886_v57 = vrot.slane %v2869_v59, 6  ;;  %v2853_v16 = vor.u32 %v2852_v25, %v2849_v56 }
 0x2aa   : > { %v2828_v32 = vsel %vm2794_vm2, %v2819_v7, %v2827_v40 }
 0x2ab   : > { %3587 = vmatmul.mubr.bf16.gmra.mrb[40].mxu1 %v2739_v5  ;;  %v2888_v48 = vsel %vm2879_vm1, %v2886_v57, %v2887_v17 }
 0x2ac   : > { %4085 = vmatpush3.bf16.msra.mxu1 %v4337_v19  ;;  %3594 = vmatprep.mubr.bf16.mxu1 %v2785_v52  ;;  %v2843_v19 = vrot.slane %v2841_v26, 6  ;;  %v2858_v52 = vshll.u32 %v2793_v41, 16 }
 0x2ad   : > { %4086 = vmatprep.subr.bf16.mxu1 %v4338_v51  ;;  %v2835_v51 = vrot.slane %v2833_v22, 6 }
 0x2ae   : > { %v2844_v5 = vor.u32 %v2843_v19, %v2840_v15  ;;  %v2860_v28 = vrot.slane %v2858_v52, 6 }
 0x2b0   : > { %4087 = vmatpush3.bf16.msra.mxu1 %v4339_v30  ;;  %v2836_v30 = vor.u32 %v2835_v51, %v2832_v58  ;;  %v2861_v11 = vor.u32 %v2860_v28, %v2857_v33 }
 0x2b1   : > { %4088 = vmatprep.subr.bf16.mxu1 %v4340_v45 }
 0x2b2   : > { %v2845_v45 = vsel %vm2794_vm2, %v2836_v30, %v2844_v5  ;;  %v2862_v34 = vsel %vm2794_vm2, %v2853_v16, %v2861_v11 }
 0x2b3   : > { %3595 = vmatmul.mubr.bf16.gmra.mrb[44].mxu1 %v2756_v49 }
 0x2b4   : > { %4089 = vmatpush3.bf16.msra.mxu1 %v4341_v63  ;;  %3635 = vmatprep.mubr.bf16.mxu1 %v2882_v39 }
 0x2b5   : > { %4090 = vmatprep.subr.bf16.mxu1 %v4342_v2 }
 0x2b8   : > { %4091 = vmatpush3.bf16.msra.mxu1 %v4343_v21 }
 0x2bb   : > { %3636 = vmatmul.mubr.bf16.vlgmr.msra.gmra.mrb[48].mxu1 %v2811_v10 }
 0x2bc   : > { %3643 = vmatprep.mubr.bf16.mxu1 %v2885_v1 }
 0x2c3   : > { %3644 = vmatmul.mubr.bf16.gmra.mrb[52].mxu1 %v2828_v32 }
 0x2c4   : > { %3651 = vmatprep.mubr.bf16.mxu1 %v2888_v48 }
 0x2cb   : > { %3652 = vmatmul.mubr.bf16.gmra.mrb[56].mxu1 %v2845_v45 }
 0x2cc   : > { %3659 = vmatprep.mubr.bf16.mxu1 %v2891_v60 }
 0x2d3   : > { %3660 = vmatmul.mubr.bf16.gmra.mrb[60].mxu1 %v2862_v34 }
 0x2f1   : > { %v3978_v63 = vpop.f32.mrb[4].mxu1 }
 0x2f2   : > { %v3979_v62 = vpop.f32.mrb[5].mxu1 }
 0x2f3   : > { %v3980_v2 = vadd.f32 %v3979_v62, %v3978_v63  ;;  %v3981_v3 = vpop.f32.mrb[6].mxu1 }
 0x2f4   : > { %v3982_v49 = vpop.f32.mrb[7].mxu1 }
 0x2f5   : > { %v3983_v24 = vadd.f32 %v3982_v49, %v3981_v3 }
 0x32e   : > { %v3984_v27 = vpop.f32.mrb[8].mxu1 }
 0x32f   : > { %v3985_v39 = vpop.f32.mrb[9].mxu1 }
 0x330   : > { %v3986_v6 = vadd.f32 %v3985_v39, %v3984_v27  ;;  %v3987_v47 = vpop.f32.mrb[10].mxu1 }
 0x331   : > { %v3988_v12 = vpop.f32.mrb[11].mxu1 }
 0x332   : > { %v3989_v21 = vadd.f32 %v3988_v12, %v3987_v47 }
 0x346   : > { %v3990_v20 = vpop.f32.mrb[12].mxu1 }
 0x347   : > { %v3991_v13 = vpop.f32.mrb[13].mxu1 }
 0x348   : > { %v3992_v23 = vadd.f32 %v3991_v13, %v3990_v20  ;;  %v3993_v50 = vpop.f32.mrb[14].mxu1 }
 0x349   : > { %v3994_v55 = vpop.f32.mrb[15].mxu1 }
 0x34a   : > { %v3995_v43 = vadd.f32 %v3994_v55, %v3993_v50 }
 0x34e   : > { %v4012_v44 = vpop.f32.mrb[16].mxu1 }
 0x34f   : > { %v4013_v37 = vpop.f32.mrb[17].mxu1 }
 0x350   : > { %v4014_v14 = vadd.f32 %v4013_v37, %v4012_v44  ;;  %v4015_v10 = vpop.f32.mrb[18].mxu1 }
 0x351   : > { %v4016_v9 = vpop.f32.mrb[19].mxu1 }
 0x352   : > { %v3508_v35 = vadd.f32 %v4014_v14, %v5433_v53  ;;  %v4017_v1 = vadd.f32 %v4016_v9, %v4015_v10 }
 0x354   : > { %v3511_v0 = vadd.f32 %v4017_v1, %v5444_v4 }
 0x356   : > { %v4018_v8 = vpop.f32.mrb[20].mxu1 }
 0x357   : > { %v4019_v38 = vpop.f32.mrb[21].mxu1 }
 0x358   : > { %v4020_v40 = vadd.f32 %v4019_v38, %v4018_v8  ;;  %v4021_v59 = vpop.f32.mrb[22].mxu1 }
 0x359   : > { %v4022_v31 = vpop.f32.mrb[23].mxu1 }
 0x35a   : > { %v3516_v26 = vadd.f32 %v4020_v40, %v3980_v2  ;;  %v4023_v17 = vadd.f32 %v4022_v31, %v4021_v59 }
 0x35c   : > { %v3519_v7 = vadd.f32 %v4023_v17, %v3983_v24 }
 0x35e   : > { %v4024_v46 = vpop.f32.mrb[24].mxu1 }
 0x35f   : > { %v4025_v22 = vpop.f32.mrb[25].mxu1 }
 0x360   : > { %v4026_v57 = vadd.f32 %v4025_v22, %v4024_v46  ;;  %v4027_v32 = vpop.f32.mrb[26].mxu1 }
 0x361   : > { %v4028_v15 = vpop.f32.mrb[27].mxu1 }
 0x362   : > { %v3524_v19 = vadd.f32 %v4026_v57, %v3986_v6  ;;  %v4029_v48 = vadd.f32 %v4028_v15, %v4027_v32 }
 0x364   : > { %v3527_v41 = vadd.f32 %v4029_v48, %v3989_v21 }
 0x366   : > { %v4030_v53 = vpop.f32.mrb[28].mxu1 }
 0x367   : > { %v4031_v58 = vpop.f32.mrb[29].mxu1 }
 0x368   : > { %v4032_v51 = vadd.f32 %v4031_v58, %v4030_v53  ;;  %v4033_v4 = vpop.f32.mrb[30].mxu1 }
 0x369   : > { %v4034_v5 = vpop.f32.mrb[31].mxu1 }
 0x36a   : > { %v3532_v54 = vadd.f32 %v4032_v51, %v3992_v23  ;;  %v4035_v36 = vadd.f32 %v4034_v5, %v4033_v4 }
 0x36c   : > { %v3535_v52 = vadd.f32 %v4035_v36, %v3995_v43 }
 0x36e   : > { %v4052_v29 = vpop.f32.mrb[32].mxu1 }
 0x36f   : > { %v4053_v30 = vpop.f32.mrb[33].mxu1 }
 0x370   : > { %v4054_v42 = vadd.f32 %v4053_v30, %v4052_v29  ;;  %v4055_v61 = vpop.f32.mrb[34].mxu1 }
 0x371   : > { %v4056_v18 = vpop.f32.mrb[35].mxu1 }
 0x372   : > { %v3573_v45 = vadd.f32 %v4054_v42, %v3508_v35  ;;  %v4057_v33 = vadd.f32 %v4056_v18, %v4055_v61 }
 0x374   : > { %v3576_v28 = vadd.f32 %v4057_v33, %v3511_v0 }
 0x376   : > { %v4058_v60 = vpop.f32.mrb[36].mxu1 }
 0x377   : > { %v4059_v56 = vpop.f32.mrb[37].mxu1 }
 0x378   : > { %v4060_v25 = vadd.f32 %v4059_v56, %v4058_v60  ;;  %v4061_v11 = vpop.f32.mrb[38].mxu1 }
 0x379   : > { %v4062_v16 = vpop.f32.mrb[39].mxu1 }
 0x37a   : > { %v3581_v34 = vadd.f32 %v4060_v25, %v3516_v26  ;;  %v4063_v63 = vadd.f32 %v4062_v16, %v4061_v11 }
 0x37c   : > { %v3584_v62 = vadd.f32 %v4063_v63, %v3519_v7 }
 0x37e   : > { %v4064_v2 = vpop.f32.mrb[40].mxu1 }
 0x37f   : > { %v4065_v3 = vpop.f32.mrb[41].mxu1 }
 0x380   : > { %v4066_v49 = vadd.f32 %v4065_v3, %v4064_v2  ;;  %v4067_v24 = vpop.f32.mrb[42].mxu1 }
 0x381   : > { %v4068_v27 = vpop.f32.mrb[43].mxu1 }
 0x382   : > { %v3589_v39 = vadd.f32 %v4066_v49, %v3524_v19  ;;  %v4069_v6 = vadd.f32 %v4068_v27, %v4067_v24 }
 0x384   : > { %v3592_v47 = vadd.f32 %v4069_v6, %v3527_v41 }
 0x386   : > { %v4070_v12 = vpop.f32.mrb[44].mxu1 }
 0x387   : > { %v4071_v21 = vpop.f32.mrb[45].mxu1 }
 0x388   : > { %v4072_v20 = vadd.f32 %v4071_v21, %v4070_v12  ;;  %v4073_v13 = vpop.f32.mrb[46].mxu1 }
 0x389   : > { %v4074_v23 = vpop.f32.mrb[47].mxu1 }
 0x38a   : > { %v3597_v50 = vadd.f32 %v4072_v20, %v3532_v54  ;;  %v4075_v55 = vadd.f32 %v4074_v23, %v4073_v13 }
 0x38c   : > { %v3600_v43 = vadd.f32 %v4075_v55, %v3535_v52 }
 0x38e   : > { %v4092_v44 = vpop.f32.mrb[48].mxu1 }
 0x38f   : > { %v4093_v37 = vpop.f32.mrb[49].mxu1 }
 0x390   : > { %v4094_v14 = vadd.f32 %v4093_v37, %v4092_v44  ;;  %v4095_v10 = vpop.f32.mrb[50].mxu1 }
 0x391   : > { %v4096_v9 = vpop.f32.mrb[51].mxu1 }
 0x392   : > { %v3638_v35 = vadd.f32 %v4094_v14, %v3573_v45  ;;  %v4097_v1 = vadd.f32 %v4096_v9, %v4095_v10 }
 0x394   : > { %v3668_v0 = vmax.f32 %v3638_v35, 0.0  ;;  %v3641_v8 = vadd.f32 %v4097_v1, %v3576_v28 }
 0x396   : > { %3676 = vst [vmem:[%s5523_s20] sm:$0xff] %v3668_v0  ;;  %v3669_v38 = vmax.f32 %v3641_v8, 0.0  ;;  %v4098_v40 = vpop.f32.mrb[52].mxu1 }
 0x397   : > { %v4099_v59 = vpop.f32.mrb[53].mxu1 }
 0x398   : > { %3677 = vst [vmem:[%s5523_s20 + $0x8] sm:$0xff] %v3669_v38  ;;  %v4100_v31 = vadd.f32 %v4099_v59, %v4098_v40  ;;  %v4101_v26 = vpop.f32.mrb[54].mxu1 }
 0x399   : > { %v4102_v17 = vpop.f32.mrb[55].mxu1 }
 0x39a   : > { %v3646_v7 = vadd.f32 %v4100_v31, %v3581_v34  ;;  %v4103_v46 = vadd.f32 %v4102_v17, %v4101_v26 }
 0x39c   : > { %v3670_v22 = vmax.f32 %v3646_v7, 0.0  ;;  %v3649_v57 = vadd.f32 %v4103_v46, %v3584_v62 }
 0x39e   : > { %3678 = vst [vmem:[%s5523_s20 + $0x10] sm:$0xff] %v3670_v22  ;;  %v3671_v32 = vmax.f32 %v3649_v57, 0.0  ;;  %v4104_v15 = vpop.f32.mrb[56].mxu1 }
 0x39f   : > { %v4105_v19 = vpop.f32.mrb[57].mxu1 }
 0x3a0   : > { %3679 = vst [vmem:[%s5523_s20 + $0x18] sm:$0xff] %v3671_v32  ;;  %v4106_v48 = vadd.f32 %v4105_v19, %v4104_v15  ;;  %v4107_v41 = vpop.f32.mrb[58].mxu1 }
 0x3a1   : > { %v4108_v53 = vpop.f32.mrb[59].mxu1 }
 0x3a2   : > { %v3654_v58 = vadd.f32 %v4106_v48, %v3589_v39  ;;  %v4109_v51 = vadd.f32 %v4108_v53, %v4107_v41 }
 0x3a4   : > { %v3672_v4 = vmax.f32 %v3654_v58, 0.0  ;;  %v3657_v5 = vadd.f32 %v4109_v51, %v3592_v47 }
 0x3a6   : > { %3680 = vst [vmem:[%s5523_s20 + $0x20] sm:$0xff] %v3672_v4  ;;  %v3673_v54 = vmax.f32 %v3657_v5, 0.0  ;;  %v4110_v36 = vpop.f32.mrb[60].mxu1 }
 0x3a7   : > { %v4111_v52 = vpop.f32.mrb[61].mxu1 }
 0x3a8   : > { %3681 = vst [vmem:[%s5523_s20 + $0x28] sm:$0xff] %v3673_v54  ;;  %v4112_v29 = vadd.f32 %v4111_v52, %v4110_v36  ;;  %v4113_v30 = vpop.f32.mrb[62].mxu1 }
 0x3a9   : > { %v4114_v42 = vpop.f32.mrb[63].mxu1 }
 0x3aa   : > { %v3662_v61 = vadd.f32 %v4112_v29, %v3597_v50  ;;  %v4115_v18 = vadd.f32 %v4114_v42, %v4113_v30 }
 0x3ac   : > { %v3674_v45 = vmax.f32 %v3662_v61, 0.0  ;;  %v3665_v33 = vadd.f32 %v4115_v18, %v3600_v43 }
 0x3ae   : > { %3682 = vst [vmem:[%s5523_s20 + $0x30] sm:$0xff] %v3674_v45  ;;  %v3675_v28 = vmax.f32 %v3665_v33, 0.0 }
 0x3b0   : > { %3683 = vst [vmem:[%s5523_s20 + $0x38] sm:$0xff] %v3675_v28 }
 0x3b1   : > { %4358 = shalt.err (!%p4355_p3)
}
 0x3b2   : > { %s4359_s6 = scalar_lea.hbm %s5536_s28, 1024  ;;  %s4363_s9 = scalar_lea.hbm %s5588_s3, 2048 }
 0x3b3   : > { %p4360_p4 = scmp.ne.s32.totalorder %s5536_s28, %s4359_s6  ;;  %p4364_p9 = scmp.lt.u32.totalorder %s5536_s28, %s5588_s3 }
 0x3b4   : > { %p4365_p10 = scmp.lt.u32.totalorder %s4363_s9, %s4359_s6  ;;  %p4367_p12 = scmp.lt.u32.totalorder %s4359_s6, %s5536_s28 }
 0x3b5   : > { %p4361_p7 = pnand %p4360_p4, %p4471_p5 }
 0x3b6   : > { %p4366_p11 = por %p4365_p10, %p4364_p9 }
 0x3b7   : > { %p4362_p8 = pneg %p4361_p7 }
 0x3b8   : > { %p4368_p13 = por %p4367_p12, %p4366_p11 }
 0x3ba   : > { %p4369_p0 = pnand %p4368_p13, %p4362_p8 }
 0x3bc   : > { %4372 = shalt.err (!%p4369_p0)
}
 0x3bd   : > { %s4411_s17 = smov 128   ;;  %s4412_s19 = smov 8  }
 0x3be   : > { %4198 = dma.vmem_to_hbm [thread:$0]  (%p4471_p5), %s5538_s25, 1024, %s5536_s28, %s5544_s29, %s4411_s17, %s4411_s17, %s4412_s19  }
 0x3bf PF: > { %p4204_p1 = scmp.ge.s32.totalorder %s4407_s15, 2  ;;  %s3714_s20 = sand.u32 1, %s4395_s12  }
 0x3c0   : > { %s3715_s24 = scalar_lea.sflag [#allocation4], %s3714_s20 }
 0x3c1   : > { %p4201_p2 = pnand %p4204_p1, %p4475_p6 }
 0x3c3   : > { %4390 = dma.done.wait (!%p4201_p2), %s3715_s24, 1024  }
 0x3c4   : > { %4392 = vsyncadd (!%p4201_p2), %s3715_s24, 4294966272  ;;  %p13_p3 = scmp.ge.s32.totalorder %s4458_s18, 4   ;;  %s5603_s12 = smov %s4399_s13 }
 0x3c5   : > { %s5604_s13 = smov %s4403_s14  ;;  %s5605_s14 = smov %s4469_s21 }
 0x3c6   : > { %s5606_s15 = smov %s4458_s18  ;;  %15 = sbr.rel (!%p13_p3) target bundleno = 3 (0x3), region = 67 }
 0x3cd   :  { %3720 = vsyncpa [#allocation4], 1 }
 0x3ce   :  { %3722 = vsyncpa [#allocation4 + $0x1], 1 }

</bundles_post_ra>
